<compile_context>
chip_gen: v7x
topology: tpu7x:2x2x1
jax: 0.10.0
libtpu: 0.0.40
codegen_flags: <defaults>
</compile_context>

<pallas_src>
import functools

import numpy as np
import jax
import jax.numpy as jnp
from jax.experimental import pallas as pl
from jax.experimental.pallas import tpu as pltpu


_LAYERS = (
    # (weight name, stride, padding, (gamma, beta) or None)
    ("w1", 1, 0, ("g1", "b1")),
    ("w2", 2, 1, ("g2", "b2")),
    ("w3", 2, 1, ("g3", "b3")),
    ("w4", 2, 3, None),
)


def _batch_tile(n):
    """Images per grid step (amortizes the ~0.35us/step pipeline overhead)."""
    for g in (8, 4, 2, 1):
        if n % g == 0:
            return g
    return 1


# ------------------------------ Pallas kernel --------------------------------

def _deconv_kernel(*refs, g_imgs, has_prologue, has_stats, apply_tanh):
    """Fused ConvTranspose2d layer.  Per image:
         a   = relu(x * scale + shift)            (prev layer's folded BN, f32)
         r   = a_bf16 @ Wexp_bf16                 (MXU; W-scatter folded in)
         y   = sum_kh  S[kh] @ r[:, kh-block]     (MXU; H-scatter, exact f32)
         [BN batch sum / sum^2 of y, pre-downcast]
         [tanh(y)]                                (last layer only)
       The cropped output tile is written to HBM exactly once.
    """
    it = iter(refs)
    x_ref = next(it)                   # (G, H, W*Cin)
    w_ref = next(it)                   # (W*Cin, K*OW*Cout)  bf16
    s_ref = next(it)                   # (K, OH, H)          f32 0/1 scatter mats
    if has_prologue:
        sc_ref = next(it)              # (1, W*Cin) folded-BN scale (tiled over W)
        sh_ref = next(it)              # (1, W*Cin) folded-BN shift
    y_ref = next(it)                   # (G, OH, OW*Cout)
    if has_stats:
        sum_ref = next(it)             # (1, 1, OW*Cout) per-step partial sums
        sq_ref = next(it)              # (1, 1, OW*Cout)

    kk, oh, _ = s_ref.shape
    owc = y_ref.shape[2]

    acc_s = jnp.zeros((1, owc), jnp.float32)
    acc_q = jnp.zeros((1, owc), jnp.float32)

    for g in range(g_imgs):            # static unroll, G <= 8
        a = x_ref[g].astype(jnp.float32)                        # (H, W*Cin)
        if has_prologue:                                        # BN+ReLU prologue, f32
            a = jnp.maximum(a * sc_ref[...] + sh_ref[...], 0.0)
        r = jnp.dot(a.astype(jnp.bfloat16), w_ref[...],
                    preferred_element_type=jnp.float32)          # (H, K*OW*Cout)
        out = jnp.zeros((oh, owc), jnp.float32)
        for kh in range(kk):                                     # H-direction col2im
            out = out + jnp.dot(s_ref[kh], r[:, kh * owc:(kh + 1) * owc],
                                preferred_element_type=jnp.float32)
        if has_stats:                                            # stats on f32, pre-cast
            acc_s = acc_s + jnp.sum(out, axis=0, keepdims=True)
            acc_q = acc_q + jnp.sum(out * out, axis=0, keepdims=True)
        if apply_tanh:
            out = jnp.tanh(out)
        y_ref[g] = out.astype(y_ref.dtype)

    if has_stats:
        sum_ref[0] = acc_s
        sq_ref[0] = acc_q


def deconv_layer(x, wexp, scat, scale=None, shift=None, *,
                 apply_tanh, want_stats, out_dtype):
    """x: (N, H, W*Cin) activations (bf16/f32).  Returns (y[, sum, sumsq])."""
    n, h, wcin = x.shape
    kk, oh, h2 = scat.shape
    assert h == h2
    owc = wexp.shape[1] // kk
    g_imgs = _batch_tile(n)
    steps = n // g_imgs
    has_prologue = scale is not None

    kern = functools.partial(_deconv_kernel, g_imgs=g_imgs,
                             has_prologue=has_prologue,
                             has_stats=want_stats, apply_tanh=apply_tanh)

    in_specs = [
        pl.BlockSpec((g_imgs, h, wcin), lambda b: (b, 0, 0)),
        pl.BlockSpec((wcin, kk * owc), lambda b: (0, 0)),      # grid-constant weight
        pl.BlockSpec((kk, oh, h), lambda b: (0, 0, 0)),        # grid-constant scatter
    ]
    inputs = [x, wexp, scat]
    if has_prologue:                                           # no dummy streams if not
        in_specs += [pl.BlockSpec((1, wcin), lambda b: (0, 0)),
                     pl.BlockSpec((1, wcin), lambda b: (0, 0))]
        inputs += [scale.reshape(1, wcin), shift.reshape(1, wcin)]

    out_shape = [jax.ShapeDtypeStruct((n, oh, owc), out_dtype)]
    out_specs = [pl.BlockSpec((g_imgs, oh, owc), lambda b: (b, 0, 0))]
    if want_stats:
        # Per-step partials (not accumulated in place) -> batch axis stays
        # fully parallel (v7x megacore shards it); the tiny cross-step sum is jnp.
        out_shape += [jax.ShapeDtypeStruct((steps, 1, owc), jnp.float32)] * 2
        out_specs += [pl.BlockSpec((1, 1, owc), lambda b: (b, 0, 0))] * 2

    flops = 2 * n * h * wcin * kk * owc + 2 * n * kk * oh * h * owc
    bytes_accessed = int(x.size * x.dtype.itemsize + wexp.size * 2 + scat.size * 4
                         + n * oh * owc * jnp.dtype(out_dtype).itemsize)
    cost = pl.CostEstimate(flops=int(flops),
                           transcendentals=int(n * oh * owc) if apply_tanh else 0,
                           bytes_accessed=bytes_accessed)

    return pl.pallas_call(
        kern,
        out_shape=tuple(out_shape),
        grid=(steps,),
        in_specs=in_specs,
        out_specs=tuple(out_specs),
        compiler_params=pltpu.CompilerParams(
            dimension_semantics=("parallel",),
            vmem_limit_bytes=32 * 1024 * 1024),   # safe on v5e/v6e/v7x; tiny footprint
        cost_estimate=cost,
    )(*inputs)


# --------------------------- one-time weight prep -----------------------------

def prepare_params(params):
    """Offline re-layout of ConvTranspose2d weights (Cin, Cout, K, K):
      * Wexp (W_in*Cin, K*OW*Cout) bf16: W-direction scatter + output crop folded
        into the matmul weight (rows follow the (j, c) activation lane layout).
      * scat (K, OH, H_in) f32 0/1: H-direction scatter matrices for the MXU.
    """
    prepped = dict(params)
    h = w = 1
    for wname, stride, pad, _ in _LAYERS:
        wt = np.asarray(params[wname], dtype=np.float32)   # (cin, cout, K, K)
        cin, cout, kk, _ = wt.shape
        oh = (h - 1) * stride - 2 * pad + kk
        ow = (w - 1) * stride - 2 * pad + kk
        wexp = np.zeros((w * cin, kk * ow * cout), np.float32)
        for j in range(w):
            for kw in range(kk):
                ow_pos = stride * j + kw - pad
                if 0 <= ow_pos < ow:
                    for kh in range(kk):
                        col = (kh * ow + ow_pos) * cout
                        wexp[j * cin:(j + 1) * cin, col:col + cout] = wt[:, :, kh, kw]
        scat = np.zeros((kk, oh, h), np.float32)
        for kh in range(kk):
            for i in range(h):
                oh_pos = stride * i + kh - pad
                if 0 <= oh_pos < oh:
                    scat[kh, oh_pos, i] = 1.0
        prepped[wname + "_wexp"] = jnp.asarray(wexp).astype(jnp.bfloat16)
        prepped[wname + "_scat"] = jnp.asarray(scat)
        h, w = oh, ow
    return prepped


# --------------------------- Generator forward --------------------------------

def generator_forward(x_nchw, params):
    """x_nchw: (N, ninput, 1, 1) -> (N, 1, 28, 28), matching the PyTorch module."""
    eps = 1e-5
    n = x_nchw.shape[0]
    x = x_nchw.reshape(n, 1, -1).astype(jnp.float32)       # (N, H=1, W*Cin=ninput)
    scale_w = shift_w = None
    y = None
    h = w = 1
    for wname, stride, pad, bn in _LAYERS:
        cin, cout, kk, _ = params[wname].shape
        oh = (h - 1) * stride - 2 * pad + kk
        ow = (w - 1) * stride - 2 * pad + kk
        last = bn is None
        outs = deconv_layer(
            x, params[wname + "_wexp"], params[wname + "_scat"],
            scale_w, shift_w,
            apply_tanh=last, want_stats=not last,
            out_dtype=jnp.float32 if last else jnp.bfloat16)
        if last:
            y = outs[0]                                     # (N, 28, 28), tanh applied
        else:
            y_raw, ssum, ssq = outs                         # raw conv output, bf16
            gamma, beta = params[bn[0]], params[bn[1]]
            cnt = n * oh * ow
            s_c = ssum.reshape(-1, ow, cout).sum(axis=(0, 1))
            q_c = ssq.reshape(-1, ow, cout).sum(axis=(0, 1))
            mean = s_c / cnt
            var = jnp.maximum(q_c / cnt - mean * mean, 0.0)  # biased batch variance
            scale_c = gamma * jax.lax.rsqrt(var + eps)
            shift_c = beta - mean * scale_c
            scale_w = jnp.tile(scale_c, ow)                 # per-(j, c) lane layout
            shift_w = jnp.tile(shift_c, ow)
            x = y_raw                                       # BN+ReLU folded into next prologue
        h, w = oh, ow
    return y.reshape(n, 1, 28, 28)                          # NCHW, C=1


# --------------------------- pure-jnp f32 reference ---------------------------

def reference_forward(x_nchw, params, eps=1e-5):
    n = x_nchw.shape[0]
    x = x_nchw.reshape(n, 1, 1, -1).astype(jnp.float32)     # NHWC, H=W=1
    h = w = 1
    y = None
    for wname, stride, pad, bn in _LAYERS:
        wgt = params[wname].astype(jnp.float32)             # (cin, cout, K, K)
        cin, cout, kk, _ = wgt.shape
        oh = (h - 1) * stride - 2 * pad + kk
        ow = (w - 1) * stride - 2 * pad + kk
        pt = jnp.einsum('nhwc,coij->nhwijo', x, wgt)
        full = jnp.zeros((n, (h - 1) * stride + kk, (w - 1) * stride + kk, cout),
                         jnp.float32)
        for kh in range(kk):
            for kw in range(kk):
                full = full.at[:, kh:kh + (h - 1) * stride + 1:stride,
                                  kw:kw + (w - 1) * stride + 1:stride, :].add(
                                      pt[:, :, :, kh, kw, :])
        y = full[:, pad:pad + oh, pad:pad + ow, :]
        if bn is not None:
            g, b = params[bn[0]], params[bn[1]]
            mean = y.mean(axis=(0, 1, 2))
            var = y.var(axis=(0, 1, 2))
            x = jnp.maximum((y - mean) * (g * jax.lax.rsqrt(var + eps)) + b, 0.0)
        else:
            y = jnp.tanh(y)
        h, w = oh, ow
    return jnp.transpose(y, (0, 3, 1, 2))


# --------------------------------- params -------------------------------------

def init_params(key, ninput, ngf):
    ks = jax.random.split(key, 12)

    def wgt(k, cin, cout):
        return 0.02 * jax.random.normal(k, (cin, cout, 4, 4), jnp.float32)

    def bnp(kg, kb, c):
        g = 1.0 + 0.02 * jax.random.normal(kg, (c,), jnp.float32)
        b = 0.02 * jax.random.normal(kb, (c,), jnp.float32)
        return g, b

    p = {}
    p["w1"] = wgt(ks[0], ninput, ngf * 8)
    p["g1"], p["b1"] = bnp(ks[1], ks[2], ngf * 8)
    p["w2"] = wgt(ks[3], ngf * 8, ngf * 4)
    p["g2"], p["b2"] = bnp(ks[4], ks[5], ngf * 4)
    p["w3"] = wgt(ks[6], ngf * 4, ngf * 2)
    p["g3"], p["b3"] = bnp(ks[7], ks[8], ngf * 2)
    p["w4"] = wgt(ks[9], ngf * 2, 1)
    return p


if __name__ == "__main__":
    batch, ninput, ngf = 2, 16, 8   # small but structurally identical to the module
    key = jax.random.PRNGKey(0)
    kx, kp = jax.random.split(key)
    x = jax.random.normal(kx, (batch, ninput, 1, 1), jnp.float32)
    params = prepare_params(init_params(kp, ninput, ngf))   # one-time weight re-layout

    fwd = jax.jit(generator_forward)
    out = jax.block_until_ready(fwd(x, params))

    assert out.shape == (batch, 1, 28, 28), out.shape
    assert bool(jnp.all(jnp.isfinite(out)))
    assert bool(jnp.max(jnp.abs(out)) <= 1.0 + 1e-6)

    ref = reference_forward(x, params)
    err = float(jnp.max(jnp.abs(out.astype(jnp.float32) - ref)))
    # Loose tolerance: bf16 activation storage + bf16 MXU inputs are intentional.
    assert err < 0.1, f"max abs error vs f32 reference = {err}"
    print("KERNEL_OK")
</pallas_src>

<mosaic_0001>
module attributes {stable_mosaic.version = 11 : i64} {
  func.func @_deconv_kernel(%arg0: i32, %arg1: memref<2x1x16xf32, #tpu.memory_space<vmem>>, %arg2: memref<16x1024xbf16, #tpu.memory_space<vmem>>, %arg3: memref<4x4x1xf32, #tpu.memory_space<vmem>>, %arg4: memref<2x4x256xbf16, #tpu.memory_space<vmem>>, %arg5: memref<1x1x256xf32, #tpu.memory_space<vmem>>, %arg6: memref<1x1x256xf32, #tpu.memory_space<vmem>>) attributes {dimension_semantics = [#tpu.dimension_semantics<parallel>], iteration_bounds = array<i64: 1>, scalar_prefetch = 0 : i64, scratch_operands = 0 : i64, tpu.core_type = #tpu.core_type<tc>, window_params = [{transform_indices = @transform_0, window_bounds = array<i64: 2, 1, 16>}, {pipeline_mode = #tpu.pipeline_mode<synchronous>, transform_indices = @transform_1, window_bounds = array<i64: 16, 1024>}, {pipeline_mode = #tpu.pipeline_mode<synchronous>, transform_indices = @transform_2, window_bounds = array<i64: 4, 4, 1>}, {transform_indices = @transform_3, window_bounds = array<i64: 2, 4, 256>}, {transform_indices = @transform_4, window_bounds = array<i64: 1, 1, 256>}, {transform_indices = @transform_5, window_bounds = array<i64: 1, 1, 256>}]} {
    %cst = arith.constant 0.000000e+00 : f32
    %0 = vector.broadcast %cst : f32 to vector<1x256xf32>
    %cst_0 = arith.constant 0.000000e+00 : f32
    %1 = vector.broadcast %cst_0 : f32 to vector<1x256xf32>
    %c0 = arith.constant 0 : index
    %c0_1 = arith.constant 0 : index
    %c0_2 = arith.constant 0 : index
    %2 = vector.load %arg1[%c0, %c0_1, %c0_2] : memref<2x1x16xf32, #tpu.memory_space<vmem>>, vector<1x1x16xf32>
    %3 = vector.shape_cast %2 : vector<1x1x16xf32> to vector<1x16xf32>
    %4 = arith.truncf %3 : vector<1x16xf32> to vector<1x16xbf16>
    %c0_3 = arith.constant 0 : index
    %c0_4 = arith.constant 0 : index
    %5 = vector.load %arg2[%c0_3, %c0_4] : memref<16x1024xbf16, #tpu.memory_space<vmem>>, vector<16x1024xbf16>
    %cst_5 = arith.constant dense<0.000000e+00> : vector<1x1024xf32>
    %6 = tpu.matmul %4, %5, %cst_5 {dimension_numbers = #tpu.dot_dimension_numbers<[1], [0], [0], [1], [0, 0, 1, 1], [], []>} : vector<1x16xbf16>, vector<16x1024xbf16>, vector<1x1024xf32> -> vector<1x1024xf32>
    %cst_6 = arith.constant 0.000000e+00 : f32
    %7 = vector.broadcast %cst_6 : f32 to vector<4x256xf32>
    %c0_7 = arith.constant 0 : index
    %c0_8 = arith.constant 0 : index
    %c0_9 = arith.constant 0 : index
    %8 = vector.load %arg3[%c0_7, %c0_8, %c0_9] : memref<4x4x1xf32, #tpu.memory_space<vmem>>, vector<1x4x1xf32>
    %9 = vector.shape_cast %8 : vector<1x4x1xf32> to vector<4x1xf32>
    %10 = vector.extract_strided_slice %6 {offsets = [0, 0], sizes = [1, 256], strides = [1, 1]} : vector<1x1024xf32> to vector<1x256xf32>
    %cst_10 = arith.constant dense<0.000000e+00> : vector<4x256xf32>
    %11 = tpu.matmul %9, %10, %cst_10 {dimension_numbers = #tpu.dot_dimension_numbers<[1], [0], [0], [1], [0, 0, 1, 1], [], []>} : vector<4x1xf32>, vector<1x256xf32>, vector<4x256xf32> -> vector<4x256xf32>
    %12 = arith.addf %7, %11 : vector<4x256xf32>
    %c1 = arith.constant 1 : index
    %c0_11 = arith.constant 0 : index
    %c0_12 = arith.constant 0 : index
    %13 = vector.load %arg3[%c1, %c0_11, %c0_12] : memref<4x4x1xf32, #tpu.memory_space<vmem>>, vector<1x4x1xf32>
    %14 = vector.shape_cast %13 : vector<1x4x1xf32> to vector<4x1xf32>
    %15 = vector.extract_strided_slice %6 {offsets = [0, 256], sizes = [1, 256], strides = [1, 1]} : vector<1x1024xf32> to vector<1x256xf32>
    %cst_13 = arith.constant dense<0.000000e+00> : vector<4x256xf32>
    %16 = tpu.matmul %14, %15, %cst_13 {dimension_numbers = #tpu.dot_dimension_numbers<[1], [0], [0], [1], [0, 0, 1, 1], [], []>} : vector<4x1xf32>, vector<1x256xf32>, vector<4x256xf32> -> vector<4x256xf32>
    %17 = arith.addf %12, %16 : vector<4x256xf32>
    %c2 = arith.constant 2 : index
    %c0_14 = arith.constant 0 : index
    %c0_15 = arith.constant 0 : index
    %18 = vector.load %arg3[%c2, %c0_14, %c0_15] : memref<4x4x1xf32, #tpu.memory_space<vmem>>, vector<1x4x1xf32>
    %19 = vector.shape_cast %18 : vector<1x4x1xf32> to vector<4x1xf32>
    %20 = vector.extract_strided_slice %6 {offsets = [0, 512], sizes = [1, 256], strides = [1, 1]} : vector<1x1024xf32> to vector<1x256xf32>
    %cst_16 = arith.constant dense<0.000000e+00> : vector<4x256xf32>
    %21 = tpu.matmul %19, %20, %cst_16 {dimension_numbers = #tpu.dot_dimension_numbers<[1], [0], [0], [1], [0, 0, 1, 1], [], []>} : vector<4x1xf32>, vector<1x256xf32>, vector<4x256xf32> -> vector<4x256xf32>
    %22 = arith.addf %17, %21 : vector<4x256xf32>
    %c3 = arith.constant 3 : index
    %c0_17 = arith.constant 0 : index
    %c0_18 = arith.constant 0 : index
    %23 = vector.load %arg3[%c3, %c0_17, %c0_18] : memref<4x4x1xf32, #tpu.memory_space<vmem>>, vector<1x4x1xf32>
    %24 = vector.shape_cast %23 : vector<1x4x1xf32> to vector<4x1xf32>
    %25 = vector.extract_strided_slice %6 {offsets = [0, 768], sizes = [1, 256], strides = [1, 1]} : vector<1x1024xf32> to vector<1x256xf32>
    %cst_19 = arith.constant dense<0.000000e+00> : vector<4x256xf32>
    %26 = tpu.matmul %24, %25, %cst_19 {dimension_numbers = #tpu.dot_dimension_numbers<[1], [0], [0], [1], [0, 0, 1, 1], [], []>} : vector<4x1xf32>, vector<1x256xf32>, vector<4x256xf32> -> vector<4x256xf32>
    %27 = arith.addf %22, %26 : vector<4x256xf32>
    %cst_20 = arith.constant dense<0.000000e+00> : vector<256xf32>
    %28 = vector.multi_reduction <add>, %27, %cst_20 [0] : vector<4x256xf32> to vector<256xf32>
    %29 = vector.shape_cast %28 : vector<256xf32> to vector<1x256xf32>
    %30 = arith.addf %0, %29 : vector<1x256xf32>
    %31 = arith.mulf %27, %27 : vector<4x256xf32>
    %cst_21 = arith.constant dense<0.000000e+00> : vector<256xf32>
    %32 = vector.multi_reduction <add>, %31, %cst_21 [0] : vector<4x256xf32> to vector<256xf32>
    %33 = vector.shape_cast %32 : vector<256xf32> to vector<1x256xf32>
    %34 = arith.addf %1, %33 : vector<1x256xf32>
    %35 = arith.truncf %27 : vector<4x256xf32> to vector<4x256xbf16>
    %c0_22 = arith.constant 0 : index
    %c0_23 = arith.constant 0 : index
    %c0_24 = arith.constant 0 : index
    %36 = vector.load %arg4[%c0_22, %c0_23, %c0_24] : memref<2x4x256xbf16, #tpu.memory_space<vmem>>, vector<1x4x256xbf16>
    %37 = vector.shape_cast %36 : vector<1x4x256xbf16> to vector<4x256xbf16>
    %38 = vector.shape_cast %35 : vector<4x256xbf16> to vector<1x4x256xbf16>
    tpu.vector_store %arg4[%c0_22, %c0_23, %c0_24], %38 {strides = array<i32>} : memref<2x4x256xbf16, #tpu.memory_space<vmem>>, vector<1x4x256xbf16>,
    %c1_25 = arith.constant 1 : index
    %c0_26 = arith.constant 0 : index
    %c0_27 = arith.constant 0 : index
    %39 = vector.load %arg1[%c1_25, %c0_26, %c0_27] : memref<2x1x16xf32, #tpu.memory_space<vmem>>, vector<1x1x16xf32>
    %40 = vector.shape_cast %39 : vector<1x1x16xf32> to vector<1x16xf32>
    %41 = arith.truncf %40 : vector<1x16xf32> to vector<1x16xbf16>
    %c0_28 = arith.constant 0 : index
    %c0_29 = arith.constant 0 : index
    %42 = vector.load %arg2[%c0_28, %c0_29] : memref<16x1024xbf16, #tpu.memory_space<vmem>>, vector<16x1024xbf16>
    %cst_30 = arith.constant dense<0.000000e+00> : vector<1x1024xf32>
    %43 = tpu.matmul %41, %42, %cst_30 {dimension_numbers = #tpu.dot_dimension_numbers<[1], [0], [0], [1], [0, 0, 1, 1], [], []>} : vector<1x16xbf16>, vector<16x1024xbf16>, vector<1x1024xf32> -> vector<1x1024xf32>
    %cst_31 = arith.constant 0.000000e+00 : f32
    %44 = vector.broadcast %cst_31 : f32 to vector<4x256xf32>
    %c0_32 = arith.constant 0 : index
    %c0_33 = arith.constant 0 : index
    %c0_34 = arith.constant 0 : index
    %45 = vector.load %arg3[%c0_32, %c0_33, %c0_34] : memref<4x4x1xf32, #tpu.memory_space<vmem>>, vector<1x4x1xf32>
    %46 = vector.shape_cast %45 : vector<1x4x1xf32> to vector<4x1xf32>
    %47 = vector.extract_strided_slice %43 {offsets = [0, 0], sizes = [1, 256], strides = [1, 1]} : vector<1x1024xf32> to vector<1x256xf32>
    %cst_35 = arith.constant dense<0.000000e+00> : vector<4x256xf32>
    %48 = tpu.matmul %46, %47, %cst_35 {dimension_numbers = #tpu.dot_dimension_numbers<[1], [0], [0], [1], [0, 0, 1, 1], [], []>} : vector<4x1xf32>, vector<1x256xf32>, vector<4x256xf32> -> vector<4x256xf32>
    %49 = arith.addf %44, %48 : vector<4x256xf32>
    %c1_36 = arith.constant 1 : index
    %c0_37 = arith.constant 0 : index
    %c0_38 = arith.constant 0 : index
    %50 = vector.load %arg3[%c1_36, %c0_37, %c0_38] : memref<4x4x1xf32, #tpu.memory_space<vmem>>, vector<1x4x1xf32>
    %51 = vector.shape_cast %50 : vector<1x4x1xf32> to vector<4x1xf32>
    %52 = vector.extract_strided_slice %43 {offsets = [0, 256], sizes = [1, 256], strides = [1, 1]} : vector<1x1024xf32> to vector<1x256xf32>
    %cst_39 = arith.constant dense<0.000000e+00> : vector<4x256xf32>
    %53 = tpu.matmul %51, %52, %cst_39 {dimension_numbers = #tpu.dot_dimension_numbers<[1], [0], [0], [1], [0, 0, 1, 1], [], []>} : vector<4x1xf32>, vector<1x256xf32>, vector<4x256xf32> -> vector<4x256xf32>
    %54 = arith.addf %49, %53 : vector<4x256xf32>
    %c2_40 = arith.constant 2 : index
    %c0_41 = arith.constant 0 : index
    %c0_42 = arith.constant 0 : index
    %55 = vector.load %arg3[%c2_40, %c0_41, %c0_42] : memref<4x4x1xf32, #tpu.memory_space<vmem>>, vector<1x4x1xf32>
    %56 = vector.shape_cast %55 : vector<1x4x1xf32> to vector<4x1xf32>
    %57 = vector.extract_strided_slice %43 {offsets = [0, 512], sizes = [1, 256], strides = [1, 1]} : vector<1x1024xf32> to vector<1x256xf32>
    %cst_43 = arith.constant dense<0.000000e+00> : vector<4x256xf32>
    %58 = tpu.matmul %56, %57, %cst_43 {dimension_numbers = #tpu.dot_dimension_numbers<[1], [0], [0], [1], [0, 0, 1, 1], [], []>} : vector<4x1xf32>, vector<1x256xf32>, vector<4x256xf32> -> vector<4x256xf32>
    %59 = arith.addf %54, %58 : vector<4x256xf32>
    %c3_44 = arith.constant 3 : index
    %c0_45 = arith.constant 0 : index
    %c0_46 = arith.constant 0 : index
    %60 = vector.load %arg3[%c3_44, %c0_45, %c0_46] : memref<4x4x1xf32, #tpu.memory_space<vmem>>, vector<1x4x1xf32>
    %61 = vector.shape_cast %60 : vector<1x4x1xf32> to vector<4x1xf32>
    %62 = vector.extract_strided_slice %43 {offsets = [0, 768], sizes = [1, 256], strides = [1, 1]} : vector<1x1024xf32> to vector<1x256xf32>
    %cst_47 = arith.constant dense<0.000000e+00> : vector<4x256xf32>
    %63 = tpu.matmul %61, %62, %cst_47 {dimension_numbers = #tpu.dot_dimension_numbers<[1], [0], [0], [1], [0, 0, 1, 1], [], []>} : vector<4x1xf32>, vector<1x256xf32>, vector<4x256xf32> -> vector<4x256xf32>
    %64 = arith.addf %59, %63 : vector<4x256xf32>
    %cst_48 = arith.constant dense<0.000000e+00> : vector<256xf32>
    %65 = vector.multi_reduction <add>, %64, %cst_48 [0] : vector<4x256xf32> to vector<256xf32>
    %66 = vector.shape_cast %65 : vector<256xf32> to vector<1x256xf32>
    %67 = arith.addf %30, %66 : vector<1x256xf32>
    %68 = arith.mulf %64, %64 : vector<4x256xf32>
    %cst_49 = arith.constant dense<0.000000e+00> : vector<256xf32>
    %69 = vector.multi_reduction <add>, %68, %cst_49 [0] : vector<4x256xf32> to vector<256xf32>
    %70 = vector.shape_cast %69 : vector<256xf32> to vector<1x256xf32>
    %71 = arith.addf %34, %70 : vector<1x256xf32>
    %72 = arith.truncf %64 : vector<4x256xf32> to vector<4x256xbf16>
    %c1_50 = arith.constant 1 : index
    %c0_51 = arith.constant 0 : index
    %c0_52 = arith.constant 0 : index
    %73 = vector.load %arg4[%c1_50, %c0_51, %c0_52] : memref<2x4x256xbf16, #tpu.memory_space<vmem>>, vector<1x4x256xbf16>
    %74 = vector.shape_cast %73 : vector<1x4x256xbf16> to vector<4x256xbf16>
    %75 = vector.shape_cast %72 : vector<4x256xbf16> to vector<1x4x256xbf16>
    tpu.vector_store %arg4[%c1_50, %c0_51, %c0_52], %75 {strides = array<i32>} : memref<2x4x256xbf16, #tpu.memory_space<vmem>>, vector<1x4x256xbf16>,
    %c0_53 = arith.constant 0 : index
    %c0_54 = arith.constant 0 : index
    %c0_55 = arith.constant 0 : index
    %76 = vector.load %arg5[%c0_53, %c0_54, %c0_55] : memref<1x1x256xf32, #tpu.memory_space<vmem>>, vector<1x1x256xf32>
    %77 = vector.shape_cast %76 : vector<1x1x256xf32> to vector<1x256xf32>
    %78 = vector.shape_cast %67 : vector<1x256xf32> to vector<1x1x256xf32>
    tpu.vector_store %arg5[%c0_53, %c0_54, %c0_55], %78 {strides = array<i32>} : memref<1x1x256xf32, #tpu.memory_space<vmem>>, vector<1x1x256xf32>,
    %c0_56 = arith.constant 0 : index
    %c0_57 = arith.constant 0 : index
    %c0_58 = arith.constant 0 : index
    %79 = vector.load %arg6[%c0_56, %c0_57, %c0_58] : memref<1x1x256xf32, #tpu.memory_space<vmem>>, vector<1x1x256xf32>
    %80 = vector.shape_cast %79 : vector<1x1x256xf32> to vector<1x256xf32>
    %81 = vector.shape_cast %71 : vector<1x256xf32> to vector<1x1x256xf32>
    tpu.vector_store %arg6[%c0_56, %c0_57, %c0_58], %81 {strides = array<i32>} : memref<1x1x256xf32, #tpu.memory_space<vmem>>, vector<1x1x256xf32>,
    return
  }
  func.func @transform_0(%arg0: i32) -> (i32, i32, i32) {
    %c0_i32 = arith.constant 0 : i32
    %c0_i32_0 = arith.constant 0 : i32
    %c0_i32_1 = arith.constant 0 : i32
    return %arg0, %c0_i32, %c0_i32_0 : i32, i32, i32
  }
  func.func @transform_1(%arg0: i32) -> (i32, i32) {
    %c0_i32 = arith.constant 0 : i32
    %c0_i32_0 = arith.constant 0 : i32
    %c0_i32_1 = arith.constant 0 : i32
    return %c0_i32, %c0_i32_0 : i32, i32
  }
  func.func @transform_2(%arg0: i32) -> (i32, i32, i32) {
    %c0_i32 = arith.constant 0 : i32
    %c0_i32_0 = arith.constant 0 : i32
    %c0_i32_1 = arith.constant 0 : i32
    %c0_i32_2 = arith.constant 0 : i32
    return %c0_i32, %c0_i32_0, %c0_i32_1 : i32, i32, i32
  }
  func.func @transform_3(%arg0: i32) -> (i32, i32, i32) {
    %c0_i32 = arith.constant 0 : i32
    %c0_i32_0 = arith.constant 0 : i32
    %c0_i32_1 = arith.constant 0 : i32
    return %arg0, %c0_i32, %c0_i32_0 : i32, i32, i32
  }
  func.func @transform_4(%arg0: i32) -> (i32, i32, i32) {
    %c0_i32 = arith.constant 0 : i32
    %c0_i32_0 = arith.constant 0 : i32
    %c0_i32_1 = arith.constant 0 : i32
    return %arg0, %c0_i32, %c0_i32_0 : i32, i32, i32
  }
  func.func @transform_5(%arg0: i32) -> (i32, i32, i32) {
    %c0_i32 = arith.constant 0 : i32
    %c0_i32_0 = arith.constant 0 : i32
    %c0_i32_1 = arith.constant 0 : i32
    return %arg0, %c0_i32, %c0_i32_0 : i32, i32, i32
  }
}

module attributes {stable_mosaic.version = 11 : i64} {
  func.func @_deconv_kernel(%arg0: i32, %arg1: memref<2x4x256xbf16, #tpu.memory_space<vmem>>, %arg2: memref<256x1024xbf16, #tpu.memory_space<vmem>>, %arg3: memref<4x8x4xf32, #tpu.memory_space<vmem>>, %arg4: memref<1x256xf32, #tpu.memory_space<vmem>>, %arg5: memref<1x256xf32, #tpu.memory_space<vmem>>, %arg6: memref<2x8x256xbf16, #tpu.memory_space<vmem>>, %arg7: memref<1x1x256xf32, #tpu.memory_space<vmem>>, %arg8: memref<1x1x256xf32, #tpu.memory_space<vmem>>) attributes {dimension_semantics = [#tpu.dimension_semantics<parallel>], iteration_bounds = array<i64: 1>, scalar_prefetch = 0 : i64, scratch_operands = 0 : i64, tpu.core_type = #tpu.core_type<tc>, window_params = [{transform_indices = @transform_0, window_bounds = array<i64: 2, 4, 256>}, {pipeline_mode = #tpu.pipeline_mode<synchronous>, transform_indices = @transform_1, window_bounds = array<i64: 256, 1024>}, {pipeline_mode = #tpu.pipeline_mode<synchronous>, transform_indices = @transform_2, window_bounds = array<i64: 4, 8, 4>}, {pipeline_mode = #tpu.pipeline_mode<synchronous>, transform_indices = @transform_3, window_bounds = array<i64: 1, 256>}, {pipeline_mode = #tpu.pipeline_mode<synchronous>, transform_indices = @transform_4, window_bounds = array<i64: 1, 256>}, {transform_indices = @transform_5, window_bounds = array<i64: 2, 8, 256>}, {transform_indices = @transform_6, window_bounds = array<i64: 1, 1, 256>}, {transform_indices = @transform_7, window_bounds = array<i64: 1, 1, 256>}]} {
    %cst = arith.constant 0.000000e+00 : f32
    %0 = vector.broadcast %cst : f32 to vector<1x256xf32>
    %cst_0 = arith.constant 0.000000e+00 : f32
    %1 = vector.broadcast %cst_0 : f32 to vector<1x256xf32>
    %c0 = arith.constant 0 : index
    %c0_1 = arith.constant 0 : index
    %c0_2 = arith.constant 0 : index
    %2 = vector.load %arg1[%c0, %c0_1, %c0_2] : memref<2x4x256xbf16, #tpu.memory_space<vmem>>, vector<1x4x256xbf16>
    %3 = vector.shape_cast %2 : vector<1x4x256xbf16> to vector<4x256xbf16>
    %4 = arith.extf %3 : vector<4x256xbf16> to vector<4x256xf32>
    %c0_3 = arith.constant 0 : index
    %c0_4 = arith.constant 0 : index
    %5 = vector.load %arg4[%c0_3, %c0_4] : memref<1x256xf32, #tpu.memory_space<vmem>>, vector<1x256xf32>
    %6 = vector.broadcast %5 : vector<1x256xf32> to vector<4x256xf32>
    %7 = arith.mulf %4, %6 : vector<4x256xf32>
    %c0_5 = arith.constant 0 : index
    %c0_6 = arith.constant 0 : index
    %8 = vector.load %arg5[%c0_5, %c0_6] : memref<1x256xf32, #tpu.memory_space<vmem>>, vector<1x256xf32>
    %9 = vector.broadcast %8 : vector<1x256xf32> to vector<4x256xf32>
    %10 = arith.addf %7, %9 : vector<4x256xf32>
    %cst_7 = arith.constant 0.000000e+00 : f32
    %11 = vector.broadcast %cst_7 : f32 to vector<4x256xf32>
    %12 = arith.maximumf %10, %11 : vector<4x256xf32>
    %13 = arith.truncf %12 : vector<4x256xf32> to vector<4x256xbf16>
    %c0_8 = arith.constant 0 : index
    %c0_9 = arith.constant 0 : index
    %14 = vector.load %arg2[%c0_8, %c0_9] : memref<256x1024xbf16, #tpu.memory_space<vmem>>, vector<256x1024xbf16>
    %cst_10 = arith.constant dense<0.000000e+00> : vector<4x1024xf32>
    %15 = tpu.matmul %13, %14, %cst_10 {dimension_numbers = #tpu.dot_dimension_numbers<[1], [0], [0], [1], [0, 0, 1, 1], [], []>} : vector<4x256xbf16>, vector<256x1024xbf16>, vector<4x1024xf32> -> vector<4x1024xf32>
    %cst_11 = arith.constant 0.000000e+00 : f32
    %16 = vector.broadcast %cst_11 : f32 to vector<8x256xf32>
    %c0_12 = arith.constant 0 : index
    %c0_13 = arith.constant 0 : index
    %c0_14 = arith.constant 0 : index
    %17 = vector.load %arg3[%c0_12, %c0_13, %c0_14] : memref<4x8x4xf32, #tpu.memory_space<vmem>>, vector<1x8x4xf32>
    %18 = vector.shape_cast %17 : vector<1x8x4xf32> to vector<8x4xf32>
    %19 = vector.extract_strided_slice %15 {offsets = [0, 0], sizes = [4, 256], strides = [1, 1]} : vector<4x1024xf32> to vector<4x256xf32>
    %cst_15 = arith.constant dense<0.000000e+00> : vector<8x256xf32>
    %20 = tpu.matmul %18, %19, %cst_15 {dimension_numbers = #tpu.dot_dimension_numbers<[1], [0], [0], [1], [0, 0, 1, 1], [], []>} : vector<8x4xf32>, vector<4x256xf32>, vector<8x256xf32> -> vector<8x256xf32>
    %21 = arith.addf %16, %20 : vector<8x256xf32>
    %c1 = arith.constant 1 : index
    %c0_16 = arith.constant 0 : index
    %c0_17 = arith.constant 0 : index
    %22 = vector.load %arg3[%c1, %c0_16, %c0_17] : memref<4x8x4xf32, #tpu.memory_space<vmem>>, vector<1x8x4xf32>
    %23 = vector.shape_cast %22 : vector<1x8x4xf32> to vector<8x4xf32>
    %24 = vector.extract_strided_slice %15 {offsets = [0, 256], sizes = [4, 256], strides = [1, 1]} : vector<4x1024xf32> to vector<4x256xf32>
    %cst_18 = arith.constant dense<0.000000e+00> : vector<8x256xf32>
    %25 = tpu.matmul %23, %24, %cst_18 {dimension_numbers = #tpu.dot_dimension_numbers<[1], [0], [0], [1], [0, 0, 1, 1], [], []>} : vector<8x4xf32>, vector<4x256xf32>, vector<8x256xf32> -> vector<8x256xf32>
    %26 = arith.addf %21, %25 : vector<8x256xf32>
    %c2 = arith.constant 2 : index
    %c0_19 = arith.constant 0 : index
    %c0_20 = arith.constant 0 : index
    %27 = vector.load %arg3[%c2, %c0_19, %c0_20] : memref<4x8x4xf32, #tpu.memory_space<vmem>>, vector<1x8x4xf32>
    %28 = vector.shape_cast %27 : vector<1x8x4xf32> to vector<8x4xf32>
    %29 = vector.extract_strided_slice %15 {offsets = [0, 512], sizes = [4, 256], strides = [1, 1]} : vector<4x1024xf32> to vector<4x256xf32>
    %cst_21 = arith.constant dense<0.000000e+00> : vector<8x256xf32>
    %30 = tpu.matmul %28, %29, %cst_21 {dimension_numbers = #tpu.dot_dimension_numbers<[1], [0], [0], [1], [0, 0, 1, 1], [], []>} : vector<8x4xf32>, vector<4x256xf32>, vector<8x256xf32> -> vector<8x256xf32>
    %31 = arith.addf %26, %30 : vector<8x256xf32>
    %c3 = arith.constant 3 : index
    %c0_22 = arith.constant 0 : index
    %c0_23 = arith.constant 0 : index
    %32 = vector.load %arg3[%c3, %c0_22, %c0_23] : memref<4x8x4xf32, #tpu.memory_space<vmem>>, vector<1x8x4xf32>
    %33 = vector.shape_cast %32 : vector<1x8x4xf32> to vector<8x4xf32>
    %34 = vector.extract_strided_slice %15 {offsets = [0, 768], sizes = [4, 256], strides = [1, 1]} : vector<4x1024xf32> to vector<4x256xf32>
    %cst_24 = arith.constant dense<0.000000e+00> : vector<8x256xf32>
    %35 = tpu.matmul %33, %34, %cst_24 {dimension_numbers = #tpu.dot_dimension_numbers<[1], [0], [0], [1], [0, 0, 1, 1], [], []>} : vector<8x4xf32>, vector<4x256xf32>, vector<8x256xf32> -> vector<8x256xf32>
    %36 = arith.addf %31, %35 : vector<8x256xf32>
    %cst_25 = arith.constant dense<0.000000e+00> : vector<256xf32>
    %37 = vector.multi_reduction <add>, %36, %cst_25 [0] : vector<8x256xf32> to vector<256xf32>
    %38 = vector.shape_cast %37 : vector<256xf32> to vector<1x256xf32>
    %39 = arith.addf %0, %38 : vector<1x256xf32>
    %40 = arith.mulf %36, %36 : vector<8x256xf32>
    %cst_26 = arith.constant dense<0.000000e+00> : vector<256xf32>
    %41 = vector.multi_reduction <add>, %40, %cst_26 [0] : vector<8x256xf32> to vector<256xf32>
    %42 = vector.shape_cast %41 : vector<256xf32> to vector<1x256xf32>
    %43 = arith.addf %1, %42 : vector<1x256xf32>
    %44 = arith.truncf %36 : vector<8x256xf32> to vector<8x256xbf16>
    %c0_27 = arith.constant 0 : index
    %c0_28 = arith.constant 0 : index
    %c0_29 = arith.constant 0 : index
    %45 = vector.load %arg6[%c0_27, %c0_28, %c0_29] : memref<2x8x256xbf16, #tpu.memory_space<vmem>>, vector<1x8x256xbf16>
    %46 = vector.shape_cast %45 : vector<1x8x256xbf16> to vector<8x256xbf16>
    %47 = vector.shape_cast %44 : vector<8x256xbf16> to vector<1x8x256xbf16>
    tpu.vector_store %arg6[%c0_27, %c0_28, %c0_29], %47 {strides = array<i32>} : memref<2x8x256xbf16, #tpu.memory_space<vmem>>, vector<1x8x256xbf16>,
    %c1_30 = arith.constant 1 : index
    %c0_31 = arith.constant 0 : index
    %c0_32 = arith.constant 0 : index
    %48 = vector.load %arg1[%c1_30, %c0_31, %c0_32] : memref<2x4x256xbf16, #tpu.memory_space<vmem>>, vector<1x4x256xbf16>
    %49 = vector.shape_cast %48 : vector<1x4x256xbf16> to vector<4x256xbf16>
    %50 = arith.extf %49 : vector<4x256xbf16> to vector<4x256xf32>
    %c0_33 = arith.constant 0 : index
    %c0_34 = arith.constant 0 : index
    %51 = vector.load %arg4[%c0_33, %c0_34] : memref<1x256xf32, #tpu.memory_space<vmem>>, vector<1x256xf32>
    %52 = vector.broadcast %51 : vector<1x256xf32> to vector<4x256xf32>
    %53 = arith.mulf %50, %52 : vector<4x256xf32>
    %c0_35 = arith.constant 0 : index
    %c0_36 = arith.constant 0 : index
    %54 = vector.load %arg5[%c0_35, %c0_36] : memref<1x256xf32, #tpu.memory_space<vmem>>, vector<1x256xf32>
    %55 = vector.broadcast %54 : vector<1x256xf32> to vector<4x256xf32>
    %56 = arith.addf %53, %55 : vector<4x256xf32>
    %cst_37 = arith.constant 0.000000e+00 : f32
    %57 = vector.broadcast %cst_37 : f32 to vector<4x256xf32>
    %58 = arith.maximumf %56, %57 : vector<4x256xf32>
    %59 = arith.truncf %58 : vector<4x256xf32> to vector<4x256xbf16>
    %c0_38 = arith.constant 0 : index
    %c0_39 = arith.constant 0 : index
    %60 = vector.load %arg2[%c0_38, %c0_39] : memref<256x1024xbf16, #tpu.memory_space<vmem>>, vector<256x1024xbf16>
    %cst_40 = arith.constant dense<0.000000e+00> : vector<4x1024xf32>
    %61 = tpu.matmul %59, %60, %cst_40 {dimension_numbers = #tpu.dot_dimension_numbers<[1], [0], [0], [1], [0, 0, 1, 1], [], []>} : vector<4x256xbf16>, vector<256x1024xbf16>, vector<4x1024xf32> -> vector<4x1024xf32>
    %cst_41 = arith.constant 0.000000e+00 : f32
    %62 = vector.broadcast %cst_41 : f32 to vector<8x256xf32>
    %c0_42 = arith.constant 0 : index
    %c0_43 = arith.constant 0 : index
    %c0_44 = arith.constant 0 : index
    %63 = vector.load %arg3[%c0_42, %c0_43, %c0_44] : memref<4x8x4xf32, #tpu.memory_space<vmem>>, vector<1x8x4xf32>
    %64 = vector.shape_cast %63 : vector<1x8x4xf32> to vector<8x4xf32>
    %65 = vector.extract_strided_slice %61 {offsets = [0, 0], sizes = [4, 256], strides = [1, 1]} : vector<4x1024xf32> to vector<4x256xf32>
    %cst_45 = arith.constant dense<0.000000e+00> : vector<8x256xf32>
    %66 = tpu.matmul %64, %65, %cst_45 {dimension_numbers = #tpu.dot_dimension_numbers<[1], [0], [0], [1], [0, 0, 1, 1], [], []>} : vector<8x4xf32>, vector<4x256xf32>, vector<8x256xf32> -> vector<8x256xf32>
    %67 = arith.addf %62, %66 : vector<8x256xf32>
    %c1_46 = arith.constant 1 : index
    %c0_47 = arith.constant 0 : index
    %c0_48 = arith.constant 0 : index
    %68 = vector.load %arg3[%c1_46, %c0_47, %c0_48] : memref<4x8x4xf32, #tpu.memory_space<vmem>>, vector<1x8x4xf32>
    %69 = vector.shape_cast %68 : vector<1x8x4xf32> to vector<8x4xf32>
    %70 = vector.extract_strided_slice %61 {offsets = [0, 256], sizes = [4, 256], strides = [1, 1]} : vector<4x1024xf32> to vector<4x256xf32>
    %cst_49 = arith.constant dense<0.000000e+00> : vector<8x256xf32>
    %71 = tpu.matmul %69, %70, %cst_49 {dimension_numbers = #tpu.dot_dimension_numbers<[1], [0], [0], [1], [0, 0, 1, 1], [], []>} : vector<8x4xf32>, vector<4x256xf32>, vector<8x256xf32> -> vector<8x256xf32>
    %72 = arith.addf %67, %71 : vector<8x256xf32>
    %c2_50 = arith.constant 2 : index
    %c0_51 = arith.constant 0 : index
    %c0_52 = arith.constant 0 : index
    %73 = vector.load %arg3[%c2_50, %c0_51, %c0_52] : memref<4x8x4xf32, #tpu.memory_space<vmem>>, vector<1x8x4xf32>
    %74 = vector.shape_cast %73 : vector<1x8x4xf32> to vector<8x4xf32>
    %75 = vector.extract_strided_slice %61 {offsets = [0, 512], sizes = [4, 256], strides = [1, 1]} : vector<4x1024xf32> to vector<4x256xf32>
    %cst_53 = arith.constant dense<0.000000e+00> : vector<8x256xf32>
    %76 = tpu.matmul %74, %75, %cst_53 {dimension_numbers = #tpu.dot_dimension_numbers<[1], [0], [0], [1], [0, 0, 1, 1], [], []>} : vector<8x4xf32>, vector<4x256xf32>, vector<8x256xf32> -> vector<8x256xf32>
    %77 = arith.addf %72, %76 : vector<8x256xf32>
    %c3_54 = arith.constant 3 : index
    %c0_55 = arith.constant 0 : index
    %c0_56 = arith.constant 0 : index
    %78 = vector.load %arg3[%c3_54, %c0_55, %c0_56] : memref<4x8x4xf32, #tpu.memory_space<vmem>>, vector<1x8x4xf32>
    %79 = vector.shape_cast %78 : vector<1x8x4xf32> to vector<8x4xf32>
    %80 = vector.extract_strided_slice %61 {offsets = [0, 768], sizes = [4, 256], strides = [1, 1]} : vector<4x1024xf32> to vector<4x256xf32>
    %cst_57 = arith.constant dense<0.000000e+00> : vector<8x256xf32>
    %81 = tpu.matmul %79, %80, %cst_57 {dimension_numbers = #tpu.dot_dimension_numbers<[1], [0], [0], [1], [0, 0, 1, 1], [], []>} : vector<8x4xf32>, vector<4x256xf32>, vector<8x256xf32> -> vector<8x256xf32>
    %82 = arith.addf %77, %81 : vector<8x256xf32>
    %cst_58 = arith.constant dense<0.000000e+00> : vector<256xf32>
    %83 = vector.multi_reduction <add>, %82, %cst_58 [0] : vector<8x256xf32> to vector<256xf32>
    %84 = vector.shape_cast %83 : vector<256xf32> to vector<1x256xf32>
    %85 = arith.addf %39, %84 : vector<1x256xf32>
    %86 = arith.mulf %82, %82 : vector<8x256xf32>
    %cst_59 = arith.constant dense<0.000000e+00> : vector<256xf32>
    %87 = vector.multi_reduction <add>, %86, %cst_59 [0] : vector<8x256xf32> to vector<256xf32>
    %88 = vector.shape_cast %87 : vector<256xf32> to vector<1x256xf32>
    %89 = arith.addf %43, %88 : vector<1x256xf32>
    %90 = arith.truncf %82 : vector<8x256xf32> to vector<8x256xbf16>
    %c1_60 = arith.constant 1 : index
    %c0_61 = arith.constant 0 : index
    %c0_62 = arith.constant 0 : index
    %91 = vector.load %arg6[%c1_60, %c0_61, %c0_62] : memref<2x8x256xbf16, #tpu.memory_space<vmem>>, vector<1x8x256xbf16>
    %92 = vector.shape_cast %91 : vector<1x8x256xbf16> to vector<8x256xbf16>
    %93 = vector.shape_cast %90 : vector<8x256xbf16> to vector<1x8x256xbf16>
    tpu.vector_store %arg6[%c1_60, %c0_61, %c0_62], %93 {strides = array<i32>} : memref<2x8x256xbf16, #tpu.memory_space<vmem>>, vector<1x8x256xbf16>,
    %c0_63 = arith.constant 0 : index
    %c0_64 = arith.constant 0 : index
    %c0_65 = arith.constant 0 : index
    %94 = vector.load %arg7[%c0_63, %c0_64, %c0_65] : memref<1x1x256xf32, #tpu.memory_space<vmem>>, vector<1x1x256xf32>
    %95 = vector.shape_cast %94 : vector<1x1x256xf32> to vector<1x256xf32>
    %96 = vector.shape_cast %85 : vector<1x256xf32> to vector<1x1x256xf32>
    tpu.vector_store %arg7[%c0_63, %c0_64, %c0_65], %96 {strides = array<i32>} : memref<1x1x256xf32, #tpu.memory_space<vmem>>, vector<1x1x256xf32>,
    %c0_66 = arith.constant 0 : index
    %c0_67 = arith.constant 0 : index
    %c0_68 = arith.constant 0 : index
    %97 = vector.load %arg8[%c0_66, %c0_67, %c0_68] : memref<1x1x256xf32, #tpu.memory_space<vmem>>, vector<1x1x256xf32>
    %98 = vector.shape_cast %97 : vector<1x1x256xf32> to vector<1x256xf32>
    %99 = vector.shape_cast %89 : vector<1x256xf32> to vector<1x1x256xf32>
    tpu.vector_store %arg8[%c0_66, %c0_67, %c0_68], %99 {strides = array<i32>} : memref<1x1x256xf32, #tpu.memory_space<vmem>>, vector<1x1x256xf32>,
    return
  }
  func.func @transform_0(%arg0: i32) -> (i32, i32, i32) {
    %c0_i32 = arith.constant 0 : i32
    %c0_i32_0 = arith.constant 0 : i32
    %c0_i32_1 = arith.constant 0 : i32
    return %arg0, %c0_i32, %c0_i32_0 : i32, i32, i32
  }
  func.func @transform_1(%arg0: i32) -> (i32, i32) {
    %c0_i32 = arith.constant 0 : i32
    %c0_i32_0 = arith.constant 0 : i32
    %c0_i32_1 = arith.constant 0 : i32
    return %c0_i32, %c0_i32_0 : i32, i32
  }
  func.func @transform_2(%arg0: i32) -> (i32, i32, i32) {
    %c0_i32 = arith.constant 0 : i32
    %c0_i32_0 = arith.constant 0 : i32
    %c0_i32_1 = arith.constant 0 : i32
    %c0_i32_2 = arith.constant 0 : i32
    return %c0_i32, %c0_i32_0, %c0_i32_1 : i32, i32, i32
  }
  func.func @transform_3(%arg0: i32) -> (i32, i32) {
    %c0_i32 = arith.constant 0 : i32
    %c0_i32_0 = arith.constant 0 : i32
    %c0_i32_1 = arith.constant 0 : i32
    return %c0_i32, %c0_i32_0 : i32, i32
  }
  func.func @transform_4(%arg0: i32) -> (i32, i32) {
    %c0_i32 = arith.constant 0 : i32
    %c0_i32_0 = arith.constant 0 : i32
    %c0_i32_1 = arith.constant 0 : i32
    return %c0_i32, %c0_i32_0 : i32, i32
  }
  func.func @transform_5(%arg0: i32) -> (i32, i32, i32) {
    %c0_i32 = arith.constant 0 : i32
    %c0_i32_0 = arith.constant 0 : i32
    %c0_i32_1 = arith.constant 0 : i32
    return %arg0, %c0_i32, %c0_i32_0 : i32, i32, i32
  }
  func.func @transform_6(%arg0: i32) -> (i32, i32, i32) {
    %c0_i32 = arith.constant 0 : i32
    %c0_i32_0 = arith.constant 0 : i32
    %c0_i32_1 = arith.constant 0 : i32
    return %arg0, %c0_i32, %c0_i32_0 : i32, i32, i32
  }
  func.func @transform_7(%arg0: i32) -> (i32, i32, i32) {
    %c0_i32 = arith.constant 0 : i32
    %c0_i32_0 = arith.constant 0 : i32
    %c0_i32_1 = arith.constant 0 : i32
    return %arg0, %c0_i32, %c0_i32_0 : i32, i32, i32
  }
}

module attributes {stable_mosaic.version = 11 : i64} {
  func.func @_deconv_kernel(%arg0: i32, %arg1: memref<2x8x256xbf16, #tpu.memory_space<vmem>>, %arg2: memref<256x1024xbf16, #tpu.memory_space<vmem>>, %arg3: memref<4x16x8xf32, #tpu.memory_space<vmem>>, %arg4: memref<1x256xf32, #tpu.memory_space<vmem>>, %arg5: memref<1x256xf32, #tpu.memory_space<vmem>>, %arg6: memref<2x16x256xbf16, #tpu.memory_space<vmem>>, %arg7: memref<1x1x256xf32, #tpu.memory_space<vmem>>, %arg8: memref<1x1x256xf32, #tpu.memory_space<vmem>>) attributes {dimension_semantics = [#tpu.dimension_semantics<parallel>], iteration_bounds = array<i64: 1>, scalar_prefetch = 0 : i64, scratch_operands = 0 : i64, tpu.core_type = #tpu.core_type<tc>, window_params = [{transform_indices = @transform_0, window_bounds = array<i64: 2, 8, 256>}, {pipeline_mode = #tpu.pipeline_mode<synchronous>, transform_indices = @transform_1, window_bounds = array<i64: 256, 1024>}, {pipeline_mode = #tpu.pipeline_mode<synchronous>, transform_indices = @transform_2, window_bounds = array<i64: 4, 16, 8>}, {pipeline_mode = #tpu.pipeline_mode<synchronous>, transform_indices = @transform_3, window_bounds = array<i64: 1, 256>}, {pipeline_mode = #tpu.pipeline_mode<synchronous>, transform_indices = @transform_4, window_bounds = array<i64: 1, 256>}, {transform_indices = @transform_5, window_bounds = array<i64: 2, 16, 256>}, {transform_indices = @transform_6, window_bounds = array<i64: 1, 1, 256>}, {transform_indices = @transform_7, window_bounds = array<i64: 1, 1, 256>}]} {
    %cst = arith.constant 0.000000e+00 : f32
    %0 = vector.broadcast %cst : f32 to vector<1x256xf32>
    %cst_0 = arith.constant 0.000000e+00 : f32
    %1 = vector.broadcast %cst_0 : f32 to vector<1x256xf32>
    %c0 = arith.constant 0 : index
    %c0_1 = arith.constant 0 : index
    %c0_2 = arith.constant 0 : index
    %2 = vector.load %arg1[%c0, %c0_1, %c0_2] : memref<2x8x256xbf16, #tpu.memory_space<vmem>>, vector<1x8x256xbf16>
    %3 = vector.shape_cast %2 : vector<1x8x256xbf16> to vector<8x256xbf16>
    %4 = arith.extf %3 : vector<8x256xbf16> to vector<8x256xf32>
    %c0_3 = arith.constant 0 : index
    %c0_4 = arith.constant 0 : index
    %5 = vector.load %arg4[%c0_3, %c0_4] : memref<1x256xf32, #tpu.memory_space<vmem>>, vector<1x256xf32>
    %6 = vector.broadcast %5 : vector<1x256xf32> to vector<8x256xf32>
    %7 = arith.mulf %4, %6 : vector<8x256xf32>
    %c0_5 = arith.constant 0 : index
    %c0_6 = arith.constant 0 : index
    %8 = vector.load %arg5[%c0_5, %c0_6] : memref<1x256xf32, #tpu.memory_space<vmem>>, vector<1x256xf32>
    %9 = vector.broadcast %8 : vector<1x256xf32> to vector<8x256xf32>
    %10 = arith.addf %7, %9 : vector<8x256xf32>
    %cst_7 = arith.constant 0.000000e+00 : f32
    %11 = vector.broadcast %cst_7 : f32 to vector<8x256xf32>
    %12 = arith.maximumf %10, %11 : vector<8x256xf32>
    %13 = arith.truncf %12 : vector<8x256xf32> to vector<8x256xbf16>
    %c0_8 = arith.constant 0 : index
    %c0_9 = arith.constant 0 : index
    %14 = vector.load %arg2[%c0_8, %c0_9] : memref<256x1024xbf16, #tpu.memory_space<vmem>>, vector<256x1024xbf16>
    %cst_10 = arith.constant dense<0.000000e+00> : vector<8x1024xf32>
    %15 = tpu.matmul %13, %14, %cst_10 {dimension_numbers = #tpu.dot_dimension_numbers<[1], [0], [0], [1], [0, 0, 1, 1], [], []>} : vector<8x256xbf16>, vector<256x1024xbf16>, vector<8x1024xf32> -> vector<8x1024xf32>
    %cst_11 = arith.constant 0.000000e+00 : f32
    %16 = vector.broadcast %cst_11 : f32 to vector<16x256xf32>
    %c0_12 = arith.constant 0 : index
    %c0_13 = arith.constant 0 : index
    %c0_14 = arith.constant 0 : index
    %17 = vector.load %arg3[%c0_12, %c0_13, %c0_14] : memref<4x16x8xf32, #tpu.memory_space<vmem>>, vector<1x16x8xf32>
    %18 = vector.shape_cast %17 : vector<1x16x8xf32> to vector<16x8xf32>
    %19 = vector.extract_strided_slice %15 {offsets = [0, 0], sizes = [8, 256], strides = [1, 1]} : vector<8x1024xf32> to vector<8x256xf32>
    %cst_15 = arith.constant dense<0.000000e+00> : vector<16x256xf32>
    %20 = tpu.matmul %18, %19, %cst_15 {dimension_numbers = #tpu.dot_dimension_numbers<[1], [0], [0], [1], [0, 0, 1, 1], [], []>} : vector<16x8xf32>, vector<8x256xf32>, vector<16x256xf32> -> vector<16x256xf32>
    %21 = arith.addf %16, %20 : vector<16x256xf32>
    %c1 = arith.constant 1 : index
    %c0_16 = arith.constant 0 : index
    %c0_17 = arith.constant 0 : index
    %22 = vector.load %arg3[%c1, %c0_16, %c0_17] : memref<4x16x8xf32, #tpu.memory_space<vmem>>, vector<1x16x8xf32>
    %23 = vector.shape_cast %22 : vector<1x16x8xf32> to vector<16x8xf32>
    %24 = vector.extract_strided_slice %15 {offsets = [0, 256], sizes = [8, 256], strides = [1, 1]} : vector<8x1024xf32> to vector<8x256xf32>
    %cst_18 = arith.constant dense<0.000000e+00> : vector<16x256xf32>
    %25 = tpu.matmul %23, %24, %cst_18 {dimension_numbers = #tpu.dot_dimension_numbers<[1], [0], [0], [1], [0, 0, 1, 1], [], []>} : vector<16x8xf32>, vector<8x256xf32>, vector<16x256xf32> -> vector<16x256xf32>
    %26 = arith.addf %21, %25 : vector<16x256xf32>
    %c2 = arith.constant 2 : index
    %c0_19 = arith.constant 0 : index
    %c0_20 = arith.constant 0 : index
    %27 = vector.load %arg3[%c2, %c0_19, %c0_20] : memref<4x16x8xf32, #tpu.memory_space<vmem>>, vector<1x16x8xf32>
    %28 = vector.shape_cast %27 : vector<1x16x8xf32> to vector<16x8xf32>
    %29 = vector.extract_strided_slice %15 {offsets = [0, 512], sizes = [8, 256], strides = [1, 1]} : vector<8x1024xf32> to vector<8x256xf32>
    %cst_21 = arith.constant dense<0.000000e+00> : vector<16x256xf32>
    %30 = tpu.matmul %28, %29, %cst_21 {dimension_numbers = #tpu.dot_dimension_numbers<[1], [0], [0], [1], [0, 0, 1, 1], [], []>} : vector<16x8xf32>, vector<8x256xf32>, vector<16x256xf32> -> vector<16x256xf32>
    %31 = arith.addf %26, %30 : vector<16x256xf32>
    %c3 = arith.constant 3 : index
    %c0_22 = arith.constant 0 : index
    %c0_23 = arith.constant 0 : index
    %32 = vector.load %arg3[%c3, %c0_22, %c0_23] : memref<4x16x8xf32, #tpu.memory_space<vmem>>, vector<1x16x8xf32>
    %33 = vector.shape_cast %32 : vector<1x16x8xf32> to vector<16x8xf32>
    %34 = vector.extract_strided_slice %15 {offsets = [0, 768], sizes = [8, 256], strides = [1, 1]} : vector<8x1024xf32> to vector<8x256xf32>
    %cst_24 = arith.constant dense<0.000000e+00> : vector<16x256xf32>
    %35 = tpu.matmul %33, %34, %cst_24 {dimension_numbers = #tpu.dot_dimension_numbers<[1], [0], [0], [1], [0, 0, 1, 1], [], []>} : vector<16x8xf32>, vector<8x256xf32>, vector<16x256xf32> -> vector<16x256xf32>
    %36 = arith.addf %31, %35 : vector<16x256xf32>
    %cst_25 = arith.constant dense<0.000000e+00> : vector<256xf32>
    %37 = vector.multi_reduction <add>, %36, %cst_25 [0] : vector<16x256xf32> to vector<256xf32>
    %38 = vector.shape_cast %37 : vector<256xf32> to vector<1x256xf32>
    %39 = arith.addf %0, %38 : vector<1x256xf32>
    %40 = arith.mulf %36, %36 : vector<16x256xf32>
    %cst_26 = arith.constant dense<0.000000e+00> : vector<256xf32>
    %41 = vector.multi_reduction <add>, %40, %cst_26 [0] : vector<16x256xf32> to vector<256xf32>
    %42 = vector.shape_cast %41 : vector<256xf32> to vector<1x256xf32>
    %43 = arith.addf %1, %42 : vector<1x256xf32>
    %44 = arith.truncf %36 : vector<16x256xf32> to vector<16x256xbf16>
    %c0_27 = arith.constant 0 : index
    %c0_28 = arith.constant 0 : index
    %c0_29 = arith.constant 0 : index
    %45 = vector.load %arg6[%c0_27, %c0_28, %c0_29] : memref<2x16x256xbf16, #tpu.memory_space<vmem>>, vector<1x16x256xbf16>
    %46 = vector.shape_cast %45 : vector<1x16x256xbf16> to vector<16x256xbf16>
    %47 = vector.shape_cast %44 : vector<16x256xbf16> to vector<1x16x256xbf16>
    tpu.vector_store %arg6[%c0_27, %c0_28, %c0_29], %47 {strides = array<i32>} : memref<2x16x256xbf16, #tpu.memory_space<vmem>>, vector<1x16x256xbf16>,
    %c1_30 = arith.constant 1 : index
    %c0_31 = arith.constant 0 : index
    %c0_32 = arith.constant 0 : index
    %48 = vector.load %arg1[%c1_30, %c0_31, %c0_32] : memref<2x8x256xbf16, #tpu.memory_space<vmem>>, vector<1x8x256xbf16>
    %49 = vector.shape_cast %48 : vector<1x8x256xbf16> to vector<8x256xbf16>
    %50 = arith.extf %49 : vector<8x256xbf16> to vector<8x256xf32>
    %c0_33 = arith.constant 0 : index
    %c0_34 = arith.constant 0 : index
    %51 = vector.load %arg4[%c0_33, %c0_34] : memref<1x256xf32, #tpu.memory_space<vmem>>, vector<1x256xf32>
    %52 = vector.broadcast %51 : vector<1x256xf32> to vector<8x256xf32>
    %53 = arith.mulf %50, %52 : vector<8x256xf32>
    %c0_35 = arith.constant 0 : index
    %c0_36 = arith.constant 0 : index
    %54 = vector.load %arg5[%c0_35, %c0_36] : memref<1x256xf32, #tpu.memory_space<vmem>>, vector<1x256xf32>
    %55 = vector.broadcast %54 : vector<1x256xf32> to vector<8x256xf32>
    %56 = arith.addf %53, %55 : vector<8x256xf32>
    %cst_37 = arith.constant 0.000000e+00 : f32
    %57 = vector.broadcast %cst_37 : f32 to vector<8x256xf32>
    %58 = arith.maximumf %56, %57 : vector<8x256xf32>
    %59 = arith.truncf %58 : vector<8x256xf32> to vector<8x256xbf16>
    %c0_38 = arith.constant 0 : index
    %c0_39 = arith.constant 0 : index
    %60 = vector.load %arg2[%c0_38, %c0_39] : memref<256x1024xbf16, #tpu.memory_space<vmem>>, vector<256x1024xbf16>
    %cst_40 = arith.constant dense<0.000000e+00> : vector<8x1024xf32>
    %61 = tpu.matmul %59, %60, %cst_40 {dimension_numbers = #tpu.dot_dimension_numbers<[1], [0], [0], [1], [0, 0, 1, 1], [], []>} : vector<8x256xbf16>, vector<256x1024xbf16>, vector<8x1024xf32> -> vector<8x1024xf32>
    %cst_41 = arith.constant 0.000000e+00 : f32
    %62 = vector.broadcast %cst_41 : f32 to vector<16x256xf32>
    %c0_42 = arith.constant 0 : index
    %c0_43 = arith.constant 0 : index
    %c0_44 = arith.constant 0 : index
    %63 = vector.load %arg3[%c0_42, %c0_43, %c0_44] : memref<4x16x8xf32, #tpu.memory_space<vmem>>, vector<1x16x8xf32>
    %64 = vector.shape_cast %63 : vector<1x16x8xf32> to vector<16x8xf32>
    %65 = vector.extract_strided_slice %61 {offsets = [0, 0], sizes = [8, 256], strides = [1, 1]} : vector<8x1024xf32> to vector<8x256xf32>
    %cst_45 = arith.constant dense<0.000000e+00> : vector<16x256xf32>
    %66 = tpu.matmul %64, %65, %cst_45 {dimension_numbers = #tpu.dot_dimension_numbers<[1], [0], [0], [1], [0, 0, 1, 1], [], []>} : vector<16x8xf32>, vector<8x256xf32>, vector<16x256xf32> -> vector<16x256xf32>
    %67 = arith.addf %62, %66 : vector<16x256xf32>
    %c1_46 = arith.constant 1 : index
    %c0_47 = arith.constant 0 : index
    %c0_48 = arith.constant 0 : index
    %68 = vector.load %arg3[%c1_46, %c0_47, %c0_48] : memref<4x16x8xf32, #tpu.memory_space<vmem>>, vector<1x16x8xf32>
    %69 = vector.shape_cast %68 : vector<1x16x8xf32> to vector<16x8xf32>
    %70 = vector.extract_strided_slice %61 {offsets = [0, 256], sizes = [8, 256], strides = [1, 1]} : vector<8x1024xf32> to vector<8x256xf32>
    %cst_49 = arith.constant dense<0.000000e+00> : vector<16x256xf32>
    %71 = tpu.matmul %69, %70, %cst_49 {dimension_numbers = #tpu.dot_dimension_numbers<[1], [0], [0], [1], [0, 0, 1, 1], [], []>} : vector<16x8xf32>, vector<8x256xf32>, vector<16x256xf32> -> vector<16x256xf32>
    %72 = arith.addf %67, %71 : vector<16x256xf32>
    %c2_50 = arith.constant 2 : index
    %c0_51 = arith.constant 0 : index
    %c0_52 = arith.constant 0 : index
    %73 = vector.load %arg3[%c2_50, %c0_51, %c0_52] : memref<4x16x8xf32, #tpu.memory_space<vmem>>, vector<1x16x8xf32>
    %74 = vector.shape_cast %73 : vector<1x16x8xf32> to vector<16x8xf32>
    %75 = vector.extract_strided_slice %61 {offsets = [0, 512], sizes = [8, 256], strides = [1, 1]} : vector<8x1024xf32> to vector<8x256xf32>
    %cst_53 = arith.constant dense<0.000000e+00> : vector<16x256xf32>
    %76 = tpu.matmul %74, %75, %cst_53 {dimension_numbers = #tpu.dot_dimension_numbers<[1], [0], [0], [1], [0, 0, 1, 1], [], []>} : vector<16x8xf32>, vector<8x256xf32>, vector<16x256xf32> -> vector<16x256xf32>
    %77 = arith.addf %72, %76 : vector<16x256xf32>
    %c3_54 = arith.constant 3 : index
    %c0_55 = arith.constant 0 : index
    %c0_56 = arith.constant 0 : index
    %78 = vector.load %arg3[%c3_54, %c0_55, %c0_56] : memref<4x16x8xf32, #tpu.memory_space<vmem>>, vector<1x16x8xf32>
    %79 = vector.shape_cast %78 : vector<1x16x8xf32> to vector<16x8xf32>
    %80 = vector.extract_strided_slice %61 {offsets = [0, 768], sizes = [8, 256], strides = [1, 1]} : vector<8x1024xf32> to vector<8x256xf32>
    %cst_57 = arith.constant dense<0.000000e+00> : vector<16x256xf32>
    %81 = tpu.matmul %79, %80, %cst_57 {dimension_numbers = #tpu.dot_dimension_numbers<[1], [0], [0], [1], [0, 0, 1, 1], [], []>} : vector<16x8xf32>, vector<8x256xf32>, vector<16x256xf32> -> vector<16x256xf32>
    %82 = arith.addf %77, %81 : vector<16x256xf32>
    %cst_58 = arith.constant dense<0.000000e+00> : vector<256xf32>
    %83 = vector.multi_reduction <add>, %82, %cst_58 [0] : vector<16x256xf32> to vector<256xf32>
    %84 = vector.shape_cast %83 : vector<256xf32> to vector<1x256xf32>
    %85 = arith.addf %39, %84 : vector<1x256xf32>
    %86 = arith.mulf %82, %82 : vector<16x256xf32>
    %cst_59 = arith.constant dense<0.000000e+00> : vector<256xf32>
    %87 = vector.multi_reduction <add>, %86, %cst_59 [0] : vector<16x256xf32> to vector<256xf32>
    %88 = vector.shape_cast %87 : vector<256xf32> to vector<1x256xf32>
    %89 = arith.addf %43, %88 : vector<1x256xf32>
    %90 = arith.truncf %82 : vector<16x256xf32> to vector<16x256xbf16>
    %c1_60 = arith.constant 1 : index
    %c0_61 = arith.constant 0 : index
    %c0_62 = arith.constant 0 : index
    %91 = vector.load %arg6[%c1_60, %c0_61, %c0_62] : memref<2x16x256xbf16, #tpu.memory_space<vmem>>, vector<1x16x256xbf16>
    %92 = vector.shape_cast %91 : vector<1x16x256xbf16> to vector<16x256xbf16>
    %93 = vector.shape_cast %90 : vector<16x256xbf16> to vector<1x16x256xbf16>
    tpu.vector_store %arg6[%c1_60, %c0_61, %c0_62], %93 {strides = array<i32>} : memref<2x16x256xbf16, #tpu.memory_space<vmem>>, vector<1x16x256xbf16>,
    %c0_63 = arith.constant 0 : index
    %c0_64 = arith.constant 0 : index
    %c0_65 = arith.constant 0 : index
    %94 = vector.load %arg7[%c0_63, %c0_64, %c0_65] : memref<1x1x256xf32, #tpu.memory_space<vmem>>, vector<1x1x256xf32>
    %95 = vector.shape_cast %94 : vector<1x1x256xf32> to vector<1x256xf32>
    %96 = vector.shape_cast %85 : vector<1x256xf32> to vector<1x1x256xf32>
    tpu.vector_store %arg7[%c0_63, %c0_64, %c0_65], %96 {strides = array<i32>} : memref<1x1x256xf32, #tpu.memory_space<vmem>>, vector<1x1x256xf32>,
    %c0_66 = arith.constant 0 : index
    %c0_67 = arith.constant 0 : index
    %c0_68 = arith.constant 0 : index
    %97 = vector.load %arg8[%c0_66, %c0_67, %c0_68] : memref<1x1x256xf32, #tpu.memory_space<vmem>>, vector<1x1x256xf32>
    %98 = vector.shape_cast %97 : vector<1x1x256xf32> to vector<1x256xf32>
    %99 = vector.shape_cast %89 : vector<1x256xf32> to vector<1x1x256xf32>
    tpu.vector_store %arg8[%c0_66, %c0_67, %c0_68], %99 {strides = array<i32>} : memref<1x1x256xf32, #tpu.memory_space<vmem>>, vector<1x1x256xf32>,
    return
  }
  func.func @transform_0(%arg0: i32) -> (i32, i32, i32) {
    %c0_i32 = arith.constant 0 : i32
    %c0_i32_0 = arith.constant 0 : i32
    %c0_i32_1 = arith.constant 0 : i32
    return %arg0, %c0_i32, %c0_i32_0 : i32, i32, i32
  }
  func.func @transform_1(%arg0: i32) -> (i32, i32) {
    %c0_i32 = arith.constant 0 : i32
    %c0_i32_0 = arith.constant 0 : i32
    %c0_i32_1 = arith.constant 0 : i32
    return %c0_i32, %c0_i32_0 : i32, i32
  }
  func.func @transform_2(%arg0: i32) -> (i32, i32, i32) {
    %c0_i32 = arith.constant 0 : i32
    %c0_i32_0 = arith.constant 0 : i32
    %c0_i32_1 = arith.constant 0 : i32
    %c0_i32_2 = arith.constant 0 : i32
    return %c0_i32, %c0_i32_0, %c0_i32_1 : i32, i32, i32
  }
  func.func @transform_3(%arg0: i32) -> (i32, i32) {
    %c0_i32 = arith.constant 0 : i32
    %c0_i32_0 = arith.constant 0 : i32
    %c0_i32_1 = arith.constant 0 : i32
    return %c0_i32, %c0_i32_0 : i32, i32
  }
  func.func @transform_4(%arg0: i32) -> (i32, i32) {
    %c0_i32 = arith.constant 0 : i32
    %c0_i32_0 = arith.constant 0 : i32
    %c0_i32_1 = arith.constant 0 : i32
    return %c0_i32, %c0_i32_0 : i32, i32
  }
  func.func @transform_5(%arg0: i32) -> (i32, i32, i32) {
    %c0_i32 = arith.constant 0 : i32
    %c0_i32_0 = arith.constant 0 : i32
    %c0_i32_1 = arith.constant 0 : i32
    return %arg0, %c0_i32, %c0_i32_0 : i32, i32, i32
  }
  func.func @transform_6(%arg0: i32) -> (i32, i32, i32) {
    %c0_i32 = arith.constant 0 : i32
    %c0_i32_0 = arith.constant 0 : i32
    %c0_i32_1 = arith.constant 0 : i32
    return %arg0, %c0_i32, %c0_i32_0 : i32, i32, i32
  }
  func.func @transform_7(%arg0: i32) -> (i32, i32, i32) {
    %c0_i32 = arith.constant 0 : i32
    %c0_i32_0 = arith.constant 0 : i32
    %c0_i32_1 = arith.constant 0 : i32
    return %arg0, %c0_i32, %c0_i32_0 : i32, i32, i32
  }
}

module attributes {stable_mosaic.version = 11 : i64} {
  func.func @_deconv_kernel(%arg0: i32, %arg1: memref<2x16x256xbf16, #tpu.memory_space<vmem>>, %arg2: memref<256x112xbf16, #tpu.memory_space<vmem>>, %arg3: memref<4x28x16xf32, #tpu.memory_space<vmem>>, %arg4: memref<1x256xf32, #tpu.memory_space<vmem>>, %arg5: memref<1x256xf32, #tpu.memory_space<vmem>>, %arg6: memref<2x28x28xf32, #tpu.memory_space<vmem>>) attributes {dimension_semantics = [#tpu.dimension_semantics<parallel>], iteration_bounds = array<i64: 1>, scalar_prefetch = 0 : i64, scratch_operands = 0 : i64, tpu.core_type = #tpu.core_type<tc>, window_params = [{transform_indices = @transform_0, window_bounds = array<i64: 2, 16, 256>}, {pipeline_mode = #tpu.pipeline_mode<synchronous>, transform_indices = @transform_1, window_bounds = array<i64: 256, 112>}, {pipeline_mode = #tpu.pipeline_mode<synchronous>, transform_indices = @transform_2, window_bounds = array<i64: 4, 28, 16>}, {pipeline_mode = #tpu.pipeline_mode<synchronous>, transform_indices = @transform_3, window_bounds = array<i64: 1, 256>}, {pipeline_mode = #tpu.pipeline_mode<synchronous>, transform_indices = @transform_4, window_bounds = array<i64: 1, 256>}, {transform_indices = @transform_5, window_bounds = array<i64: 2, 28, 28>}]} {
    %c0 = arith.constant 0 : index
    %c0_0 = arith.constant 0 : index
    %c0_1 = arith.constant 0 : index
    %0 = vector.load %arg1[%c0, %c0_0, %c0_1] : memref<2x16x256xbf16, #tpu.memory_space<vmem>>, vector<1x16x256xbf16>
    %1 = vector.shape_cast %0 : vector<1x16x256xbf16> to vector<16x256xbf16>
    %2 = arith.extf %1 : vector<16x256xbf16> to vector<16x256xf32>
    %c0_2 = arith.constant 0 : index
    %c0_3 = arith.constant 0 : index
    %3 = vector.load %arg4[%c0_2, %c0_3] : memref<1x256xf32, #tpu.memory_space<vmem>>, vector<1x256xf32>
    %4 = vector.broadcast %3 : vector<1x256xf32> to vector<16x256xf32>
    %5 = arith.mulf %2, %4 : vector<16x256xf32>
    %c0_4 = arith.constant 0 : index
    %c0_5 = arith.constant 0 : index
    %6 = vector.load %arg5[%c0_4, %c0_5] : memref<1x256xf32, #tpu.memory_space<vmem>>, vector<1x256xf32>
    %7 = vector.broadcast %6 : vector<1x256xf32> to vector<16x256xf32>
    %8 = arith.addf %5, %7 : vector<16x256xf32>
    %cst = arith.constant 0.000000e+00 : f32
    %9 = vector.broadcast %cst : f32 to vector<16x256xf32>
    %10 = arith.maximumf %8, %9 : vector<16x256xf32>
    %11 = arith.truncf %10 : vector<16x256xf32> to vector<16x256xbf16>
    %c0_6 = arith.constant 0 : index
    %c0_7 = arith.constant 0 : index
    %12 = vector.load %arg2[%c0_6, %c0_7] : memref<256x112xbf16, #tpu.memory_space<vmem>>, vector<256x112xbf16>
    %cst_8 = arith.constant dense<0.000000e+00> : vector<16x112xf32>
    %13 = tpu.matmul %11, %12, %cst_8 {dimension_numbers = #tpu.dot_dimension_numbers<[1], [0], [0], [1], [0, 0, 1, 1], [], []>} : vector<16x256xbf16>, vector<256x112xbf16>, vector<16x112xf32> -> vector<16x112xf32>
    %cst_9 = arith.constant 0.000000e+00 : f32
    %14 = vector.broadcast %cst_9 : f32 to vector<28x28xf32>
    %c0_10 = arith.constant 0 : index
    %c0_11 = arith.constant 0 : index
    %c0_12 = arith.constant 0 : index
    %15 = vector.load %arg3[%c0_10, %c0_11, %c0_12] : memref<4x28x16xf32, #tpu.memory_space<vmem>>, vector<1x28x16xf32>
    %16 = vector.shape_cast %15 : vector<1x28x16xf32> to vector<28x16xf32>
    %17 = vector.extract_strided_slice %13 {offsets = [0, 0], sizes = [16, 28], strides = [1, 1]} : vector<16x112xf32> to vector<16x28xf32>
    %cst_13 = arith.constant dense<0.000000e+00> : vector<28x28xf32>
    %18 = tpu.matmul %16, %17, %cst_13 {dimension_numbers = #tpu.dot_dimension_numbers<[1], [0], [0], [1], [0, 0, 1, 1], [], []>} : vector<28x16xf32>, vector<16x28xf32>, vector<28x28xf32> -> vector<28x28xf32>
    %19 = arith.addf %14, %18 : vector<28x28xf32>
    %c1 = arith.constant 1 : index
    %c0_14 = arith.constant 0 : index
    %c0_15 = arith.constant 0 : index
    %20 = vector.load %arg3[%c1, %c0_14, %c0_15] : memref<4x28x16xf32, #tpu.memory_space<vmem>>, vector<1x28x16xf32>
    %21 = vector.shape_cast %20 : vector<1x28x16xf32> to vector<28x16xf32>
    %22 = vector.extract_strided_slice %13 {offsets = [0, 28], sizes = [16, 28], strides = [1, 1]} : vector<16x112xf32> to vector<16x28xf32>
    %cst_16 = arith.constant dense<0.000000e+00> : vector<28x28xf32>
    %23 = tpu.matmul %21, %22, %cst_16 {dimension_numbers = #tpu.dot_dimension_numbers<[1], [0], [0], [1], [0, 0, 1, 1], [], []>} : vector<28x16xf32>, vector<16x28xf32>, vector<28x28xf32> -> vector<28x28xf32>
    %24 = arith.addf %19, %23 : vector<28x28xf32>
    %c2 = arith.constant 2 : index
    %c0_17 = arith.constant 0 : index
    %c0_18 = arith.constant 0 : index
    %25 = vector.load %arg3[%c2, %c0_17, %c0_18] : memref<4x28x16xf32, #tpu.memory_space<vmem>>, vector<1x28x16xf32>
    %26 = vector.shape_cast %25 : vector<1x28x16xf32> to vector<28x16xf32>
    %27 = vector.extract_strided_slice %13 {offsets = [0, 56], sizes = [16, 28], strides = [1, 1]} : vector<16x112xf32> to vector<16x28xf32>
    %cst_19 = arith.constant dense<0.000000e+00> : vector<28x28xf32>
    %28 = tpu.matmul %26, %27, %cst_19 {dimension_numbers = #tpu.dot_dimension_numbers<[1], [0], [0], [1], [0, 0, 1, 1], [], []>} : vector<28x16xf32>, vector<16x28xf32>, vector<28x28xf32> -> vector<28x28xf32>
    %29 = arith.addf %24, %28 : vector<28x28xf32>
    %c3 = arith.constant 3 : index
    %c0_20 = arith.constant 0 : index
    %c0_21 = arith.constant 0 : index
    %30 = vector.load %arg3[%c3, %c0_20, %c0_21] : memref<4x28x16xf32, #tpu.memory_space<vmem>>, vector<1x28x16xf32>
    %31 = vector.shape_cast %30 : vector<1x28x16xf32> to vector<28x16xf32>
    %32 = vector.extract_strided_slice %13 {offsets = [0, 84], sizes = [16, 28], strides = [1, 1]} : vector<16x112xf32> to vector<16x28xf32>
    %cst_22 = arith.constant dense<0.000000e+00> : vector<28x28xf32>
    %33 = tpu.matmul %31, %32, %cst_22 {dimension_numbers = #tpu.dot_dimension_numbers<[1], [0], [0], [1], [0, 0, 1, 1], [], []>} : vector<28x16xf32>, vector<16x28xf32>, vector<28x28xf32> -> vector<28x28xf32>
    %34 = arith.addf %29, %33 : vector<28x28xf32>
    %35 = math.tanh %34 : vector<28x28xf32>
    %c0_23 = arith.constant 0 : index
    %c0_24 = arith.constant 0 : index
    %c0_25 = arith.constant 0 : index
    %36 = vector.load %arg6[%c0_23, %c0_24, %c0_25] : memref<2x28x28xf32, #tpu.memory_space<vmem>>, vector<1x28x28xf32>
    %37 = vector.shape_cast %36 : vector<1x28x28xf32> to vector<28x28xf32>
    %38 = vector.shape_cast %35 : vector<28x28xf32> to vector<1x28x28xf32>
    tpu.vector_store %arg6[%c0_23, %c0_24, %c0_25], %38 {strides = array<i32>} : memref<2x28x28xf32, #tpu.memory_space<vmem>>, vector<1x28x28xf32>,
    %c1_26 = arith.constant 1 : index
    %c0_27 = arith.constant 0 : index
    %c0_28 = arith.constant 0 : index
    %39 = vector.load %arg1[%c1_26, %c0_27, %c0_28] : memref<2x16x256xbf16, #tpu.memory_space<vmem>>, vector<1x16x256xbf16>
    %40 = vector.shape_cast %39 : vector<1x16x256xbf16> to vector<16x256xbf16>
    %41 = arith.extf %40 : vector<16x256xbf16> to vector<16x256xf32>
    %c0_29 = arith.constant 0 : index
    %c0_30 = arith.constant 0 : index
    %42 = vector.load %arg4[%c0_29, %c0_30] : memref<1x256xf32, #tpu.memory_space<vmem>>, vector<1x256xf32>
    %43 = vector.broadcast %42 : vector<1x256xf32> to vector<16x256xf32>
    %44 = arith.mulf %41, %43 : vector<16x256xf32>
    %c0_31 = arith.constant 0 : index
    %c0_32 = arith.constant 0 : index
    %45 = vector.load %arg5[%c0_31, %c0_32] : memref<1x256xf32, #tpu.memory_space<vmem>>, vector<1x256xf32>
    %46 = vector.broadcast %45 : vector<1x256xf32> to vector<16x256xf32>
    %47 = arith.addf %44, %46 : vector<16x256xf32>
    %cst_33 = arith.constant 0.000000e+00 : f32
    %48 = vector.broadcast %cst_33 : f32 to vector<16x256xf32>
    %49 = arith.maximumf %47, %48 : vector<16x256xf32>
    %50 = arith.truncf %49 : vector<16x256xf32> to vector<16x256xbf16>
    %c0_34 = arith.constant 0 : index
    %c0_35 = arith.constant 0 : index
    %51 = vector.load %arg2[%c0_34, %c0_35] : memref<256x112xbf16, #tpu.memory_space<vmem>>, vector<256x112xbf16>
    %cst_36 = arith.constant dense<0.000000e+00> : vector<16x112xf32>
    %52 = tpu.matmul %50, %51, %cst_36 {dimension_numbers = #tpu.dot_dimension_numbers<[1], [0], [0], [1], [0, 0, 1, 1], [], []>} : vector<16x256xbf16>, vector<256x112xbf16>, vector<16x112xf32> -> vector<16x112xf32>
    %cst_37 = arith.constant 0.000000e+00 : f32
    %53 = vector.broadcast %cst_37 : f32 to vector<28x28xf32>
    %c0_38 = arith.constant 0 : index
    %c0_39 = arith.constant 0 : index
    %c0_40 = arith.constant 0 : index
    %54 = vector.load %arg3[%c0_38, %c0_39, %c0_40] : memref<4x28x16xf32, #tpu.memory_space<vmem>>, vector<1x28x16xf32>
    %55 = vector.shape_cast %54 : vector<1x28x16xf32> to vector<28x16xf32>
    %56 = vector.extract_strided_slice %52 {offsets = [0, 0], sizes = [16, 28], strides = [1, 1]} : vector<16x112xf32> to vector<16x28xf32>
    %cst_41 = arith.constant dense<0.000000e+00> : vector<28x28xf32>
    %57 = tpu.matmul %55, %56, %cst_41 {dimension_numbers = #tpu.dot_dimension_numbers<[1], [0], [0], [1], [0, 0, 1, 1], [], []>} : vector<28x16xf32>, vector<16x28xf32>, vector<28x28xf32> -> vector<28x28xf32>
    %58 = arith.addf %53, %57 : vector<28x28xf32>
    %c1_42 = arith.constant 1 : index
    %c0_43 = arith.constant 0 : index
    %c0_44 = arith.constant 0 : index
    %59 = vector.load %arg3[%c1_42, %c0_43, %c0_44] : memref<4x28x16xf32, #tpu.memory_space<vmem>>, vector<1x28x16xf32>
    %60 = vector.shape_cast %59 : vector<1x28x16xf32> to vector<28x16xf32>
    %61 = vector.extract_strided_slice %52 {offsets = [0, 28], sizes = [16, 28], strides = [1, 1]} : vector<16x112xf32> to vector<16x28xf32>
    %cst_45 = arith.constant dense<0.000000e+00> : vector<28x28xf32>
    %62 = tpu.matmul %60, %61, %cst_45 {dimension_numbers = #tpu.dot_dimension_numbers<[1], [0], [0], [1], [0, 0, 1, 1], [], []>} : vector<28x16xf32>, vector<16x28xf32>, vector<28x28xf32> -> vector<28x28xf32>
    %63 = arith.addf %58, %62 : vector<28x28xf32>
    %c2_46 = arith.constant 2 : index
    %c0_47 = arith.constant 0 : index
    %c0_48 = arith.constant 0 : index
    %64 = vector.load %arg3[%c2_46, %c0_47, %c0_48] : memref<4x28x16xf32, #tpu.memory_space<vmem>>, vector<1x28x16xf32>
    %65 = vector.shape_cast %64 : vector<1x28x16xf32> to vector<28x16xf32>
    %66 = vector.extract_strided_slice %52 {offsets = [0, 56], sizes = [16, 28], strides = [1, 1]} : vector<16x112xf32> to vector<16x28xf32>
    %cst_49 = arith.constant dense<0.000000e+00> : vector<28x28xf32>
    %67 = tpu.matmul %65, %66, %cst_49 {dimension_numbers = #tpu.dot_dimension_numbers<[1], [0], [0], [1], [0, 0, 1, 1], [], []>} : vector<28x16xf32>, vector<16x28xf32>, vector<28x28xf32> -> vector<28x28xf32>
    %68 = arith.addf %63, %67 : vector<28x28xf32>
    %c3_50 = arith.constant 3 : index
    %c0_51 = arith.constant 0 : index
    %c0_52 = arith.constant 0 : index
    %69 = vector.load %arg3[%c3_50, %c0_51, %c0_52] : memref<4x28x16xf32, #tpu.memory_space<vmem>>, vector<1x28x16xf32>
    %70 = vector.shape_cast %69 : vector<1x28x16xf32> to vector<28x16xf32>
    %71 = vector.extract_strided_slice %52 {offsets = [0, 84], sizes = [16, 28], strides = [1, 1]} : vector<16x112xf32> to vector<16x28xf32>
    %cst_53 = arith.constant dense<0.000000e+00> : vector<28x28xf32>
    %72 = tpu.matmul %70, %71, %cst_53 {dimension_numbers = #tpu.dot_dimension_numbers<[1], [0], [0], [1], [0, 0, 1, 1], [], []>} : vector<28x16xf32>, vector<16x28xf32>, vector<28x28xf32> -> vector<28x28xf32>
    %73 = arith.addf %68, %72 : vector<28x28xf32>
    %74 = math.tanh %73 : vector<28x28xf32>
    %c1_54 = arith.constant 1 : index
    %c0_55 = arith.constant 0 : index
    %c0_56 = arith.constant 0 : index
    %75 = vector.load %arg6[%c1_54, %c0_55, %c0_56] : memref<2x28x28xf32, #tpu.memory_space<vmem>>, vector<1x28x28xf32>
    %76 = vector.shape_cast %75 : vector<1x28x28xf32> to vector<28x28xf32>
    %77 = vector.shape_cast %74 : vector<28x28xf32> to vector<1x28x28xf32>
    tpu.vector_store %arg6[%c1_54, %c0_55, %c0_56], %77 {strides = array<i32>} : memref<2x28x28xf32, #tpu.memory_space<vmem>>, vector<1x28x28xf32>,
    return
  }
  func.func @transform_0(%arg0: i32) -> (i32, i32, i32) {
    %c0_i32 = arith.constant 0 : i32
    %c0_i32_0 = arith.constant 0 : i32
    %c0_i32_1 = arith.constant 0 : i32
    return %arg0, %c0_i32, %c0_i32_0 : i32, i32, i32
  }
  func.func @transform_1(%arg0: i32) -> (i32, i32) {
    %c0_i32 = arith.constant 0 : i32
    %c0_i32_0 = arith.constant 0 : i32
    %c0_i32_1 = arith.constant 0 : i32
    return %c0_i32, %c0_i32_0 : i32, i32
  }
  func.func @transform_2(%arg0: i32) -> (i32, i32, i32) {
    %c0_i32 = arith.constant 0 : i32
    %c0_i32_0 = arith.constant 0 : i32
    %c0_i32_1 = arith.constant 0 : i32
    %c0_i32_2 = arith.constant 0 : i32
    return %c0_i32, %c0_i32_0, %c0_i32_1 : i32, i32, i32
  }
  func.func @transform_3(%arg0: i32) -> (i32, i32) {
    %c0_i32 = arith.constant 0 : i32
    %c0_i32_0 = arith.constant 0 : i32
    %c0_i32_1 = arith.constant 0 : i32
    return %c0_i32, %c0_i32_0 : i32, i32
  }
  func.func @transform_4(%arg0: i32) -> (i32, i32) {
    %c0_i32 = arith.constant 0 : i32
    %c0_i32_0 = arith.constant 0 : i32
    %c0_i32_1 = arith.constant 0 : i32
    return %c0_i32, %c0_i32_0 : i32, i32
  }
  func.func @transform_5(%arg0: i32) -> (i32, i32, i32) {
    %c0_i32 = arith.constant 0 : i32
    %c0_i32_0 = arith.constant 0 : i32
    %c0_i32_1 = arith.constant 0 : i32
    return %arg0, %c0_i32, %c0_i32_0 : i32, i32, i32
  }
}

</mosaic_0001>

<bundles_post_ra>
// kernel: tile.37
= control target key start
LH: loop header
LB: loop body
LE: loop exit
PB: predicated region body
PF: predicated region fallthrough
CT: control target
= control target key end

     0   :  { %s22_s0 = inlined_call_operand.vmem [shape: f32[64], index: 0, kind: input, shape index: {}]   ;;  %s23_s1 = inlined_call_operand.vmem [shape: f32[4,64], index: 1, kind: output, shape index: {}]  }
   0x1   :  { %v4_v0 = vld [vmem:[%s22_s0] ss:$0 sm:$0xff] }
   0x2   :  { %5 = vst [vmem:[%s23_s1] sm:$0xf] %v4_v0 }

// kernel: tile.39
= control target key start
LH: loop header
LB: loop body
LE: loop exit
PB: predicated region body
PF: predicated region fallthrough
CT: control target
= control target key end

     0   :  { %s6_s8 = smov 3  ;;  %vm8_vm0 = vcmask 523264   ;;  %s30_s9 = smov 64   ;;  %vm15_vm1 = vcmask 1048064   ;;  %s50_s0 = inlined_call_operand.vmem [shape: f32[4,64], index: 0, kind: input, shape index: {}]   ;;  %s51_s1 = inlined_call_operand.vmem [shape: f32[1,256], index: 1, kind: output, shape index: {}]  }
   0x1   :  { %v4_v0 = vld [vmem:[%s50_s0] sm:$0xf]  ;;  %s11_s0 = smov 3 }
   0x2   :  { %5 = vst [vmem:[#allocation1] sm:$0xf] %v4_v0 }
   0x9   :  { %v12_v1 = vld [vmem:[#allocation1 + $0x1] ss:$2 sm:%s11_s0]   ;;  %v7_v2 = vld [vmem:[#allocation1] ss:$2 sm:%s6_s8]  }
   0xa   :  { %13 = vrot.lane.b32.xlu0 %v12_v1, %s30_s9  ;;  %9 = vst.msk [vmem:[#allocation0] ss:$8 sm:$0x3] %vm8_vm0, %v7_v2  }
  0x7c   :  { %v14_v3 = vpop.permute.xlu0 %13  }
  0x7d   :  { %16 = vst.msk [vmem:[#allocation0] ss:$8 sm:$0x3] %vm15_vm1, %v14_v3  }
  0x84   :  { %v20_v4 = vld [vmem:[#allocation0] sm:$0x1]  ;;  %v24_v5 = vld [vmem:[#allocation0 + $0x8] sm:$0x1] }
  0x85   :  { %22 = vst [vmem:[%s51_s1] sm:$0x1] %v20_v4  ;;  %28 = vst [vmem:[%s51_s1 + $0x1] sm:$0x1] %v24_v5 }

// kernel: tile.47
= control target key start
LH: loop header
LB: loop body
LE: loop exit
PB: predicated region body
PF: predicated region fallthrough
CT: control target
= control target key end

     0   :  { %s22_s0 = inlined_call_operand.vmem [shape: f32[32], index: 0, kind: input, shape index: {}]   ;;  %s23_s1 = inlined_call_operand.vmem [shape: f32[8,32], index: 1, kind: output, shape index: {}]  }
   0x1   :  { %v4_v0 = vld [vmem:[%s22_s0] ss:$0 sm:$0xff] }
   0x2   :  { %5 = vst [vmem:[%s23_s1] sm:$0xff] %v4_v0 }

// kernel: tile.49
= control target key start
LH: loop header
LB: loop body
LE: loop exit
PB: predicated region body
PF: predicated region fallthrough
CT: control target
= control target key end

     0   :  { %s7_s6 = smov 3  ;;  %s14_s9 = smov 3  ;;  %vm4_vm0 = vcmask 261120   ;;  %vm11_vm1 = vcmask 1048320   ;;  %vm18_vm2 = vcmask 785920   ;;  %vm25_vm3 = vcmask 523520   ;;  %s76_s0 = inlined_call_operand.vmem [shape: f32[8,32], index: 0, kind: input, shape index: {}]   ;;  %s77_s1 = inlined_call_operand.vmem [shape: f32[1,256], index: 1, kind: output, shape index: {}]  }
   0x1   :  { %v38_v0 = vld [vmem:[%s76_s0 + $0x3] ss:$4 sm:%s7_s6]   ;;  %s45_s10 = smov 96   ;;  %s21_s11 = smov 3  ;;  %v39_v1 = vld [vmem:[%s76_s0 + $0x2] ss:$4 sm:%s14_s9]  }
   0x2   :  { %9 = vrot.lane.b32.xlu0 %v38_v0, %s45_s10  ;;  %v40_v2 = vld [vmem:[%s76_s0 + $0x1] ss:$4 sm:%s21_s11]   ;;  %s2_s16 = smov 3  ;;  %s46_s17 = smov 32  }
   0x3   :  { %23 = vrot.lane.b32.xlu1 %v40_v2, %s46_s17  ;;  %v3_v3 = vld [vmem:[%s76_s0] ss:$4 sm:%s2_s16]   ;;  %s47_s0 = smov 64  }
   0x4   :  { %5 = vst.msk [vmem:[#allocation0] ss:$8 sm:$0x3] %vm4_vm0, %v3_v3  }
   0x6   :  { %16 = vrot.lane.b32.xlu0 %v39_v1, %s47_s0 }
  0x74   :  { %v10_v4 = vpop.permute.xlu0 %9  }
  0x75   :  { %12 = vst.msk [vmem:[#allocation0] ss:$8 sm:$0x3] %vm11_vm1, %v10_v4   ;;  %v24_v5 = vpop.permute.xlu1 %23  }
  0x78   :  { %v17_v6 = vpop.permute.xlu0 %16  }
  0x79   :  { %19 = vst.msk [vmem:[#allocation0] ss:$8 sm:$0x3] %vm18_vm2, %v17_v6  }
  0x7a   :  { %26 = vst.msk [vmem:[#allocation0] ss:$8 sm:$0x3] %vm25_vm3, %v24_v5  }
  0x81   :  { %v30_v7 = vld [vmem:[#allocation0] sm:$0x1]  ;;  %v34_v8 = vld [vmem:[#allocation0 + $0x8] sm:$0x1] }
  0x82   :  { %32 = vst [vmem:[%s77_s1] sm:$0x1] %v30_v7  ;;  %41 = vst [vmem:[%s77_s1 + $0x1] sm:$0x1] %v34_v8 }

// kernel: tile.57
= control target key start
LH: loop header
LB: loop body
LE: loop exit
PB: predicated region body
PF: predicated region fallthrough
CT: control target
= control target key end

     0   :  { %s28_s0 = inlined_call_operand.vmem [shape: f32[16], index: 0, kind: input, shape index: {}]   ;;  %s29_s1 = inlined_call_operand.vmem [shape: f32[16,16], index: 1, kind: output, shape index: {}]  }
   0x1   :  { %v4_v0 = vld [vmem:[%s28_s0] ss:$0 sm:$0xff] }
   0x2   :  { %5 = vst [vmem:[%s29_s1] sm:$0xff] %v4_v0  ;;  %8 = vst [vmem:[%s29_s1 + $0x8] sm:$0xff] %v4_v0 }

// kernel: tile.59
= control target key start
LH: loop header
LB: loop body
LE: loop exit
PB: predicated region body
PF: predicated region fallthrough
CT: control target
= control target key end

     0   :  { %s7_s6 = smov 3  ;;  %s21_s9 = smov 3  ;;  %vm4_vm0 = vcmask 130048   ;;  %vm11_vm1 = vcmask 1048448   ;;  %vm18_vm2 = vcmask 917248   ;;  %vm25_vm3 = vcmask 786048   ;;  %s128_s0 = inlined_call_operand.vmem [shape: f32[16,16], index: 0, kind: input, shape index: {}]   ;;  %s129_s1 = inlined_call_operand.vmem [shape: f32[1,256], index: 1, kind: output, shape index: {}]  }
   0x1   :  { %v66_v0 = vld [vmem:[%s128_s0 + $0x7] ss:$8 sm:%s7_s6]   ;;  %s81_s10 = smov 112   ;;  %v68_v1 = vld [vmem:[%s128_s0 + $0x5] ss:$8 sm:%s21_s9]   ;;  %s14_s13 = smov 3 }
   0x2   :  { %9 = vrot.lane.b32.xlu0 %v66_v0, %s81_s10  ;;  %s82_s14 = smov 80   ;;  %v67_v2 = vld [vmem:[%s128_s0 + $0x6] ss:$8 sm:%s14_s13]   ;;  %s28_s17 = smov 3  ;;  %vm32_vm4 = vcmask 654848   ;;  %vm39_vm5 = vcmask 523648  }
   0x3   :  { %23 = vrot.lane.b32.xlu1 %v68_v1, %s82_s14  ;;  %v69_v3 = vld [vmem:[%s128_s0 + $0x4] ss:$8 sm:%s28_s17]   ;;  %s35_s20 = smov 3  ;;  %s42_s21 = smov 3  ;;  %vm46_vm6 = vcmask 392448   ;;  %vm53_vm7 = vcmask 261248  }
   0x4   :  { %s83_s22 = smov 96   ;;  %s84_s23 = smov 64   ;;  %v70_v4 = vld [vmem:[%s128_s0 + $0x3] ss:$8 sm:%s35_s20]   ;;  %v71_v5 = vld [vmem:[%s128_s0 + $0x2] ss:$8 sm:%s42_s21]  }
   0x5   :  { %s2_s26 = smov 3  ;;  %s49_s29 = smov 3 }
   0x6   :  { %16 = vrot.lane.b32.xlu0 %v67_v2, %s83_s22  ;;  %v3_v6 = vld [vmem:[%s128_s0] ss:$8 sm:%s2_s26]   ;;  %s85_s3 = smov 48   ;;  %s86_s4 = smov 32  }
   0x7   :  { %30 = vrot.lane.b32.xlu1 %v69_v3, %s84_s23  ;;  %5 = vst.msk [vmem:[#allocation0] ss:$8 sm:$0x3] %vm4_vm0, %v3_v6   ;;  %v72_v7 = vld [vmem:[%s128_s0 + $0x1] ss:$8 sm:%s49_s29]   ;;  %s87_s0 = smov 16  }
   0xa   :  { %37 = vrot.lane.b32.xlu0 %v70_v4, %s85_s3 }
   0xb   :  { %44 = vrot.lane.b32.xlu1 %v71_v5, %s86_s4 }
   0xe   :  { %51 = vrot.lane.b32.xlu0 %v72_v7, %s87_s0 }
  0x74   :  { %v10_v8 = vpop.permute.xlu0 %9  }
  0x75   :  { %12 = vst.msk [vmem:[#allocation0] ss:$8 sm:$0x3] %vm11_vm1, %v10_v8   ;;  %v24_v9 = vpop.permute.xlu1 %23  }
  0x78   :  { %v17_v10 = vpop.permute.xlu0 %16  }
  0x79   :  { %19 = vst.msk [vmem:[#allocation0] ss:$8 sm:$0x3] %vm18_vm2, %v17_v10   ;;  %v31_v11 = vpop.permute.xlu1 %30  }
  0x7a   :  { %26 = vst.msk [vmem:[#allocation0] ss:$8 sm:$0x3] %vm25_vm3, %v24_v9  }
  0x7b   :  { %33 = vst.msk [vmem:[#allocation0] ss:$8 sm:$0x3] %vm32_vm4, %v31_v11  }
  0x7c   :  { %v38_v12 = vpop.permute.xlu0 %37  }
  0x7d   :  { %40 = vst.msk [vmem:[#allocation0] ss:$8 sm:$0x3] %vm39_vm5, %v38_v12   ;;  %v45_v13 = vpop.permute.xlu1 %44  }
  0x7e   :  { %47 = vst.msk [vmem:[#allocation0] ss:$8 sm:$0x3] %vm46_vm6, %v45_v13  }
  0x80   :  { %v52_v14 = vpop.permute.xlu0 %51  }
  0x81   :  { %54 = vst.msk [vmem:[#allocation0] ss:$8 sm:$0x3] %vm53_vm7, %v52_v14  }
  0x88   :  { %v58_v15 = vld [vmem:[#allocation0] sm:$0x1]  ;;  %v62_v16 = vld [vmem:[#allocation0 + $0x8] sm:$0x1] }
  0x89   :  { %60 = vst [vmem:[%s129_s1] sm:$0x1] %v58_v15  ;;  %73 = vst [vmem:[%s129_s1 + $0x1] sm:$0x1] %v62_v16 }

// kernel: generator_forward.4
= control target key start
LH: loop header
LB: loop body
LE: loop exit
PB: predicated region body
PF: predicated region fallthrough
CT: control target
= control target key end

     0   :  { %11 = vsyncpa [#allocation3], 0  ;;  %s1588_s0 = inlined_call_operand.hbm [shape: f32[2,1,16], index: 0, kind: input, shape index: {}]   ;;  %s1589_s1 = inlined_call_operand.hbm [shape: bf16[16,1024], index: 1, kind: input, shape index: {}]   ;;  %s1590_s2 = inlined_call_operand.vmem [shape: f32[4,4,1], index: 2, kind: input, shape index: {}]   ;;  %s1591_s3 = inlined_call_operand.vmem [shape: bf16[2,4,256], index: 3, kind: output, shape index: {0}]   ;;  %s1592_s4 = inlined_call_operand.vmem [shape: f32[1,1,256], index: 4, kind: output, shape index: {1}]   ;;  %s1593_s5 = inlined_call_operand.vmem [shape: f32[1,1,256], index: 5, kind: output, shape index: {2}]  }
   0x1   :  { %12 = vsyncpa [#allocation5], 0  ;;  %s1425_s18 = smov [#allocation2]   ;;  %s1377_s22 = scalar_lea.hbm %s1588_s0, 32 }
   0x2   :  { %s18_s19 = sshll.u32 %s1425_s18, 4  ;;  %p1378_p0 = scmp.ne.s32.totalorder %s1588_s0, %s1377_s22  ;;  %s19_s19 = int_to_ptr.vmem [resolvable:$true] %s18_s19 }
   0x3   :  { %p1381_p1 = scmp.lt.u32.totalorder %s1377_s22, %s1588_s0 }
   0x5   :  { %p1383_p2 = pnand %p1381_p1, %p1378_p0 }
   0x7   :  { %1386 = shalt.err (!%p1383_p2)
}
   0x8   :  { %s1387_s27 = scalar_lea.vmem %s19_s19, 32  ;;  %p1392_p4 = scmp.lt.s32.totalorder %s19_s19, %s19_s19 }
   0x9   :  { %p1388_p3 = scmp.ne.s32.totalorder %s19_s19, %s1387_s27  ;;  %p1393_p5 = scmp.lt.s32.totalorder %s1387_s27, %s1387_s27 }
   0xb   :  { %p1394_p6 = por %p1393_p5, %p1392_p4 }
   0xd   :  { %p1395_p7 = pnand %p1394_p6, %p1388_p3 }
   0xf   :  { %1398 = shalt.err (!%p1395_p7)
}
  0x10   :  { %s1426_s28 = smov 16   ;;  %s1427_s29 = smov 1  }
  0x11   :  { %24 = dma.hbm_to_vmem [thread:$0]  %s1588_s0, 32, %s19_s19, [#allocation3], %s1426_s28, %s1426_s28, %s1427_s29  }
  0x12   :  { %s1428_s7 = smov [#allocation4]   ;;  %s1399_s11 = scalar_lea.hbm %s1589_s1, 1024 }
  0x13   :  { %s30_s8 = sshll.u32 %s1428_s7, 4  ;;  %p1400_p8 = scmp.ne.s32.totalorder %s1589_s1, %s1399_s11  ;;  %s31_s8 = int_to_ptr.vmem [resolvable:$true] %s30_s8 }
  0x14   :  { %p1403_p9 = scmp.lt.u32.totalorder %s1399_s11, %s1589_s1 }
  0x16   :  { %p1405_p10 = pnand %p1403_p9, %p1400_p8 }
  0x18   :  { %1408 = shalt.err (!%p1405_p10)
}
  0x19   :  { %s1409_s16 = scalar_lea.vmem %s31_s8, 1024  ;;  %p1414_p12 = scmp.lt.s32.totalorder %s31_s8, %s31_s8 }
  0x1a   :  { %p1410_p11 = scmp.ne.s32.totalorder %s31_s8, %s1409_s16  ;;  %p1415_p13 = scmp.lt.s32.totalorder %s1409_s16, %s1409_s16 }
  0x1c   :  { %p1416_p0 = por %p1415_p13, %p1414_p12 }
  0x1e   :  { %p1417_p1 = pnand %p1416_p0, %p1410_p11 }
  0x20   :  { %1420 = shalt.err (!%p1417_p1)
}
  0x21   :  { %s1429_s0 = smov 512   ;;  %s1430_s17 = smov 32  }
  0x22   :  { %36 = dma.hbm_to_vmem [thread:$0]  %s1589_s1, 1024, %s31_s8, [#allocation5], %s1429_s0, %s1429_s0, %s1430_s17  }
  0x23   :  { %1421 = dma.done.wait [#allocation3], 32  }
  0x24   :  { %1422 = vsyncadd [#allocation3], 4294967264 }
  0x25   :  { %1423 = dma.done.wait [#allocation5], 1024  }
  0x26   :  { %1424 = vsyncadd [#allocation5], 4294966272  ;;  %v1431_v0 = vmov 0   ;;  %v48_v1 = vld [vmem:[#allocation4] sm:$0xff]  ;;  %v46_v3 = vld [vmem:[#allocation2] sm:$0x1] }
  0x27   :  { %132 = vmatprep.mubr.bf16.mxu1 %v1431_v0  ;;  %214 = vmatprep.mubr.bf16.mxu0 %v1431_v0  ;;  %v52_v2 = vld [vmem:[#allocation4 + $0x20] sm:$0xff]  ;;  %v49_v6 = vld [vmem:[#allocation4 + $0x8] sm:$0xff]  ;;  %v50_v8 = vld [vmem:[#allocation4 + $0x10] sm:$0xff]  ;;  %v47_v13 = vpack.c.bf16 %v46_v3, %v46_v3  ;;  %vm96_vm0 = vcmask 130048   ;;  %v1432_v21 = vmov 0.0   ;;  %vm271_vm1 = vcmask 1040384  }
  0x28   :  { %v1298_v4 = vcombine.high %v48_v1, %v52_v2  ;;  %v1297_v5 = vcombine.low %v48_v1, %v52_v2  ;;  %v53_v7 = vld [vmem:[#allocation4 + $0x28] sm:$0xff]  ;;  %v54_v10 = vld [vmem:[#allocation4 + $0x30] sm:$0xff]  ;;  %v51_v11 = vld [vmem:[#allocation4 + $0x18] sm:$0xff]  ;;  %vm267_vm2 = vcmask 7168   ;;  %vm597_vm3 = vcmask 1043456  }
  0x29   :  { %v1300_v9 = vcombine.high %v49_v6, %v53_v7  ;;  %v55_v12 = vld [vmem:[#allocation4 + $0x38] sm:$0xff]  ;;  %v1490_v14 = vcombine.high %v50_v8, %v54_v10  ;;  %v1492_v15 = vcombine.low %v50_v8, %v54_v10  ;;  %v1299_v16 = vcombine.low %v49_v6, %v53_v7  ;;  %v1309_v32 = vld [vmem:[%s1590_s2 + $0x4] sm:$0xf]  ;;  %v1316_v40 = vld [vmem:[%s1590_s2 + $0x8] sm:$0xf] }
  0x2a   :  { %100 = vmatprep.subr.bf16.mxu1 %v1298_v4  ;;  %v1304_v17 = vcombine.high %v51_v11, %v55_v12  ;;  %v1303_v18 = vcombine.low %v51_v11, %v55_v12  ;;  %v647_v19 = vld [vmem:[#allocation2 + $0x1] sm:$0x1]  ;;  %v1320_v41 = vld [vmem:[%s1590_s2 + $0xc] sm:$0xf]  ;;  %v1338_v48 = vld [vmem:[%s1590_s2 + $0x4] sm:$0xf] }
  0x2b   :  { %101 = vmatpush1.bf16.msra.mxu1 %v1297_v5  ;;  %182 = vmatprep.subr.bf16.mxu0 %v1490_v14  ;;  %v648_v20 = vpack.c.bf16 %v647_v19, %v647_v19  ;;  %v264_v36 = vld [vmem:[%s1590_s2] sm:$0xf]  ;;  %v1345_v61 = vld [vmem:[%s1590_s2 + $0x8] sm:$0xf] }
  0x2c   :  { %141 = vmatprep.subr.bf16.mxu1 %v1300_v9  ;;  %183 = vmatpush1.bf16.msra.mxu0 %v1492_v15  ;;  %v864_v51 = vld [vmem:[%s1590_s2] sm:$0xf] }
  0x2e   :  { %1305 = vmatmul.mubr.msk.bf16.vlgmr.msra.gmra.mrb[0].mxu1 %vm96_vm0, %v47_v13 }
  0x2f   :  { %142 = vmatpush1.bf16.msra.mxu1 %v1299_v16  ;;  %173 = vmatprep.mubr.bf16.mxu1 %v1431_v0 }
  0x30   :  { %1307 = vmatmul.mubr.msk.bf16.vlgmr.msra.gmra.mrb[0].mxu0 %vm96_vm0, %v47_v13  ;;  %223 = vmatprep.subr.bf16.mxu1 %v1304_v17 }
  0x31   :  { %342 = vmatprep.mubr.f32.mxu0 %v1432_v21 }
  0x36   :  { %1306 = vmatmul.mubr.msk.bf16.vlgmr.msra.gmra.mrb[4].mxu1 %vm96_vm0, %v47_v13 }
  0x37   :  { %224 = vmatpush1.bf16.msra.mxu1 %v1303_v18  ;;  %255 = vmatprep.mubr.bf16.mxu1 %v1431_v0 }
  0x38   :  { %700 = vmatprep.subr.bf16.mxu1 %v1298_v4 }
  0x3e   :  { %1308 = vmatmul.mubr.msk.bf16.vlgmr.msra.gmra.mrb[8].mxu1 %vm96_vm0, %v47_v13 }
  0x3f   :  { %701 = vmatpush1.bf16.msra.mxu1 %v1297_v5  ;;  %732 = vmatprep.mubr.bf16.mxu1 %v1431_v0 }
  0x40   :  { %741 = vmatprep.subr.bf16.mxu1 %v1300_v9 }
  0x46   :  { %1334 = vmatmul.mubr.msk.bf16.vlgmr.msra.gmra.mrb[12].mxu1 %vm96_vm0, %v648_v20 }
  0x47   :  { %742 = vmatpush1.bf16.msra.mxu1 %v1299_v16  ;;  %773 = vmatprep.mubr.bf16.mxu1 %v1431_v0 }
  0x48   :  { %823 = vmatprep.subr.bf16.mxu1 %v1304_v17 }
  0x4e   :  { %1335 = vmatmul.mubr.msk.bf16.vlgmr.msra.gmra.mrb[16].mxu1 %vm96_vm0, %v648_v20 }
  0x4f   :  { %824 = vmatpush1.bf16.msra.mxu1 %v1303_v18  ;;  %855 = vmatprep.mubr.bf16.mxu1 %v1431_v0 }
  0x56   :  { %1337 = vmatmul.mubr.msk.bf16.vlgmr.msra.gmra.mrb[20].mxu1 %vm96_vm0, %v648_v20 }
 0x101   :  { %v134_v22 = vpop.f32.mrb[0].mxu1 }
 0x102   :  { %v136_v23 = vpop.f32.mrb[1].mxu1 }
 0x103   :  { %v138_v24 = vpop.f32.mrb[2].mxu1  ;;  %v216_v25 = vpop.f32.mrb[0].mxu0 }
 0x104   :  { %v139_v26 = vpop.f32.mrb[3].mxu1  ;;  %v218_v27 = vpop.f32.mrb[1].mxu0 }
 0x105   :  { %v220_v28 = vpop.f32.mrb[2].mxu0 }
 0x106   :  { %v221_v29 = vpop.f32.mrb[3].mxu0 }
 0x109   :  { %v175_v30 = vpop.f32.mrb[4].mxu1 }
 0x10a   :  { %v177_v31 = vpop.f32.mrb[5].mxu1 }
 0x10b   :  { %v179_v33 = vpop.f32.mrb[6].mxu1  ;;  %1310 = vmatprep.subr.msk.mxu0 %vm271_vm1, %v177_v31 }
 0x10c   :  { %v180_v34 = vpop.f32.mrb[7].mxu1  ;;  %1311 = vmatpush1.msk.msra.mxu0 %vm271_vm1, %v175_v30 }
 0x10d   :  { %1312 = vmatmul.mubr.msk.f32.vlgmr.msra.gmra.mrb[4].mxu0 %vm267_vm2, %v1309_v32  ;;  %1313 = vmatprep.subr.msk.mxu0 %vm271_vm1, %v136_v23 }
 0x10e   :  { %1314 = vmatpush1.msk.msra.mxu0 %vm271_vm1, %v134_v22  ;;  %422 = vmatprep.mubr.f32.mxu0 %v1432_v21 }
 0x10f   :  { %1317 = vmatprep.subr.msk.mxu0 %vm271_vm1, %v218_v27 }
 0x111   :  { %v257_v35 = vpop.f32.mrb[8].mxu1 }
 0x112   :  { %v259_v37 = vpop.f32.mrb[9].mxu1 }
 0x113   :  { %v261_v38 = vpop.f32.mrb[10].mxu1 }
 0x114   :  { %v262_v39 = vpop.f32.mrb[11].mxu1 }
 0x115   :  { %1315 = vmatmul.mubr.msk.f32.vlgmr.msra.gmra.mrb[4].mxu0 %vm267_vm2, %v264_v36 }
 0x116   :  { %1318 = vmatpush1.msk.msra.mxu0 %vm271_vm1, %v216_v25  ;;  %504 = vmatprep.mubr.f32.mxu0 %v1432_v21 }
 0x117   :  { %1321 = vmatprep.subr.msk.mxu0 %vm271_vm1, %v259_v37 }
 0x119   :  { %v734_v42 = vpop.f32.mrb[12].mxu1 }
 0x11a   :  { %v736_v43 = vpop.f32.mrb[13].mxu1 }
 0x11b   :  { %v738_v44 = vpop.f32.mrb[14].mxu1 }
 0x11c   :  { %v739_v45 = vpop.f32.mrb[15].mxu1  ;;  %v1247_v44 = vlaneseq }
 0x11d   :  { %1319 = vmatmul.mubr.msk.f32.vlgmr.msra.gmra.mrb[4].mxu0 %vm267_vm2, %v1316_v40 }
 0x11e   :  { %1322 = vmatpush1.msk.msra.mxu0 %vm271_vm1, %v257_v35  ;;  %588 = vmatprep.mubr.f32.mxu0 %v1432_v21  ;;  %vm1261_vm4 = vcmp.lt.s32.totalorder %v1247_v44, 256 }
 0x11f   :  { %782 = vmatprep.subr.bf16.mxu0 %v1490_v14 }
 0x121   :  { %v775_v46 = vpop.f32.mrb[16].mxu1 }
 0x122   :  { %v777_v47 = vpop.f32.mrb[17].mxu1 }
 0x123   :  { %v779_v49 = vpop.f32.mrb[18].mxu1 }
 0x124   :  { %v780_v50 = vpop.f32.mrb[19].mxu1 }
 0x125   :  { %1323 = vmatmul.mubr.msk.f32.vlgmr.msra.gmra.mrb[4].mxu0 %vm267_vm2, %v1320_v41 }
 0x126   :  { %783 = vmatpush1.bf16.msra.mxu0 %v1492_v15  ;;  %814 = vmatprep.mubr.bf16.mxu0 %v1431_v0  ;;  %v1349_v0 = vld [vmem:[%s1590_s2 + $0xc] sm:$0xf] }
 0x127   :  { %1339 = vmatprep.subr.msk.mxu0 %vm271_vm1, %v777_v47 }
 0x129   :  { %1336 = vmatmul.mubr.msk.bf16.vlgmr.msra.gmra.mrb[8].mxu0 %vm96_vm0, %v648_v20  ;;  %v857_v52 = vpop.f32.mrb[20].mxu1 }
 0x12a   :  { %939 = vmatprep.mubr.f32.mxu0 %v1432_v21  ;;  %1340 = vmatpush1.msk.msra.mxu0 %vm271_vm1, %v775_v46  ;;  %v859_v53 = vpop.f32.mrb[21].mxu1 }
 0x12b   :  { %1342 = vmatprep.subr.msk.mxu0 %vm271_vm1, %v736_v43  ;;  %v861_v54 = vpop.f32.mrb[22].mxu1 }
 0x12c   :  { %v862_v55 = vpop.f32.mrb[23].mxu1 }
 0x131   :  { %1341 = vmatmul.mubr.msk.f32.vlgmr.msra.gmra.mrb[6].mxu0 %vm267_vm2, %v1338_v48 }
 0x132   :  { %1343 = vmatpush1.msk.msra.mxu0 %vm271_vm1, %v734_v42  ;;  %1019 = vmatprep.mubr.f32.mxu0 %v1432_v21  ;;  %v1433_v42 = vmov 1966171168  }
 0x133   :  { %v1245_v43 = vunpack.c.l.s4 %v1433_v42 }
 0x139   :  { %1344 = vmatmul.mubr.msk.f32.vlgmr.msra.gmra.mrb[6].mxu0 %vm267_vm2, %v864_v51 }
 0x13a   :  { %1100 = vmatprep.mubr.f32.mxu0 %v1432_v21 }
 0x1f8   :  { %v590_v56 = vpop.f32.mrb[4].mxu0 }
 0x1f9   :  { %v592_v57 = vpop.f32.mrb[5].mxu0  ;;  %v614_v1 = vmul.f32 %v590_v56, %v590_v56  ;;  %v598_v3 = vsel %vm597_vm3, %v590_v56, 0.0 }
 0x1fa   :  { %v1324_v58 = vpack.c.bf16 %v592_v57, %v590_v56  ;;  %v615_v2 = vmul.f32 %v592_v57, %v592_v57  ;;  %v605_v4 = vsel %vm597_vm3, %v592_v57, 0.0  ;;  %v599_v7 = vrot.slane %v598_v3, 4 }
 0x1fb   :  { %v616_v5 = vsel %vm597_vm3, %v614_v1, 0.0  ;;  %v606_v8 = vrot.slane %v605_v4, 4  ;;  %v1246_v57 = vunpack.c.0.s8 %v1245_v43 }
 0x1fc   :  { %1325 = vst.sshfl [vmem:[%s1591_s3] sm:$0x33 pattern:$0x76325410] %v1324_v58  ;;  %v816_v59 = vpop.f32.mrb[8].mxu0  ;;  %v623_v6 = vsel %vm597_vm3, %v615_v2, 0.0  ;;  %v617_v9 = vrot.slane %v616_v5, 4  ;;  %v600_v11 = vadd.f32 %v599_v7, %v598_v3 }
 0x1fd   :  { %v818_v60 = vpop.f32.mrb[9].mxu0  ;;  %v624_v10 = vrot.slane %v623_v6, 4  ;;  %v607_v12 = vadd.f32 %v606_v8, %v605_v4  ;;  %v1248_v58 = vshrl.u32 %v1247_v44, 7 }
 0x1fe   :  { %v820_v62 = vpop.f32.mrb[10].mxu0  ;;  %1346 = vmatprep.subr.msk.mxu0 %vm271_vm1, %v818_v60  ;;  %v618_v13 = vadd.f32 %v617_v9, %v616_v5  ;;  %v601_v15 = vrot.slane %v600_v11, 2 }
 0x1ff   :  { %v821_v63 = vpop.f32.mrb[11].mxu0  ;;  %1347 = vmatpush1.msk.msra.mxu0 %vm271_vm1, %v816_v59  ;;  %v625_v14 = vadd.f32 %v624_v10, %v623_v6  ;;  %v608_v16 = vrot.slane %v607_v12, 2  ;;  %v1249_v7 = vsub.s32 %v1246_v57, %v1248_v58 }
 0x200   :  { %1348 = vmatmul.mubr.msk.f32.vlgmr.msra.gmra.mrb[6].mxu0 %vm267_vm2, %v1345_v61  ;;  %1350 = vmatprep.subr.msk.mxu0 %vm271_vm1, %v859_v53  ;;  %v619_v18 = vrot.slane %v618_v13, 2  ;;  %v602_v27 = vadd.f32 %v601_v15, %v600_v11 }
 0x201   :  { %1351 = vmatpush1.msk.msra.mxu0 %vm271_vm1, %v857_v52  ;;  %1183 = vmatprep.mubr.f32.mxu0 %v1432_v21  ;;  %v626_v19 = vrot.slane %v625_v14, 2  ;;  %v609_v33 = vadd.f32 %v608_v16, %v607_v12 }
 0x202   :  { %v620_v36 = vadd.f32 %v619_v18, %v618_v13  ;;  %v603_v45 = vrot.slane %v602_v27, 1 }
 0x203   :  { %v627_v37 = vadd.f32 %v626_v19, %v625_v14  ;;  %v610_v48 = vrot.slane %v609_v33, 1 }
 0x204   :  { %v621_v51 = vrot.slane %v620_v36, 1  ;;  %v604_v59 = vadd.f32 %v603_v45, %v602_v27 }
 0x205   :  { %v628_v52 = vrot.slane %v627_v37, 1  ;;  %v611_v62 = vadd.f32 %v610_v48, %v609_v33 }
 0x206   :  { %v622_v1 = vadd.f32 %v621_v51, %v620_v36 }
 0x207   :  { %v629_v4 = vadd.f32 %v628_v52, %v627_v37 }
 0x208   :  { %1352 = vmatmul.mubr.msk.f32.vlgmr.msra.gmra.mrb[6].mxu0 %vm267_vm2, %v1349_v0 }
 0x2db   :  { %v1185_v17 = vpop.f32.mrb[6].mxu0 }
 0x2dc   :  { %v1192_v20 = vsel %vm597_vm3, %v1185_v17, 0.0  ;;  %v1208_v21 = vmul.f32 %v1185_v17, %v1185_v17  ;;  %v1187_v22 = vpop.f32.mrb[7].mxu0 }
 0x2dd   :  { %v1193_v23 = vrot.slane %v1192_v20, 4  ;;  %v1199_v24 = vsel %vm597_vm3, %v1187_v22, 0.0  ;;  %v1209_v25 = vmul.f32 %v1187_v22, %v1187_v22  ;;  %v1353_v26 = vpack.c.bf16 %v1187_v22, %v1185_v17 }
 0x2de   :  { %v1210_v28 = vsel %vm597_vm3, %v1208_v21, 0.0  ;;  %v1200_v29 = vrot.slane %v1199_v24, 4 }
 0x2df   :  { %v1194_v30 = vadd.f32 %v1193_v23, %v1192_v20  ;;  %v1211_v31 = vrot.slane %v1210_v28, 4  ;;  %v1217_v32 = vsel %vm597_vm3, %v1209_v25, 0.0  ;;  %1355 = vst.sshfl [vmem:[%s1591_s3 + $0x4] sm:$0x33 pattern:$0x76325410] %v1353_v26 }
 0x2e0   :  { %v1201_v34 = vadd.f32 %v1200_v29, %v1199_v24  ;;  %v1218_v35 = vrot.slane %v1217_v32, 4 }
 0x2e1   :  { %v1195_v38 = vrot.slane %v1194_v30, 2  ;;  %v1212_v39 = vadd.f32 %v1211_v31, %v1210_v28 }
 0x2e2   :  { %v1202_v40 = vrot.slane %v1201_v34, 2  ;;  %v1219_v41 = vadd.f32 %v1218_v35, %v1217_v32 }
 0x2e3   :  { %v1196_v46 = vadd.f32 %v1195_v38, %v1194_v30  ;;  %v1213_v47 = vrot.slane %v1212_v39, 2 }
 0x2e4   :  { %v1203_v49 = vadd.f32 %v1202_v40, %v1201_v34  ;;  %v1220_v50 = vrot.slane %v1219_v41, 2 }
 0x2e5   :  { %v1197_v53 = vrot.slane %v1196_v46, 1  ;;  %v1214_v54 = vadd.f32 %v1213_v47, %v1212_v39 }
 0x2e6   :  { %v1204_v55 = vrot.slane %v1203_v49, 1  ;;  %v1221_v56 = vadd.f32 %v1220_v50, %v1219_v41 }
 0x2e7   :  { %v1198_v60 = vadd.f32 %v1197_v53, %v1196_v46  ;;  %v1215_v61 = vrot.slane %v1214_v54, 1 }
 0x2e8   :  { %v1205_v63 = vadd.f32 %v1204_v55, %v1203_v49  ;;  %v1222_v0 = vrot.slane %v1221_v56, 1 }
 0x2e9   :  { %v1206_v2 = vadd.f32 %v1198_v60, %v604_v59  ;;  %v1216_v3 = vadd.f32 %v1215_v61, %v1214_v54 }
 0x2ea   :  { %v1207_v5 = vadd.f32 %v1205_v63, %v611_v62  ;;  %v1223_v6 = vadd.f32 %v1222_v0, %v1221_v56 }
 0x2eb   :  { %v1224_v8 = vadd.f32 %v1216_v3, %v622_v1 }
 0x2ec   :  { %v1225_v9 = vadd.f32 %v1223_v6, %v629_v4  ;;  %v1243_v10 = vcombine.low %v1206_v2, %v1207_v5 }
 0x2ee   :  { %v1250_v11 = vrot.slane %v1243_v10, %v1249_v7  ;;  %v1266_v12 = vcombine.low %v1224_v8, %v1225_v9 }
 0x2f0   :  { %v1257_v13 = vrot.slane %v1250_v11, %v1249_v7  ;;  %v1273_v14 = vrot.slane %v1266_v12, %v1249_v7 }
 0x2f2   :  { %1263 = vst.msk [vmem:[%s1592_s4] sm:$0x3] %vm1261_vm4, %v1257_v13  ;;  %v1280_v15 = vrot.slane %v1273_v14, %v1249_v7 }
 0x2f4   :  { %1282 = vst.msk [vmem:[%s1593_s5] sm:$0x3] %vm1261_vm4, %v1280_v15 }
 0x2f5   :  { %1295 = vsyncpa [#allocation3], 1 }
 0x2f6   :  { %1296 = vsyncpa [#allocation5], 1 }

// kernel: generator_forward.7
= control target key start
LH: loop header
LB: loop body
LE: loop exit
PB: predicated region body
PF: predicated region fallthrough
CT: control target
= control target key end

     0   :  { %v29_v5 = vlaneseq  ;;  %vm251_vm0 = vcmask 130048   ;;  %s1742_s15 = smov 44   ;;  %s1743_s16 = smov 100   ;;  %vm674_vm1 = vcmask 228352   ;;  %vm678_vm2 = vcmask 224256   ;;  %s2086_s1 = inlined_call_operand.vmem [shape: bf16[256,112], index: 1, kind: input, shape index: {}]   ;;  %s2087_s0 = inlined_call_operand.vmem [shape: bf16[2,16,256], index: 0, kind: input, shape index: {}]   ;;  %s2088_s3 = inlined_call_operand.vmem [shape: f32[1,256], index: 3, kind: input, shape index: {}]   ;;  %s2089_s4 = inlined_call_operand.vmem [shape: f32[1,256], index: 4, kind: input, shape index: {}]   ;;  %s2090_s2 = inlined_call_operand.vmem [shape: f32[4,28,16], index: 2, kind: input, shape index: {}]   ;;  %s2091_s5 = inlined_call_operand.vmem [shape: f32[2,28,28], index: 5, kind: output, shape index: {}]  }
   0x1   :  { %v1694_v0 = vld [vmem:[%s2086_s1 + $0x40] sm:$0xff]   ;;  %v1696_v2 = vld [vmem:[%s2086_s1 + $0x48] sm:$0xff]   ;;  %v1698_v4 = vld [vmem:[%s2086_s1 + $0x50] sm:$0xff]   ;;  %s1744_s17 = smov 72  }
   0x2   :  { %v1695_v1 = vld [vmem:[%s2086_s1] sm:$0xff]   ;;  %1433 = vmatprep.subr.bf16.mxu0 %v1694_v0  ;;  %v1697_v3 = vld [vmem:[%s2086_s1 + $0x8] sm:$0xff]   ;;  %v1699_v6 = vld [vmem:[%s2086_s1 + $0x10] sm:$0xff]   ;;  %v30_v8 = vshrl.u32 %v29_v5, 7 }
   0x3   :  { %1434 = vmatpush3.bf16.msra.mxu0 %v1695_v1  ;;  %v1700_v7 = vld [vmem:[%s2086_s1 + $0x58] sm:$0xff]   ;;  %v1702_v10 = vld [vmem:[%s2086_s1 + $0x60] sm:$0xff]   ;;  %v1704_v14 = vld [vmem:[%s2086_s1 + $0x68] sm:$0xff]  }
   0x4   :  { %1435 = vmatprep.subr.bf16.mxu0 %v1696_v2  ;;  %v1701_v9 = vld [vmem:[%s2086_s1 + $0x18] sm:$0xff]   ;;  %v31_v11 = vsub.s32 0, %v30_v8  ;;  %v1703_v12 = vld [vmem:[%s2086_s1 + $0x20] sm:$0xff]   ;;  %v1805_v13 = vsub.s32 1, %v30_v8  ;;  %v22_v16 = vld [vmem:[%s2087_s0 + $0x8] sm:$0xff] }
   0x5   :  { %v21_v15 = vld [vmem:[%s2087_s0] sm:$0xff]  ;;  %v1705_v18 = vld [vmem:[%s2086_s1 + $0x28] sm:$0xff]   ;;  %v25_v21 = vunpack.c.l.bf16 %v22_v16  ;;  %v26_v22 = vunpack.c.h.bf16 %v22_v16  ;;  %v1828_v24 = vld [vmem:[%s2087_s0 + $0x10] sm:$0xff] }
   0x6   :  { %v27_v17 = vld [vmem:[%s2088_s3] sm:$0x3]  ;;  %v23_v19 = vunpack.c.l.bf16 %v21_v15  ;;  %v24_v20 = vunpack.c.h.bf16 %v21_v15  ;;  %v1833_v25 = vld [vmem:[%s2087_s0 + $0x18] sm:$0xff]  ;;  %v1706_v26 = vld [vmem:[%s2086_s1 + $0x70] sm:$0xff]   ;;  %v683_v33 = vunpack.c.l.bf16 %v1828_v24 }
   0x7   :  { %1436 = vmatpush3.bf16.msra.mxu0 %v1697_v3  ;;  %v43_v23 = vld [vmem:[%s2089_s4] sm:$0x3]  ;;  %v32_v27 = vrot.slane %v27_v17, %v31_v11  ;;  %v36_v28 = vrot.slane %v27_v17, %v1805_v13  ;;  %v685_v34 = vunpack.c.l.bf16 %v1833_v25  ;;  %v1707_v41 = vld [vmem:[%s2086_s1 + $0x30] sm:$0xff]   ;;  %v1708_v50 = vld [vmem:[%s2086_s1 + $0x78] sm:$0xff]   ;;  %v684_v3 = vunpack.c.h.bf16 %v1828_v24 }
   0x8   :  { %1437 = vmatprep.subr.bf16.mxu0 %v1698_v4  ;;  %v48_v29 = vrot.slane %v43_v23, %v31_v11  ;;  %v52_v30 = vrot.slane %v43_v23, %v1805_v13  ;;  %v687_v31 = vld [vmem:[%s2088_s3] sm:$0x3]  ;;  %v1709_v53 = vld [vmem:[%s2086_s1 + $0x38] sm:$0xff]   ;;  %v686_v4 = vunpack.c.h.bf16 %v1833_v25  ;;  %v1879_v25 = vld [vmem:[%s2090_s2 + $0x30] sm:$0xff] }
   0x9   :  { %v703_v32 = vld [vmem:[%s2089_s4] sm:$0x3]  ;;  %v692_v35 = vrot.slane %v687_v31, %v31_v11  ;;  %v40_v37 = vmul.f32 %v36_v28, %v24_v20  ;;  %v42_v38 = vmul.f32 %v36_v28, %v26_v22  ;;  %v39_v39 = vmul.f32 %v32_v27, %v23_v19  ;;  %v1358_v28 = vld [vmem:[%s2090_s2 + $0x38] sm:$0xf] }
   0xa   :  { %v708_v36 = vrot.slane %v703_v32, %v31_v11  ;;  %v41_v40 = vmul.f32 %v32_v27, %v25_v21  ;;  %v1355_v60 = vld [vmem:[%s2090_s2 + $0x20] sm:$0xff]  ;;  %v696_v5 = vrot.slane %v687_v31, %v1805_v13  ;;  %v712_v8 = vrot.slane %v703_v32, %v1805_v13  ;;  %v1874_v13 = vld [vmem:[%s2090_s2 + $0x28] sm:$0xff] }
   0xb   :  { %1438 = vmatpush3.bf16.msra.mxu0 %v1699_v6  ;;  %v699_v42 = vmul.f32 %v692_v35, %v683_v33  ;;  %v701_v43 = vmul.f32 %v692_v35, %v685_v34  ;;  %v56_v44 = vadd.f32 %v52_v30, %v40_v37  ;;  %v58_v45 = vadd.f32 %v52_v30, %v42_v38  ;;  %v1899_v32 = vld [vmem:[%s2090_s2 + $0x8] sm:$0xff]  ;;  %v1904_v33 = vld [vmem:[%s2090_s2 + $0x10] sm:$0xff]  ;;  %v237_v35 = vld [vmem:[%s2090_s2 + $0x18] sm:$0xf] }
   0xc   :  { %1439 = vmatprep.subr.bf16.mxu0 %v1700_v7  ;;  %v55_v46 = vadd.f32 %v48_v29, %v39_v39  ;;  %v57_v47 = vadd.f32 %v48_v29, %v41_v40  ;;  %1529 = vmatprep.mubr.msk.f32.mxu1 %vm251_vm0, %v1355_v60  ;;  %v700_v6 = vmul.f32 %v696_v5, %v684_v3  ;;  %v1891_v29 = vld [vmem:[%s2090_s2] sm:$0xff]  ;;  %v1924_v37 = vld [vmem:[%s2090_s2 + $0x48] sm:$0xff]  ;;  %v1929_v38 = vld [vmem:[%s2090_s2 + $0x50] sm:$0xff] }
   0xd   :  { %v715_v48 = vadd.f32 %v708_v36, %v699_v42  ;;  %v717_v49 = vadd.f32 %v708_v36, %v701_v43  ;;  %v60_v51 = vmax.f32 %v56_v44, 0.0  ;;  %v62_v52 = vmax.f32 %v58_v45, 0.0  ;;  %v1916_v36 = vld [vmem:[%s2090_s2 + $0x40] sm:$0xff]  ;;  %v1370_v40 = vld [vmem:[%s2090_s2 + $0x58] sm:$0xf]  ;;  %v1952_v42 = vld [vmem:[%s2090_s2 + $0x68] sm:$0xff] }
   0xe   :  { %v59_v54 = vmax.f32 %v55_v46, 0.0  ;;  %v61_v55 = vmax.f32 %v57_v47, 0.0  ;;  %v702_v7 = vmul.f32 %v696_v5, %v686_v4  ;;  %v716_v11 = vadd.f32 %v712_v8, %v700_v6  ;;  %v1710_v39 = vld [vmem:[%s2086_s1 + $0x40] sm:$0xff]   ;;  %v1960_v44 = vld [vmem:[%s2090_s2 + $0x70] sm:$0xff]  ;;  %v1712_v45 = vld [vmem:[%s2086_s1 + $0x48] sm:$0xff]  }
   0xf   :  { %1440 = vmatpush3.bf16.msra.mxu0 %v1701_v9  ;;  %v64_v56 = vpack.c.bf16 %v62_v52, %v60_v51  ;;  %v719_v9 = vmax.f32 %v715_v48, 0.0  ;;  %v1711_v43 = vld [vmem:[%s2086_s1] sm:$0xff]   ;;  %v1378_v46 = vld [vmem:[%s2090_s2 + $0x78] sm:$0xf]  ;;  %v1713_v47 = vld [vmem:[%s2086_s1 + $0x8] sm:$0xff]  }
  0x10   :  { %1441 = vmatprep.subr.bf16.mxu0 %v1702_v10  ;;  %v63_v57 = vpack.c.bf16 %v61_v55, %v59_v54  ;;  %v721_v10 = vmax.f32 %v717_v49, 0.0  ;;  %v1714_v48 = vld [vmem:[%s2086_s1 + $0x50] sm:$0xff]   ;;  %v1717_v51 = vld [vmem:[%s2086_s1 + $0x18] sm:$0xff]   ;;  %v1718_v52 = vld [vmem:[%s2086_s1 + $0x60] sm:$0xff]  }
  0x11   :  { %225 = vmatprep.mubr.bf16.mxu0 %v64_v56  ;;  %v1715_v49 = vld [vmem:[%s2086_s1 + $0x10] sm:$0xff]   ;;  %v1720_v54 = vld [vmem:[%s2086_s1 + $0x68] sm:$0xff]  }
  0x12   :  { %v1869_v17 = vpack.c.bf16 %v721_v10, %v719_v9  ;;  %v1721_v55 = vld [vmem:[%s2086_s1 + $0x28] sm:$0xff]   ;;  %v1722_v56 = vld [vmem:[%s2086_s1 + $0x70] sm:$0xff]  }
  0x13   :  { %1442 = vmatpush3.bf16.msra.mxu0 %v1703_v12  ;;  %v718_v12 = vadd.f32 %v712_v8, %v702_v7 }
  0x14   :  { %1443 = vmatprep.subr.bf16.mxu0 %v1704_v14  ;;  %v720_v14 = vmax.f32 %v716_v11, 0.0 }
  0x15   :  { %v722_v15 = vmax.f32 %v718_v12, 0.0 }
  0x17   :  { %1444 = vmatpush3.bf16.msra.mxu0 %v1705_v18  ;;  %v724_v16 = vpack.c.bf16 %v722_v15, %v720_v14 }
  0x18   :  { %1445 = vmatprep.subr.bf16.mxu0 %v1706_v26 }
  0x1b   :  { %1446 = vmatpush3.bf16.msra.mxu0 %v1707_v41  ;;  %v1944_v41 = vld [vmem:[%s2090_s2 + $0x60] sm:$0xff] }
  0x1c   :  { %1447 = vmatprep.subr.bf16.mxu0 %v1708_v50  ;;  %v1716_v50 = vld [vmem:[%s2086_s1 + $0x58] sm:$0xff]  }
  0x1f   :  { %1448 = vmatpush3.bf16.msra.mxu0 %v1709_v53  ;;  %v1719_v53 = vld [vmem:[%s2086_s1 + $0x20] sm:$0xff]  }
  0x22   :  { %226 = vmatmul.mubr.bf16.vlgmr.msra.gmra.mrb[0].mxu0 %v63_v57  ;;  %v1723_v57 = vld [vmem:[%s2086_s1 + $0x30] sm:$0xff]  }
  0x23   :  { %1569 = vmatprep.mubr.msk.f32.mxu0 %vm251_vm0, %v1355_v60 }
  0xf5   :  { %v1449_v58 = vpop.f32.mrb[0].mxu0 }
  0xf6   :  { %v1450_v59 = vpop.f32.mrb[1].mxu0 }
  0xf7   :  { %v1451_v61 = vadd.f32 %v1450_v59, %v1449_v58  ;;  %v1452_v62 = vpop.f32.mrb[2].mxu0  ;;  %v1724_v58 = vld [vmem:[%s2086_s1 + $0x78] sm:$0xff]  }
  0xf8   :  { %v1453_v63 = vpop.f32.mrb[3].mxu0  ;;  %v1725_v59 = vld [vmem:[%s2086_s1 + $0x38] sm:$0xff]  }
  0xf9   :  { %v1454_v0 = vadd.f32 %v1453_v63, %v1452_v62 }
  0xfb   :  { %v1674_v1 = vpack.i.bf16 %v1454_v0, %v1451_v61  ;;  %v1609_v2 = vpack.c.bf16 %v1454_v0, %v1451_v61 }
  0xfd   :  { %1675 = vrot.lane.b32.xlu1 %v1674_v1, %s1742_s15  ;;  %1665 = vrot.lane.b32.xlu0 %v1674_v1, %s1743_s16 }
 0x101   :  { %1670 = vrot.lane.b32.xlu0 %v1674_v1, %s1744_s17 }
 0x16f   :  { %v1666_v18 = vpop.permute.xlu0 %1665  ;;  %v1676_v27 = vpop.permute.xlu1 %1675 }
 0x170   :  { %v1668_v19 = vunpack.i.h.bf16 %v1666_v18  ;;  %v1667_v20 = vunpack.i.l.bf16 %v1666_v18  ;;  %v1678_v30 = vunpack.i.h.bf16 %v1676_v27  ;;  %v1677_v31 = vunpack.i.l.bf16 %v1676_v27  ;;  %v1424_v27 = vld [vmem:[%s2090_s2 + $0x78] sm:$0xf] }
 0x172   :  { %v1605_v21 = vpack.c.bf16 %v1668_v19, %v1667_v20  ;;  %v1617_v34 = vpack.c.bf16 %v1678_v30, %v1677_v31 }
 0x173   :  { %v1671_v22 = vpop.permute.xlu0 %1670 }
 0x174   :  { %v1673_v23 = vunpack.i.h.bf16 %v1671_v22  ;;  %v1672_v24 = vunpack.i.l.bf16 %v1671_v22  ;;  %1606 = vmatprep.subr.bf16.mxu1 %v1605_v21  ;;  %v1404_v22 = vld [vmem:[%s2090_s2 + $0x38] sm:$0xf] }
 0x175   :  { %1608 = vmatpush3.bf16.msra.mxu1 %v1605_v21 }
 0x176   :  { %1610 = vmatprep.subr.bf16.mxu1 %v1609_v2  ;;  %v1613_v26 = vpack.c.bf16 %v1673_v23, %v1672_v24 }
 0x178   :  { %1530 = vmatmul.mubr.msk.f32.vlgmr.msra.gmra.mrb[0].mxu1 %vm251_vm0, %v1874_v13 }
 0x179   :  { %1612 = vmatpush3.bf16.msra.mxu1 %v1609_v2  ;;  %1532 = vmatprep.mubr.msk.f32.mxu1 %vm251_vm0, %v1879_v25 }
 0x17a   :  { %1614 = vmatprep.subr.bf16.mxu1 %v1613_v26 }
 0x17c   :  { %1533 = vmatmul.mubr.msk.f32.gmra.mrb[2].mxu1 %vm251_vm0, %v1358_v28 }
 0x17d   :  { %1539 = vmatprep.mubr.msk.f32.mxu1 %vm251_vm0, %v1891_v29 }
 0x180   :  { %1540 = vmatmul.mubr.msk.f32.vlgmr.msra.gmra.mrb[0].mxu1 %vm251_vm0, %v1899_v32 }
 0x181   :  { %1616 = vmatpush3.bf16.msra.mxu1 %v1613_v26  ;;  %1542 = vmatprep.mubr.msk.f32.mxu1 %vm251_vm0, %v1904_v33 }
 0x182   :  { %1618 = vmatprep.subr.bf16.mxu1 %v1617_v34 }
 0x184   :  { %1543 = vmatmul.mubr.msk.f32.gmra.mrb[2].mxu1 %vm251_vm0, %v237_v35 }
 0x185   :  { %1549 = vmatprep.mubr.msk.f32.mxu1 %vm251_vm0, %v1916_v36 }
 0x188   :  { %1550 = vmatmul.mubr.msk.f32.vlgmr.msra.gmra.mrb[0].mxu1 %vm251_vm0, %v1924_v37 }
 0x189   :  { %1620 = vmatpush3.bf16.msra.mxu1 %v1617_v34  ;;  %1552 = vmatprep.mubr.msk.f32.mxu1 %vm251_vm0, %v1929_v38 }
 0x18a   :  { %1479 = vmatprep.subr.bf16.mxu1 %v1710_v39 }
 0x18c   :  { %1553 = vmatmul.mubr.msk.f32.gmra.mrb[2].mxu1 %vm251_vm0, %v1370_v40 }
 0x18d   :  { %1559 = vmatprep.mubr.msk.f32.mxu1 %vm251_vm0, %v1944_v41 }
 0x190   :  { %1560 = vmatmul.mubr.msk.f32.vlgmr.msra.gmra.mrb[0].mxu1 %vm251_vm0, %v1952_v42 }
 0x191   :  { %1480 = vmatpush3.bf16.msra.mxu1 %v1711_v43  ;;  %1562 = vmatprep.mubr.msk.f32.mxu1 %vm251_vm0, %v1960_v44 }
 0x192   :  { %1481 = vmatprep.subr.bf16.mxu1 %v1712_v45 }
 0x194   :  { %1563 = vmatmul.mubr.msk.f32.gmra.mrb[2].mxu1 %vm251_vm0, %v1378_v46 }
 0x195   :  { %1482 = vmatpush3.bf16.msra.mxu1 %v1713_v47  ;;  %885 = vmatprep.mubr.bf16.mxu1 %v724_v16 }
 0x196   :  { %1483 = vmatprep.subr.bf16.mxu1 %v1714_v48 }
 0x199   :  { %1484 = vmatpush3.bf16.msra.mxu1 %v1715_v49 }
 0x19a   :  { %1485 = vmatprep.subr.bf16.mxu1 %v1716_v50 }
 0x19d   :  { %1486 = vmatpush3.bf16.msra.mxu1 %v1717_v51 }
 0x19e   :  { %1487 = vmatprep.subr.bf16.mxu1 %v1718_v52 }
 0x1a1   :  { %1488 = vmatpush3.bf16.msra.mxu1 %v1719_v53 }
 0x1a2   :  { %1489 = vmatprep.subr.bf16.mxu1 %v1720_v54 }
 0x1a5   :  { %1490 = vmatpush3.bf16.msra.mxu1 %v1721_v55 }
 0x1a6   :  { %1491 = vmatprep.subr.bf16.mxu1 %v1722_v56 }
 0x1a9   :  { %1492 = vmatpush3.bf16.msra.mxu1 %v1723_v57 }
 0x1aa   :  { %1493 = vmatprep.subr.bf16.mxu1 %v1724_v58 }
 0x1ad   :  { %1494 = vmatpush3.bf16.msra.mxu1 %v1725_v59 }
 0x1b0   :  { %886 = vmatmul.mubr.bf16.vlgmr.msra.gmra.mrb[4].mxu1 %v1869_v17 }
 0x263   :  { %v1561_v60 = vpop.f32.mrb[0].mxu1 }
 0x264   :  { %1726 = vtanh.f32 %v1561_v60  ;;  %v647_v61 = vpop.f32.mrb[1].mxu1 }
 0x265   :  { %1728 = vtanh.f32 %v647_v61 }
 0x267   :  { %v1564_v62 = vpop.f32.mrb[2].mxu1 }
 0x268   :  { %1730 = vtanh.f32 %v1564_v62  ;;  %v657_v63 = vpop.f32.mrb[3].mxu1 }
 0x269   :  { %1732 = vtanh.f32 %v657_v63 }
 0x26e   :  { %v1727_v0 = vpop.eup %1726 }
 0x26f   :  { %v1729_v1 = vpop.eup %1728  ;;  %676 = vst.msk [vmem:[%s2091_s5 + $0x8] sm:$0xff] %vm674_vm1, %v1727_v0 }
 0x270   :  { %675 = vst.msk [vmem:[%s2091_s5] sm:$0xff] %vm674_vm1, %v1729_v1 }
 0x272   :  { %v1731_v2 = vpop.eup %1730 }
 0x273   :  { %v1733_v3 = vpop.eup %1732  ;;  %679 = vst.msk [vmem:[%s2091_s5 + $0x18] sm:$0xf] %vm678_vm2, %v1731_v2 }
 0x274   :  { %677 = vst.msk [vmem:[%s2091_s5 + $0x10] sm:$0xff] %vm674_vm1, %v1733_v3 }
 0x283   :  { %v1495_v4 = vpop.f32.mrb[4].mxu1 }
 0x284   :  { %v1496_v5 = vpop.f32.mrb[5].mxu1 }
 0x285   :  { %v1497_v6 = vadd.f32 %v1496_v5, %v1495_v4  ;;  %v1498_v7 = vpop.f32.mrb[6].mxu1 }
 0x286   :  { %v1499_v8 = vpop.f32.mrb[7].mxu1 }
 0x287   :  { %v1500_v9 = vadd.f32 %v1499_v8, %v1498_v7 }
 0x289   :  { %v1684_v10 = vpack.i.bf16 %v1500_v9, %v1497_v6  ;;  %v1625_v11 = vpack.c.bf16 %v1500_v9, %v1497_v6 }
 0x28b   :  { %1685 = vrot.lane.b32.xlu0 %v1684_v10, %s1744_s17  ;;  %1680 = vrot.lane.b32.xlu1 %v1684_v10, %s1743_s16 }
 0x28f   :  { %1690 = vrot.lane.b32.xlu1 %v1684_v10, %s1742_s15 }
 0x2fd   :  { %v1681_v12 = vpop.permute.xlu1 %1680  ;;  %v1686_v16 = vpop.permute.xlu0 %1685 }
 0x2fe   :  { %v1683_v14 = vunpack.i.h.bf16 %v1681_v12  ;;  %v1682_v15 = vunpack.i.l.bf16 %v1681_v12  ;;  %v1688_v18 = vunpack.i.h.bf16 %v1686_v16  ;;  %v1687_v19 = vunpack.i.l.bf16 %v1686_v16 }
 0x300   :  { %v1621_v17 = vpack.c.bf16 %v1683_v14, %v1682_v15  ;;  %v1629_v20 = vpack.c.bf16 %v1688_v18, %v1687_v19 }
 0x301   :  { %v1691_v21 = vpop.permute.xlu1 %1690 }
 0x302   :  { %1622 = vmatprep.subr.bf16.mxu0 %v1621_v17  ;;  %v1693_v23 = vunpack.i.h.bf16 %v1691_v21  ;;  %v1692_v24 = vunpack.i.l.bf16 %v1691_v21 }
 0x303   :  { %1624 = vmatpush3.bf16.msra.mxu0 %v1621_v17 }
 0x304   :  { %1626 = vmatprep.subr.bf16.mxu0 %v1625_v11  ;;  %v1633_v26 = vpack.c.bf16 %v1693_v23, %v1692_v24 }
 0x306   :  { %1570 = vmatmul.mubr.msk.f32.vlgmr.msra.gmra.mrb[4].mxu0 %vm251_vm0, %v1874_v13  ;;  %v897_v13 = vld [vmem:[%s2090_s2 + $0x18] sm:$0xf] }
 0x307   :  { %1628 = vmatpush3.bf16.msra.mxu0 %v1625_v11  ;;  %1572 = vmatprep.mubr.msk.f32.mxu0 %vm251_vm0, %v1879_v25  ;;  %v1416_v25 = vld [vmem:[%s2090_s2 + $0x58] sm:$0xf] }
 0x308   :  { %1630 = vmatprep.subr.bf16.mxu0 %v1629_v20 }
 0x30a   :  { %1573 = vmatmul.mubr.msk.f32.gmra.mrb[6].mxu0 %vm251_vm0, %v1404_v22 }
 0x30b   :  { %1579 = vmatprep.mubr.msk.f32.mxu0 %vm251_vm0, %v1891_v29 }
 0x30e   :  { %1580 = vmatmul.mubr.msk.f32.vlgmr.msra.gmra.mrb[4].mxu0 %vm251_vm0, %v1899_v32 }
 0x30f   :  { %1632 = vmatpush3.bf16.msra.mxu0 %v1629_v20  ;;  %1582 = vmatprep.mubr.msk.f32.mxu0 %vm251_vm0, %v1904_v33 }
 0x310   :  { %1634 = vmatprep.subr.bf16.mxu0 %v1633_v26 }
 0x312   :  { %1583 = vmatmul.mubr.msk.f32.gmra.mrb[6].mxu0 %vm251_vm0, %v897_v13 }
 0x313   :  { %1589 = vmatprep.mubr.msk.f32.mxu0 %vm251_vm0, %v1916_v36 }
 0x316   :  { %1590 = vmatmul.mubr.msk.f32.vlgmr.msra.gmra.mrb[4].mxu0 %vm251_vm0, %v1924_v37 }
 0x317   :  { %1636 = vmatpush3.bf16.msra.mxu0 %v1633_v26  ;;  %1592 = vmatprep.mubr.msk.f32.mxu0 %vm251_vm0, %v1929_v38 }
 0x31a   :  { %1593 = vmatmul.mubr.msk.f32.gmra.mrb[6].mxu0 %vm251_vm0, %v1416_v25 }
 0x31b   :  { %1599 = vmatprep.mubr.msk.f32.mxu0 %vm251_vm0, %v1944_v41 }
 0x31e   :  { %1600 = vmatmul.mubr.msk.f32.vlgmr.msra.gmra.mrb[4].mxu0 %vm251_vm0, %v1952_v42 }
 0x31f   :  { %1602 = vmatprep.mubr.msk.f32.mxu0 %vm251_vm0, %v1960_v44 }
 0x322   :  { %1603 = vmatmul.mubr.msk.f32.gmra.mrb[6].mxu0 %vm251_vm0, %v1424_v27 }
 0x3f1   :  { %v1601_v28 = vpop.f32.mrb[4].mxu0 }
 0x3f2   :  { %1734 = vtanh.f32 %v1601_v28  ;;  %v1303_v29 = vpop.f32.mrb[5].mxu0 }
 0x3f3   :  { %1736 = vtanh.f32 %v1303_v29 }
 0x3f5   :  { %v1604_v30 = vpop.f32.mrb[6].mxu0 }
 0x3f6   :  { %1738 = vtanh.f32 %v1604_v30  ;;  %v1313_v31 = vpop.f32.mrb[7].mxu0 }
 0x3f7   :  { %1740 = vtanh.f32 %v1313_v31 }
 0x3fc   :  { %v1735_v32 = vpop.eup %1734 }
 0x3fd   :  { %v1737_v33 = vpop.eup %1736  ;;  %1430 = vst.msk [vmem:[%s2091_s5 + $0x28] sm:$0xff] %vm674_vm1, %v1735_v32 }
 0x3fe   :  { %1429 = vst.msk [vmem:[%s2091_s5 + $0x20] sm:$0xff] %vm674_vm1, %v1737_v33 }
 0x400   :  { %v1739_v34 = vpop.eup %1738 }
 0x401   :  { %v1741_v35 = vpop.eup %1740  ;;  %1432 = vst.msk [vmem:[%s2091_s5 + $0x38] sm:$0xf] %vm678_vm2, %v1739_v34 }
 0x402   :  { %1431 = vst.msk [vmem:[%s2091_s5 + $0x30] sm:$0xff] %vm674_vm1, %v1741_v35 }

// kernel: generator_forward.5
= control target key start
LH: loop header
LB: loop body
LE: loop exit
PB: predicated region body
PF: predicated region fallthrough
CT: control target
= control target key end

     0   :  { %13 = vsyncpa [#allocation3], 0  ;;  %s3098_s24 = smov [#allocation2]   ;;  %s3806_s0 = inlined_call_operand.vmem [shape: bf16[2,4,256], index: 0, kind: input, shape index: {}]   ;;  %s3807_s1 = inlined_call_operand.hbm [shape: bf16[256,1024], index: 1, kind: input, shape index: {}]   ;;  %s3808_s2 = inlined_call_operand.vmem [shape: f32[4,8,4], index: 2, kind: input, shape index: {}]   ;;  %s3809_s3 = inlined_call_operand.vmem [shape: f32[1,256], index: 3, kind: input, shape index: {}]   ;;  %s3810_s4 = inlined_call_operand.vmem [shape: f32[1,256], index: 4, kind: input, shape index: {}]   ;;  %s3811_s5 = inlined_call_operand.vmem [shape: bf16[2,8,256], index: 5, kind: output, shape index: {0}]   ;;  %s3812_s6 = inlined_call_operand.vmem [shape: f32[1,1,256], index: 6, kind: output, shape index: {1}]   ;;  %s3813_s7 = inlined_call_operand.vmem [shape: f32[1,1,256], index: 7, kind: output, shape index: {2}]  }
   0x1   :  { %s21_s25 = sshll.u32 %s3098_s24, 4  ;;  %s3074_s28 = scalar_lea.hbm %s3807_s1, 16384  ;;  %s22_s25 = int_to_ptr.vmem [resolvable:$true] %s21_s25 }
   0x2   :  { %p3075_p0 = scmp.ne.s32.totalorder %s3807_s1, %s3074_s28  ;;  %p3078_p1 = scmp.lt.u32.totalorder %s3074_s28, %s3807_s1 }
   0x4   :  { %p3080_p2 = pnand %p3078_p1, %p3075_p0 }
   0x6   :  { %3083 = shalt.err (!%p3080_p2)
}
   0x7   :  { %s3084_s10 = scalar_lea.vmem %s22_s25, 16384  ;;  %p3089_p4 = scmp.lt.s32.totalorder %s22_s25, %s22_s25 }
   0x8   :  { %p3085_p3 = scmp.ne.s32.totalorder %s22_s25, %s3084_s10  ;;  %p3090_p5 = scmp.lt.s32.totalorder %s3084_s10, %s3084_s10 }
   0xa   :  { %p3091_p6 = por %p3090_p5, %p3089_p4 }
   0xc   :  { %p3092_p7 = pnand %p3091_p6, %p3085_p3 }
   0xe   :  { %3095 = shalt.err (!%p3092_p7)
}
   0xf   :  { %s3099_s11 = smov 512   ;;  %s3100_s12 = smov 32  }
  0x10   :  { %27 = dma.hbm_to_vmem [thread:$0]  %s3807_s1, 16384, %s22_s25, [#allocation3], %s3099_s11, %s3099_s11, %s3100_s12  }
  0x11   :  { %3096 = dma.done.wait [#allocation3], 16384  }
  0x12   :  { %3097 = vsyncadd [#allocation3], 4294950912  ;;  %v71_v0 = vld [vmem:[#allocation2] sm:$0xff]  ;;  %v72_v2 = vld [vmem:[#allocation2 + $0x8] sm:$0xff]  ;;  %v3814_v32 = vlaneseq  ;;  %vm1010_vm0 = vcmask 1043456   ;;  %vm1006_vm1 = vcmask 31744  }
  0x13   :  { %v75_v1 = vld [vmem:[#allocation2 + $0x20] sm:$0xff]  ;;  %v76_v4 = vld [vmem:[#allocation2 + $0x28] sm:$0xff] }
  0x14   :  { %v3155_v3 = vcombine.high %v71_v0, %v75_v1  ;;  %v3157_v5 = vcombine.low %v71_v0, %v75_v1  ;;  %v79_v6 = vld [vmem:[#allocation2 + $0x40] sm:$0xff]  ;;  %v3159_v8 = vcombine.high %v72_v2, %v76_v4  ;;  %v3161_v9 = vcombine.low %v72_v2, %v76_v4  ;;  %v80_v11 = vld [vmem:[#allocation2 + $0x48] sm:$0xff] }
  0x15   :  { %v83_v7 = vld [vmem:[#allocation2 + $0x60] sm:$0xff]  ;;  %v84_v12 = vld [vmem:[#allocation2 + $0x68] sm:$0xff]  ;;  %v3206_v41 = vshrl.u32 %v3814_v32, 7 }
  0x16   :  { %3890 = vst [vmem:[#allocation5_spill] sm:$0xff] %v3159_v8  ;;  %3891 = vst [vmem:[#allocation6_spill] sm:$0xff] %v3161_v9  ;;  %v3163_v10 = vcombine.high %v79_v6, %v83_v7  ;;  %v87_v13 = vld [vmem:[#allocation2 + $0x80] sm:$0xff]  ;;  %839 = vmatprep.subr.bf16.mxu0 %v3155_v3  ;;  %v3166_v14 = vcombine.high %v80_v11, %v84_v12  ;;  %v88_v16 = vld [vmem:[#allocation2 + $0x88] sm:$0xff]  ;;  %880 = vmatprep.subr.bf16.mxu1 %v3159_v8 }
  0x17   :  { %v91_v15 = vld [vmem:[#allocation2 + $0xa0] sm:$0xff]  ;;  %v92_v17 = vld [vmem:[#allocation2 + $0xa8] sm:$0xff]  ;;  %840 = vmatpush1.bf16.msra.mxu0 %v3157_v5  ;;  %v3170_v18 = vcombine.low %v79_v6, %v83_v7  ;;  %881 = vmatpush1.bf16.msra.mxu1 %v3161_v9  ;;  %v3174_v19 = vcombine.low %v80_v11, %v84_v12  ;;  %3899 = vst [vmem:[#allocation14_spill] sm:$0xff] %v3206_v41  ;;  %v3221_v50 = vsub.s32 0, %v3206_v41  ;;  %v3224_v53 = vsub.s32 1, %v3206_v41  ;;  %v130_v9 = vld [vmem:[#allocation2 + $0x1d8] sm:$0xff] }
  0x18   :  { %3892 = vst [vmem:[#allocation7_spill] sm:$0xff] %v3166_v14  ;;  %841 = vmatprep.subr.bf16.mxu0 %v3163_v10  ;;  %v3176_v20 = vcombine.high %v87_v13, %v91_v15  ;;  %882 = vmatprep.subr.bf16.mxu1 %v3166_v14  ;;  %v3179_v21 = vcombine.high %v88_v16, %v92_v17  ;;  %v95_v22 = vld [vmem:[#allocation2 + $0xc0] sm:$0xff]  ;;  %v96_v24 = vld [vmem:[#allocation2 + $0xc8] sm:$0xff]  ;;  %v126_v14 = vld [vmem:[#allocation2 + $0x1b8] sm:$0xff] }
  0x19   :  { %3893 = vst [vmem:[#allocation8_spill] sm:$0xff] %v3174_v19  ;;  %v99_v23 = vld [vmem:[#allocation2 + $0xe0] sm:$0xff]  ;;  %v100_v25 = vld [vmem:[#allocation2 + $0xe8] sm:$0xff]  ;;  %v3182_v26 = vcombine.low %v87_v13, %v91_v15  ;;  %v3186_v27 = vcombine.low %v88_v16, %v92_v17  ;;  %v134_v8 = vld [vmem:[#allocation2 + $0x1f8] sm:$0xff] }
  0x1a   :  { %3894 = vst [vmem:[#allocation9_spill] sm:$0xff] %v3179_v21  ;;  %v3188_v28 = vcombine.high %v95_v22, %v99_v23  ;;  %v3191_v29 = vcombine.high %v96_v24, %v100_v25  ;;  %v103_v30 = vld [vmem:[#allocation2 + $0x100] sm:$0xff]  ;;  %v104_v33 = vld [vmem:[#allocation2 + $0x108] sm:$0xff]  ;;  %v3194_v35 = vcombine.low %v95_v22, %v99_v23  ;;  %v3198_v36 = vcombine.low %v96_v24, %v100_v25 }
  0x1b   :  { %842 = vmatpush1.bf16.msra.mxu0 %v3170_v18  ;;  %883 = vmatpush1.bf16.msra.mxu1 %v3174_v19  ;;  %3895 = vst [vmem:[#allocation10_spill] sm:$0xff] %v3186_v27  ;;  %v107_v31 = vld [vmem:[#allocation2 + $0x120] sm:$0xff]  ;;  %v108_v34 = vld [vmem:[#allocation2 + $0x128] sm:$0xff]  ;;  %v122_v19 = vld [vmem:[#allocation2 + $0x198] sm:$0xff] }
  0x1c   :  { %843 = vmatprep.subr.bf16.mxu0 %v3176_v20  ;;  %884 = vmatprep.subr.bf16.mxu1 %v3179_v21  ;;  %3896 = vst [vmem:[#allocation11_spill] sm:$0xff] %v3191_v29  ;;  %3897 = vst [vmem:[#allocation12_spill] sm:$0xff] %v3198_v36  ;;  %v3200_v37 = vcombine.high %v103_v30, %v107_v31  ;;  %v3203_v38 = vcombine.high %v104_v33, %v108_v34  ;;  %v111_v39 = vld [vmem:[#allocation2 + $0x140] sm:$0xff]  ;;  %v112_v42 = vld [vmem:[#allocation2 + $0x148] sm:$0xff] }
  0x1d   :  { %v115_v40 = vld [vmem:[#allocation2 + $0x160] sm:$0xff]  ;;  %v116_v43 = vld [vmem:[#allocation2 + $0x168] sm:$0xff]  ;;  %v3209_v44 = vcombine.low %v103_v30, %v107_v31  ;;  %v3213_v45 = vcombine.low %v104_v33, %v108_v34  ;;  %v118_v21 = vld [vmem:[#allocation2 + $0x178] sm:$0xff] }
  0x1e   :  { %3898 = vst [vmem:[#allocation13_spill] sm:$0xff] %v3203_v38  ;;  %v3215_v46 = vcombine.high %v111_v39, %v115_v40  ;;  %v3218_v47 = vcombine.high %v112_v42, %v116_v43  ;;  %v119_v48 = vld [vmem:[#allocation2 + $0x180] sm:$0xff]  ;;  %v120_v51 = vld [vmem:[#allocation2 + $0x188] sm:$0xff]  ;;  %v3227_v54 = vcombine.low %v111_v39, %v115_v40  ;;  %v3231_v55 = vcombine.low %v112_v42, %v116_v43 }
  0x1f   :  { %844 = vmatpush1.bf16.msra.mxu0 %v3182_v26  ;;  %885 = vmatpush1.bf16.msra.mxu1 %v3186_v27  ;;  %3900 = vst [vmem:[#allocation15_spill] sm:$0xff] %v3213_v45  ;;  %v123_v49 = vld [vmem:[#allocation2 + $0x1a0] sm:$0xff]  ;;  %v124_v52 = vld [vmem:[#allocation2 + $0x1a8] sm:$0xff]  ;;  %v114_v27 = vld [vmem:[#allocation2 + $0x158] sm:$0xff] }
  0x20   :  { %845 = vmatprep.subr.bf16.mxu0 %v3188_v28  ;;  %886 = vmatprep.subr.bf16.mxu1 %v3191_v29  ;;  %3901 = vst [vmem:[#allocation16_spill] sm:$0xff] %v3218_v47  ;;  %3902 = vst [vmem:[#allocation17_spill] sm:$0xff] %v3231_v55  ;;  %v3233_v56 = vcombine.high %v119_v48, %v123_v49  ;;  %v37_v57 = vld [vmem:[%s3806_s0] sm:$0xf]  ;;  %v3242_v59 = vcombine.high %v120_v51, %v124_v52  ;;  %v128_v0 = vld [vmem:[#allocation2 + $0x1c8] sm:$0xff] }
  0x21   :  { %v39_v58 = vld [vmem:[%s3809_s3] sm:$0x3]  ;;  %v132_v1 = vld [vmem:[#allocation2 + $0x1e8] sm:$0xff]  ;;  %v38_v2 = vunpack.c.l.bf16 %v37_v57  ;;  %v3252_v11 = vcombine.low %v119_v48, %v123_v49  ;;  %v3254_v12 = vcombine.low %v120_v51, %v124_v52  ;;  %v106_v29 = vld [vmem:[#allocation2 + $0x118] sm:$0xff] }
  0x22   :  { %3903 = vst [vmem:[#allocation18_spill] sm:$0xff] %v3242_v59  ;;  %v127_v60 = vld [vmem:[#allocation2 + $0x1c0] sm:$0xff]  ;;  %v44_v62 = vrot.slane %v39_v58, %v3221_v50  ;;  %v48_v4 = vrot.slane %v39_v58, %v3224_v53  ;;  %v3261_v17 = vcombine.high %v128_v0, %v132_v1  ;;  %v136_v24 = vld [vmem:[#allocation2 + $0x208] sm:$0xff]  ;;  %v3268_v33 = vcombine.low %v128_v0, %v132_v1 }
  0x23   :  { %846 = vmatpush1.bf16.msra.mxu0 %v3194_v35  ;;  %887 = vmatpush1.bf16.msra.mxu1 %v3198_v36  ;;  %v131_v61 = vld [vmem:[#allocation2 + $0x1e0] sm:$0xff]  ;;  %3904 = vst [vmem:[#allocation19_spill] sm:$0xff] %v3254_v12  ;;  %v140_v25 = vld [vmem:[#allocation2 + $0x228] sm:$0xff]  ;;  %v102_v36 = vld [vmem:[#allocation2 + $0xf8] sm:$0xff] }
  0x24   :  { %847 = vmatprep.subr.bf16.mxu0 %v3200_v37  ;;  %888 = vmatprep.subr.bf16.mxu1 %v3203_v38  ;;  %v52_v63 = vld [vmem:[%s3810_s4] sm:$0x3]  ;;  %v3258_v13 = vcombine.high %v127_v60, %v131_v61  ;;  %v49_v15 = vcombine.low %v44_v62, %v48_v4  ;;  %3905 = vst [vmem:[#allocation20_spill] sm:$0xff] %v3261_v17  ;;  %3906 = vst [vmem:[#allocation21_spill] sm:$0xff] %v3268_v33  ;;  %v144_v48 = vld [vmem:[#allocation2 + $0x248] sm:$0xff] }
  0x25   :  { %v57_v6 = vrot.slane %v52_v63, %v3221_v50  ;;  %v61_v7 = vrot.slane %v52_v63, %v3224_v53  ;;  %v135_v22 = vld [vmem:[#allocation2 + $0x200] sm:$0xff]  ;;  %v3264_v31 = vcombine.low %v127_v60, %v131_v61  ;;  %v3273_v40 = vcombine.high %v136_v24, %v140_v25  ;;  %v148_v49 = vld [vmem:[#allocation2 + $0x268] sm:$0xff]  ;;  %v98_v38 = vld [vmem:[#allocation2 + $0xd8] sm:$0xff] }
  0x26   :  { %v139_v23 = vld [vmem:[#allocation2 + $0x220] sm:$0xff]  ;;  %v51_v30 = vmul.f32 %v49_v15, %v38_v2  ;;  %v3282_v57 = vcombine.low %v136_v24, %v140_v25  ;;  %v3289_v61 = vcombine.high %v144_v48, %v148_v49  ;;  %v152_v0 = vld [vmem:[#allocation2 + $0x288] sm:$0xff] }
  0x27   :  { %848 = vmatpush1.bf16.msra.mxu0 %v3209_v44  ;;  %889 = vmatpush1.bf16.msra.mxu1 %v3213_v45  ;;  %v62_v16 = vcombine.low %v57_v6, %v61_v7  ;;  %v3270_v34 = vcombine.high %v135_v22, %v139_v23  ;;  %3907 = vst [vmem:[#allocation22_spill] sm:$0xff] %v3273_v40  ;;  %v143_v42 = vld [vmem:[#allocation2 + $0x240] sm:$0xff]  ;;  %v156_v1 = vld [vmem:[#allocation2 + $0x2a8] sm:$0xff]  ;;  %v94_v45 = vld [vmem:[#allocation2 + $0xb8] sm:$0xff] }
  0x28   :  { %849 = vmatprep.subr.bf16.mxu0 %v3215_v46  ;;  %890 = vmatprep.subr.bf16.mxu1 %v3218_v47  ;;  %v147_v43 = vld [vmem:[#allocation2 + $0x260] sm:$0xff]  ;;  %v3278_v52 = vcombine.low %v135_v22, %v139_v23  ;;  %3908 = vst [vmem:[#allocation23_spill] sm:$0xff] %v3282_v57  ;;  %3909 = vst [vmem:[#allocation24_spill] sm:$0xff] %v3289_v61  ;;  %v3298_v6 = vcombine.low %v144_v48, %v148_v49  ;;  %v160_v23 = vld [vmem:[#allocation2 + $0x2c8] sm:$0xff] }
  0x29   :  { %v64_v39 = vadd.f32 %v62_v16, %v51_v30  ;;  %v3284_v58 = vcombine.high %v143_v42, %v147_v43  ;;  %v151_v62 = vld [vmem:[#allocation2 + $0x280] sm:$0xff]  ;;  %v3294_v4 = vcombine.low %v143_v42, %v147_v43  ;;  %v3303_v15 = vcombine.high %v152_v0, %v156_v1  ;;  %v164_v24 = vld [vmem:[#allocation2 + $0x2e8] sm:$0xff]  ;;  %v90_v47 = vld [vmem:[#allocation2 + $0x98] sm:$0xff] }
  0x2a   :  { %v155_v63 = vld [vmem:[#allocation2 + $0x2a0] sm:$0xff]  ;;  %3910 = vst [vmem:[#allocation25_spill] sm:$0xff] %v3298_v6  ;;  %v3312_v30 = vcombine.low %v152_v0, %v156_v1  ;;  %v3317_v42 = vcombine.high %v160_v23, %v164_v24  ;;  %v168_v49 = vld [vmem:[#allocation2 + $0x308] sm:$0xff] }
  0x2b   :  { %850 = vmatpush1.bf16.msra.mxu0 %v3227_v54  ;;  %891 = vmatpush1.bf16.msra.mxu1 %v3231_v55  ;;  %v3275_v51 = vmax.f32 %v64_v39, 0.0  ;;  %v3300_v7 = vcombine.high %v151_v62, %v155_v63  ;;  %3911 = vst [vmem:[#allocation26_spill] sm:$0xff] %v3303_v15  ;;  %v159_v16 = vld [vmem:[#allocation2 + $0x2c0] sm:$0xff]  ;;  %v3308_v25 = vcombine.low %v151_v62, %v155_v63  ;;  %v93_v55 = vld [vmem:[#allocation2 + $0xb0] sm:$0xff] }
  0x2c   :  { %851 = vmatprep.subr.bf16.mxu0 %v3233_v56  ;;  %892 = vmatprep.subr.bf16.mxu1 %v3242_v59  ;;  %v163_v22 = vld [vmem:[#allocation2 + $0x2e0] sm:$0xff]  ;;  %3912 = vst [vmem:[#allocation27_spill] sm:$0xff] %v3312_v30  ;;  %3913 = vst [vmem:[#allocation28_spill] sm:$0xff] %v3317_v42  ;;  %v3324_v63 = vcombine.low %v160_v23, %v164_v24 }
  0x2d   :  { %v67_v60 = vcombine.high %v3275_v51, %v3275_v51  ;;  %v3314_v39 = vcombine.high %v159_v16, %v163_v22  ;;  %v167_v43 = vld [vmem:[#allocation2 + $0x300] sm:$0xff]  ;;  %v3320_v62 = vcombine.low %v159_v16, %v163_v22  ;;  %v3381_v59 = vpack.c.bf16 %v3275_v51, %v3275_v51 }
  0x2e   :  { %v171_v48 = vld [vmem:[#allocation2 + $0x320] sm:$0xff]  ;;  %3914 = vst [vmem:[#allocation29_spill] sm:$0xff] %v3324_v63 }
  0x2f   :  { %852 = vmatpush1.bf16.msra.mxu0 %v3252_v11  ;;  %893 = vmatpush1.bf16.msra.mxu1 %v3254_v12  ;;  %v3291_v2 = vpack.c.bf16 %v67_v60, %v67_v60  ;;  %v172_v60 = vld [vmem:[#allocation2 + $0x328] sm:$0xff]  ;;  %v3326_v0 = vcombine.high %v167_v43, %v171_v48  ;;  %v175_v32 = vld [vmem:[#allocation2 + $0x340] sm:$0xff]  ;;  %v3332_v16 = vcombine.low %v167_v43, %v171_v48  ;;  %v78_v12 = vld [vmem:[#allocation2 + $0x38] sm:$0xff] }
  0x30   :  { %853 = vmatprep.subr.bf16.mxu0 %v3258_v13  ;;  %894 = vmatprep.subr.bf16.mxu1 %v3261_v17  ;;  %v3329_v1 = vcombine.high %v168_v49, %v172_v60  ;;  %v179_v41 = vld [vmem:[#allocation2 + $0x360] sm:$0xff]  ;;  %v3336_v22 = vcombine.low %v168_v49, %v172_v60  ;;  %v74_v17 = vld [vmem:[#allocation2 + $0x18] sm:$0xff] }
  0x31   :  { %871 = vmatprep.mubr.bf16.mxu0 %v3291_v2  ;;  %912 = vmatprep.mubr.bf16.mxu1 %v3291_v2  ;;  %v3338_v23 = vcombine.high %v175_v32, %v179_v41  ;;  %v3344_v43 = vcombine.low %v175_v32, %v179_v41 }
  0x32   :  { %3915 = vst [vmem:[#allocation30_spill] sm:$0xff] %v3329_v1  ;;  %3916 = vst [vmem:[#allocation31_spill] sm:$0xff] %v3336_v22 }
  0x33   :  { %854 = vmatpush1.bf16.msra.mxu0 %v3264_v31  ;;  %895 = vmatpush1.bf16.msra.mxu1 %v3268_v33  ;;  %v196_v33 = vld [vmem:[#allocation2 + $0x3e8] sm:$0xff] }
  0x34   :  { %855 = vmatprep.subr.bf16.mxu0 %v3270_v34  ;;  %896 = vmatprep.subr.bf16.mxu1 %v3273_v40  ;;  %v192_v40 = vld [vmem:[#allocation2 + $0x3c8] sm:$0xff] }
  0x37   :  { %856 = vmatpush1.bf16.msra.mxu0 %v3278_v52  ;;  %897 = vmatpush1.bf16.msra.mxu1 %v3282_v57  ;;  %v188_v57 = vld [vmem:[#allocation2 + $0x3a8] sm:$0xff] }
  0x38   :  { %857 = vmatprep.subr.bf16.mxu0 %v3284_v58  ;;  %898 = vmatprep.subr.bf16.mxu1 %v3289_v61  ;;  %v184_v61 = vld [vmem:[#allocation2 + $0x388] sm:$0xff] }
  0x39   :  { %v3353_v60 = vcombine.high %v184_v61, %v188_v57  ;;  %v3360_v41 = vcombine.low %v184_v61, %v188_v57  ;;  %v3372_v57 = vcombine.low %v192_v40, %v196_v33 }
  0x3b   :  { %858 = vmatpush1.bf16.msra.mxu0 %v3294_v4  ;;  %899 = vmatpush1.bf16.msra.mxu1 %v3298_v6  ;;  %v180_v6 = vld [vmem:[#allocation2 + $0x368] sm:$0xff]  ;;  %3919 = vst [vmem:[#allocation34_spill] sm:$0xff] %v3353_v60  ;;  %3920 = vst [vmem:[#allocation35_spill] sm:$0xff] %v3360_v41 }
  0x3c   :  { %859 = vmatprep.subr.bf16.mxu0 %v3300_v7  ;;  %900 = vmatprep.subr.bf16.mxu1 %v3303_v15  ;;  %v176_v15 = vld [vmem:[#allocation2 + $0x348] sm:$0xff]  ;;  %3922 = vst [vmem:[#allocation37_spill] sm:$0xff] %v3372_v57 }
  0x3d   :  { %v3341_v24 = vcombine.high %v176_v15, %v180_v6  ;;  %v3348_v48 = vcombine.low %v176_v15, %v180_v6  ;;  %v3365_v15 = vcombine.high %v192_v40, %v196_v33  ;;  %v3390_v40 = vcombine.low %v74_v17, %v78_v12 }
  0x3f   :  { %860 = vmatpush1.bf16.msra.mxu0 %v3308_v25  ;;  %901 = vmatpush1.bf16.msra.mxu1 %v3312_v30  ;;  %3917 = vst [vmem:[#allocation32_spill] sm:$0xff] %v3341_v24  ;;  %v187_v30 = vld [vmem:[#allocation2 + $0x3a0] sm:$0xff]  ;;  %3918 = vst [vmem:[#allocation33_spill] sm:$0xff] %v3348_v48 }
  0x40   :  { %861 = vmatprep.subr.bf16.mxu0 %v3314_v39  ;;  %902 = vmatprep.subr.bf16.mxu1 %v3317_v42  ;;  %v183_v42 = vld [vmem:[#allocation2 + $0x380] sm:$0xff]  ;;  %3921 = vst [vmem:[#allocation36_spill] sm:$0xff] %v3365_v15  ;;  %3924 = vst [vmem:[#allocation39_spill] sm:$0xff] %v3390_v40 }
  0x41   :  { %v3350_v49 = vcombine.high %v183_v42, %v187_v30  ;;  %v3356_v32 = vcombine.low %v183_v42, %v187_v30  ;;  %v81_v42 = vld [vmem:[#allocation2 + $0x50] sm:$0xff] }
  0x43   :  { %862 = vmatpush1.bf16.msra.mxu0 %v3320_v62  ;;  %903 = vmatpush1.bf16.msra.mxu1 %v3324_v63  ;;  %v195_v63 = vld [vmem:[#allocation2 + $0x3e0] sm:$0xff] }
  0x44   :  { %863 = vmatprep.subr.bf16.mxu0 %v3326_v0  ;;  %904 = vmatprep.subr.bf16.mxu1 %v3329_v1  ;;  %v191_v1 = vld [vmem:[#allocation2 + $0x3c0] sm:$0xff] }
  0x45   :  { %v3362_v6 = vcombine.high %v191_v1, %v195_v63  ;;  %v3368_v30 = vcombine.low %v191_v1, %v195_v63  ;;  %v82_v63 = vld [vmem:[#allocation2 + $0x58] sm:$0xff] }
  0x46   :  { %v86_v1 = vld [vmem:[#allocation2 + $0x78] sm:$0xff] }
  0x47   :  { %864 = vmatpush1.bf16.msra.mxu0 %v3332_v16  ;;  %905 = vmatpush1.bf16.msra.mxu1 %v3336_v22  ;;  %v77_v22 = vld [vmem:[#allocation2 + $0x30] sm:$0xff]  ;;  %v3393_v51 = vcombine.high %v82_v63, %v86_v1 }
  0x48   :  { %865 = vmatprep.subr.bf16.mxu0 %v3338_v23  ;;  %906 = vmatprep.subr.bf16.mxu1 %v3341_v24  ;;  %v73_v24 = vld [vmem:[#allocation2 + $0x10] sm:$0xff] }
  0x49   :  { %v3374_v61 = vcombine.high %v73_v24, %v77_v22  ;;  %3925 = vst [vmem:[#allocation40_spill] sm:$0xff] %v3393_v51 }
  0x4b   :  { %866 = vmatpush1.bf16.msra.mxu0 %v3344_v43  ;;  %907 = vmatpush1.bf16.msra.mxu1 %v3348_v48  ;;  %v3377_v48 = vcombine.high %v74_v17, %v78_v12  ;;  %v3404_v17 = vcombine.low %v82_v63, %v86_v1  ;;  %v3418_v63 = vcombine.low %v90_v47, %v94_v45  ;;  %v105_v1 = vld [vmem:[#allocation2 + $0x110] sm:$0xff] }
  0x4c   :  { %867 = vmatprep.subr.bf16.mxu0 %v3350_v49  ;;  %908 = vmatprep.subr.bf16.mxu1 %v3353_v60  ;;  %v85_v60 = vld [vmem:[#allocation2 + $0x70] sm:$0xff] }
  0x4d   :  { %3923 = vst [vmem:[#allocation38_spill] sm:$0xff] %v3377_v48  ;;  %v3388_v33 = vcombine.high %v81_v42, %v85_v60  ;;  %3926 = vst [vmem:[#allocation41_spill] sm:$0xff] %v3404_v17 }
  0x4e   :  { %3928 = vst [vmem:[#allocation43_spill] sm:$0xff] %v3418_v63 }
  0x4f   :  { %868 = vmatpush1.bf16.msra.mxu0 %v3356_v32  ;;  %909 = vmatpush1.bf16.msra.mxu1 %v3360_v41  ;;  %v3384_v41 = vcombine.low %v73_v24, %v77_v22  ;;  %v3398_v22 = vcombine.low %v81_v42, %v85_v60  ;;  %v97_v24 = vld [vmem:[#allocation2 + $0xd0] sm:$0xff] }
  0x50   :  { %869 = vmatprep.subr.bf16.mxu0 %v3362_v6  ;;  %910 = vmatprep.subr.bf16.mxu1 %v3365_v15  ;;  %v89_v15 = vld [vmem:[#allocation2 + $0x90] sm:$0xff] }
  0x51   :  { %v3402_v12 = vcombine.high %v89_v15, %v93_v55  ;;  %v3412_v60 = vcombine.low %v89_v15, %v93_v55 }
  0x53   :  { %870 = vmatpush1.bf16.msra.mxu0 %v3368_v30  ;;  %911 = vmatpush1.bf16.msra.mxu1 %v3372_v57  ;;  %v3407_v57 = vcombine.high %v90_v47, %v94_v45  ;;  %v3430_v45 = vcombine.low %v98_v38, %v102_v36  ;;  %v113_v47 = vld [vmem:[#allocation2 + $0x150] sm:$0xff] }
  0x54   :  { %921 = vmatprep.subr.bf16.mxu0 %v3374_v61  ;;  %962 = vmatprep.subr.bf16.mxu1 %v3377_v48  ;;  %v101_v48 = vld [vmem:[#allocation2 + $0xf0] sm:$0xff] }
  0x55   :  { %3927 = vst [vmem:[#allocation42_spill] sm:$0xff] %v3407_v57  ;;  %v3416_v42 = vcombine.high %v97_v24, %v101_v48  ;;  %v3424_v55 = vcombine.low %v97_v24, %v101_v48  ;;  %3930 = vst [vmem:[#allocation45_spill] sm:$0xff] %v3430_v45 }
  0x56   :  { %872 = vmatmul.mubr.bf16.vlgmr.msra.gmra.mrb[0].mxu0 %v3381_v59  ;;  %913 = vmatmul.mubr.bf16.vlgmr.msra.gmra.mrb[0].mxu1 %v3381_v59 }
  0x57   :  { %922 = vmatpush1.bf16.msra.mxu0 %v3384_v41  ;;  %963 = vmatpush1.bf16.msra.mxu1 %v3390_v40  ;;  %v3421_v40 = vcombine.high %v98_v38, %v102_v36  ;;  %v121_v38 = vld [vmem:[#allocation2 + $0x190] sm:$0xff] }
  0x58   :  { %923 = vmatprep.subr.bf16.mxu0 %v3388_v33  ;;  %964 = vmatprep.subr.bf16.mxu1 %v3393_v51  ;;  %v109_v51 = vld [vmem:[#allocation2 + $0x130] sm:$0xff] }
  0x59   :  { %953 = vmatprep.mubr.bf16.mxu0 %v3291_v2  ;;  %994 = vmatprep.mubr.bf16.mxu1 %v3291_v2  ;;  %3929 = vst [vmem:[#allocation44_spill] sm:$0xff] %v3421_v40  ;;  %v110_v2 = vld [vmem:[#allocation2 + $0x138] sm:$0xff]  ;;  %v3428_v15 = vcombine.high %v105_v1, %v109_v51  ;;  %v3436_v48 = vcombine.low %v105_v1, %v109_v51 }
  0x5a   :  { %v3442_v36 = vcombine.low %v106_v29, %v110_v2 }
  0x5b   :  { %924 = vmatpush1.bf16.msra.mxu0 %v3398_v22  ;;  %965 = vmatpush1.bf16.msra.mxu1 %v3404_v17  ;;  %v3433_v17 = vcombine.high %v106_v29, %v110_v2  ;;  %3932 = vst [vmem:[#allocation47_spill] sm:$0xff] %v3436_v48  ;;  %v3454_v29 = vcombine.low %v114_v27, %v118_v21  ;;  %v129_v2 = vld [vmem:[#allocation2 + $0x1d0] sm:$0xff] }
  0x5c   :  { %925 = vmatprep.subr.bf16.mxu0 %v3402_v12  ;;  %966 = vmatprep.subr.bf16.mxu1 %v3407_v57  ;;  %v117_v57 = vld [vmem:[#allocation2 + $0x170] sm:$0xff]  ;;  %3934 = vst [vmem:[#allocation49_spill] sm:$0xff] %v3442_v36 }
  0x5d   :  { %3931 = vst [vmem:[#allocation46_spill] sm:$0xff] %v3433_v17  ;;  %v3440_v24 = vcombine.high %v113_v47, %v117_v57  ;;  %v3448_v51 = vcombine.low %v113_v47, %v117_v57  ;;  %3938 = vst [vmem:[#allocation53_spill] sm:$0xff] %v3454_v29 }
  0x5f   :  { %926 = vmatpush1.bf16.msra.mxu0 %v3412_v60  ;;  %967 = vmatpush1.bf16.msra.mxu1 %v3418_v63  ;;  %3933 = vst [vmem:[#allocation48_spill] sm:$0xff] %v3440_v24  ;;  %v3445_v63 = vcombine.high %v114_v27, %v118_v21  ;;  %3936 = vst [vmem:[#allocation51_spill] sm:$0xff] %v3448_v51  ;;  %v3466_v21 = vcombine.low %v122_v19, %v126_v14  ;;  %v137_v27 = vld [vmem:[#allocation2 + $0x210] sm:$0xff] }
  0x60   :  { %927 = vmatprep.subr.bf16.mxu0 %v3416_v42  ;;  %968 = vmatprep.subr.bf16.mxu1 %v3421_v40  ;;  %v125_v40 = vld [vmem:[#allocation2 + $0x1b0] sm:$0xff] }
  0x61   :  { %3935 = vst [vmem:[#allocation50_spill] sm:$0xff] %v3445_v63  ;;  %v3452_v1 = vcombine.high %v121_v38, %v125_v40  ;;  %v3460_v57 = vcombine.low %v121_v38, %v125_v40  ;;  %3942 = vst [vmem:[#allocation57_spill] sm:$0xff] %v3466_v21 }
  0x63   :  { %928 = vmatpush1.bf16.msra.mxu0 %v3424_v55  ;;  %969 = vmatpush1.bf16.msra.mxu1 %v3430_v45  ;;  %3937 = vst [vmem:[#allocation52_spill] sm:$0xff] %v3452_v1  ;;  %v3457_v45 = vcombine.high %v122_v19, %v126_v14  ;;  %3940 = vst [vmem:[#allocation55_spill] sm:$0xff] %v3460_v57  ;;  %v3478_v14 = vcombine.low %v130_v9, %v134_v8  ;;  %v145_v19 = vld [vmem:[#allocation2 + $0x250] sm:$0xff] }
  0x64   :  { %929 = vmatprep.subr.bf16.mxu0 %v3428_v15  ;;  %970 = vmatprep.subr.bf16.mxu1 %v3433_v17  ;;  %v133_v17 = vld [vmem:[#allocation2 + $0x1f0] sm:$0xff] }
  0x65   :  { %3939 = vst [vmem:[#allocation54_spill] sm:$0xff] %v3457_v45  ;;  %v3464_v47 = vcombine.high %v129_v2, %v133_v17  ;;  %v3472_v40 = vcombine.low %v129_v2, %v133_v17  ;;  %3946 = vst [vmem:[#allocation61_spill] sm:$0xff] %v3478_v14 }
  0x67   :  { %930 = vmatpush1.bf16.msra.mxu0 %v3436_v48  ;;  %971 = vmatpush1.bf16.msra.mxu1 %v3442_v36  ;;  %3941 = vst [vmem:[#allocation56_spill] sm:$0xff] %v3464_v47  ;;  %v3469_v36 = vcombine.high %v130_v9, %v134_v8  ;;  %v142_v48 = vld [vmem:[#allocation2 + $0x238] sm:$0xff]  ;;  %3944 = vst [vmem:[#allocation59_spill] sm:$0xff] %v3472_v40  ;;  %v153_v9 = vld [vmem:[#allocation2 + $0x290] sm:$0xff] }
  0x68   :  { %931 = vmatprep.subr.bf16.mxu0 %v3440_v24  ;;  %972 = vmatprep.subr.bf16.mxu1 %v3445_v63  ;;  %v141_v63 = vld [vmem:[#allocation2 + $0x230] sm:$0xff]  ;;  %v138_v24 = vld [vmem:[#allocation2 + $0x218] sm:$0xff] }
  0x69   :  { %3943 = vst [vmem:[#allocation58_spill] sm:$0xff] %v3469_v36  ;;  %v3476_v38 = vcombine.high %v137_v27, %v141_v63  ;;  %v3484_v17 = vcombine.low %v137_v27, %v141_v63  ;;  %v3490_v8 = vcombine.low %v138_v24, %v142_v48 }
  0x6b   :  { %932 = vmatpush1.bf16.msra.mxu0 %v3448_v51  ;;  %973 = vmatpush1.bf16.msra.mxu1 %v3454_v29  ;;  %3945 = vst [vmem:[#allocation60_spill] sm:$0xff] %v3476_v38  ;;  %v3481_v29 = vcombine.high %v138_v24, %v142_v48  ;;  %v150_v51 = vld [vmem:[#allocation2 + $0x278] sm:$0xff]  ;;  %3948 = vst [vmem:[#allocation63_spill] sm:$0xff] %v3484_v17  ;;  %v161_v24 = vld [vmem:[#allocation2 + $0x2d0] sm:$0xff] }
  0x6c   :  { %933 = vmatprep.subr.bf16.mxu0 %v3452_v1  ;;  %974 = vmatprep.subr.bf16.mxu1 %v3457_v45  ;;  %v149_v45 = vld [vmem:[#allocation2 + $0x270] sm:$0xff]  ;;  %v146_v1 = vld [vmem:[#allocation2 + $0x258] sm:$0xff]  ;;  %3950 = vst [vmem:[#allocation65_spill] sm:$0xff] %v3490_v8 }
  0x6d   :  { %3947 = vst [vmem:[#allocation62_spill] sm:$0xff] %v3481_v29  ;;  %v3488_v2 = vcombine.high %v145_v19, %v149_v45  ;;  %v3496_v63 = vcombine.low %v145_v19, %v149_v45  ;;  %v3502_v48 = vcombine.low %v146_v1, %v150_v51 }
  0x6f   :  { %934 = vmatpush1.bf16.msra.mxu0 %v3460_v57  ;;  %975 = vmatpush1.bf16.msra.mxu1 %v3466_v21  ;;  %3949 = vst [vmem:[#allocation64_spill] sm:$0xff] %v3488_v2  ;;  %v3493_v21 = vcombine.high %v146_v1, %v150_v51  ;;  %v158_v57 = vld [vmem:[#allocation2 + $0x2b8] sm:$0xff]  ;;  %3952 = vst [vmem:[#allocation67_spill] sm:$0xff] %v3496_v63  ;;  %v169_v1 = vld [vmem:[#allocation2 + $0x310] sm:$0xff] }
  0x70   :  { %935 = vmatprep.subr.bf16.mxu0 %v3464_v47  ;;  %976 = vmatprep.subr.bf16.mxu1 %v3469_v36  ;;  %v157_v36 = vld [vmem:[#allocation2 + $0x2b0] sm:$0xff]  ;;  %v154_v47 = vld [vmem:[#allocation2 + $0x298] sm:$0xff]  ;;  %3954 = vst [vmem:[#allocation69_spill] sm:$0xff] %v3502_v48 }
  0x71   :  { %3951 = vst [vmem:[#allocation66_spill] sm:$0xff] %v3493_v21  ;;  %v3500_v27 = vcombine.high %v153_v9, %v157_v36  ;;  %v3508_v45 = vcombine.low %v153_v9, %v157_v36  ;;  %v3514_v51 = vcombine.low %v154_v47, %v158_v57 }
  0x73   :  { %936 = vmatpush1.bf16.msra.mxu0 %v3472_v40  ;;  %977 = vmatpush1.bf16.msra.mxu1 %v3478_v14  ;;  %3953 = vst [vmem:[#allocation68_spill] sm:$0xff] %v3500_v27  ;;  %v3505_v14 = vcombine.high %v154_v47, %v158_v57  ;;  %v166_v40 = vld [vmem:[#allocation2 + $0x2f8] sm:$0xff]  ;;  %3956 = vst [vmem:[#allocation71_spill] sm:$0xff] %v3508_v45  ;;  %v177_v47 = vld [vmem:[#allocation2 + $0x350] sm:$0xff] }
  0x74   :  { %937 = vmatprep.subr.bf16.mxu0 %v3476_v38  ;;  %978 = vmatprep.subr.bf16.mxu1 %v3481_v29  ;;  %v165_v29 = vld [vmem:[#allocation2 + $0x2f0] sm:$0xff]  ;;  %v162_v38 = vld [vmem:[#allocation2 + $0x2d8] sm:$0xff]  ;;  %3958 = vst [vmem:[#allocation73_spill] sm:$0xff] %v3514_v51 }
  0x75   :  { %3955 = vst [vmem:[#allocation70_spill] sm:$0xff] %v3505_v14  ;;  %v3512_v19 = vcombine.high %v161_v24, %v165_v29  ;;  %v3520_v36 = vcombine.low %v161_v24, %v165_v29  ;;  %v3526_v57 = vcombine.low %v162_v38, %v166_v40 }
  0x77   :  { %938 = vmatpush1.bf16.msra.mxu0 %v3484_v17  ;;  %979 = vmatpush1.bf16.msra.mxu1 %v3490_v8  ;;  %3957 = vst [vmem:[#allocation72_spill] sm:$0xff] %v3512_v19  ;;  %v3517_v8 = vcombine.high %v162_v38, %v166_v40  ;;  %v174_v17 = vld [vmem:[#allocation2 + $0x338] sm:$0xff]  ;;  %3960 = vst [vmem:[#allocation75_spill] sm:$0xff] %v3520_v36  ;;  %v185_v38 = vld [vmem:[#allocation2 + $0x390] sm:$0xff] }
  0x78   :  { %939 = vmatprep.subr.bf16.mxu0 %v3488_v2  ;;  %980 = vmatprep.subr.bf16.mxu1 %v3493_v21  ;;  %v173_v21 = vld [vmem:[#allocation2 + $0x330] sm:$0xff]  ;;  %v170_v2 = vld [vmem:[#allocation2 + $0x318] sm:$0xff]  ;;  %3962 = vst [vmem:[#allocation77_spill] sm:$0xff] %v3526_v57 }
  0x79   :  { %3959 = vst [vmem:[#allocation74_spill] sm:$0xff] %v3517_v8  ;;  %v3524_v9 = vcombine.high %v169_v1, %v173_v21  ;;  %v3532_v29 = vcombine.low %v169_v1, %v173_v21  ;;  %v3538_v40 = vcombine.low %v170_v2, %v174_v17 }
  0x7b   :  { %940 = vmatpush1.bf16.msra.mxu0 %v3496_v63  ;;  %981 = vmatpush1.bf16.msra.mxu1 %v3502_v48  ;;  %3961 = vst [vmem:[#allocation76_spill] sm:$0xff] %v3524_v9  ;;  %v3529_v48 = vcombine.high %v170_v2, %v174_v17  ;;  %v182_v63 = vld [vmem:[#allocation2 + $0x378] sm:$0xff]  ;;  %v193_v2 = vld [vmem:[#allocation2 + $0x3d0] sm:$0xff] }
  0x7c   :  { %941 = vmatprep.subr.bf16.mxu0 %v3500_v27  ;;  %982 = vmatprep.subr.bf16.mxu1 %v3505_v14  ;;  %v181_v14 = vld [vmem:[#allocation2 + $0x370] sm:$0xff]  ;;  %v178_v27 = vld [vmem:[#allocation2 + $0x358] sm:$0xff] }
  0x7d   :  { %3963 = vst [vmem:[#allocation78_spill] sm:$0xff] %v3529_v48  ;;  %v3536_v24 = vcombine.high %v177_v47, %v181_v14  ;;  %v3544_v21 = vcombine.low %v177_v47, %v181_v14  ;;  %v3550_v17 = vcombine.low %v178_v27, %v182_v63 }
  0x7f   :  { %942 = vmatpush1.bf16.msra.mxu0 %v3508_v45  ;;  %983 = vmatpush1.bf16.msra.mxu1 %v3514_v51  ;;  %v3541_v51 = vcombine.high %v178_v27, %v182_v63  ;;  %v190_v45 = vld [vmem:[#allocation2 + $0x3b8] sm:$0xff] }
  0x80   :  { %943 = vmatprep.subr.bf16.mxu0 %v3512_v19  ;;  %984 = vmatprep.subr.bf16.mxu1 %v3517_v8  ;;  %v189_v8 = vld [vmem:[#allocation2 + $0x3b0] sm:$0xff]  ;;  %v186_v19 = vld [vmem:[#allocation2 + $0x398] sm:$0xff] }
  0x81   :  { %3964 = vst [vmem:[#allocation79_spill] sm:$0xff] %v3541_v51  ;;  %v3548_v1 = vcombine.high %v185_v38, %v189_v8  ;;  %v3556_v14 = vcombine.low %v185_v38, %v189_v8  ;;  %v3562_v63 = vcombine.low %v186_v19, %v190_v45  ;;  %v3981_v38 = vld [vmem:[#allocation5_spill] sm:$0xff] }
  0x83   :  { %944 = vmatpush1.bf16.msra.mxu0 %v3520_v36  ;;  %985 = vmatpush1.bf16.msra.mxu1 %v3526_v57  ;;  %v3553_v57 = vcombine.high %v186_v19, %v190_v45  ;;  %v198_v36 = vld [vmem:[#allocation2 + $0x3f8] sm:$0xff]  ;;  %v3687_v19 = vld [vmem:[%s3808_s2 + $0x10] sm:$0xff] }
  0x84   :  { %945 = vmatprep.subr.bf16.mxu0 %v3524_v9  ;;  %986 = vmatprep.subr.bf16.mxu1 %v3529_v48  ;;  %v197_v48 = vld [vmem:[#allocation2 + $0x3f0] sm:$0xff]  ;;  %v194_v9 = vld [vmem:[#allocation2 + $0x3d8] sm:$0xff] }
  0x85   :  { %v3560_v47 = vcombine.high %v193_v2, %v197_v48  ;;  %v3565_v27 = vcombine.high %v194_v9, %v198_v36  ;;  %v3572_v8 = vcombine.low %v194_v9, %v198_v36 }
  0x87   :  { %946 = vmatpush1.bf16.msra.mxu0 %v3532_v29  ;;  %987 = vmatpush1.bf16.msra.mxu1 %v3538_v40 }
  0x88   :  { %947 = vmatprep.subr.bf16.mxu0 %v3536_v24  ;;  %988 = vmatprep.subr.bf16.mxu1 %v3541_v51  ;;  %v3568_v51 = vcombine.low %v193_v2, %v197_v48  ;;  %v3983_v2 = vld [vmem:[#allocation7_spill] sm:$0xff] }
  0x8b   :  { %948 = vmatpush1.bf16.msra.mxu0 %v3544_v21  ;;  %989 = vmatpush1.bf16.msra.mxu1 %v3550_v17 }
  0x8c   :  { %949 = vmatprep.subr.bf16.mxu0 %v3548_v1  ;;  %990 = vmatprep.subr.bf16.mxu1 %v3553_v57 }
  0x8f   :  { %950 = vmatpush1.bf16.msra.mxu0 %v3556_v14  ;;  %991 = vmatpush1.bf16.msra.mxu1 %v3562_v63 }
  0x90   :  { %951 = vmatprep.subr.bf16.mxu0 %v3560_v47  ;;  %992 = vmatprep.subr.bf16.mxu1 %v3565_v27 }
  0x93   :  { %952 = vmatpush1.bf16.msra.mxu0 %v3568_v51  ;;  %993 = vmatpush1.bf16.msra.mxu1 %v3572_v8 }
  0x94   :  { %2178 = vmatprep.subr.bf16.mxu1 %v3155_v3  ;;  %v3101_v3 = vmov 0.0  }
  0x96   :  { %954 = vmatmul.mubr.bf16.vlgmr.msra.gmra.mrb[4].mxu0 %v3381_v59  ;;  %995 = vmatmul.mubr.bf16.vlgmr.msra.gmra.mrb[4].mxu1 %v3381_v59 }
  0x97   :  { %2179 = vmatpush1.bf16.msra.mxu1 %v3157_v5  ;;  %1081 = vmatprep.mubr.f32.mxu0 %v3101_v3  ;;  %v1378_v5 = vld [vmem:[%s3809_s3] sm:$0x3] }
  0x98   :  { %2180 = vmatprep.subr.bf16.mxu1 %v3163_v10  ;;  %v1383_v10 = vrot.slane %v1378_v5, %v3221_v50 }
  0x9b   :  { %2181 = vmatpush1.bf16.msra.mxu1 %v3170_v18  ;;  %v1387_v18 = vrot.slane %v1378_v5, %v3224_v53  ;;  %v3986_v5 = vld [vmem:[#allocation10_spill] sm:$0xff] }
  0x9c   :  { %2182 = vmatprep.subr.bf16.mxu1 %v3176_v20  ;;  %v2909_v20 = vld [vmem:[%s3806_s0 + $0x4] sm:$0xf] }
  0x9f   :  { %2183 = vmatpush1.bf16.msra.mxu1 %v3182_v26  ;;  %v1391_v26 = vld [vmem:[%s3810_s4] sm:$0x3] }
  0xa0   :  { %2184 = vmatprep.subr.bf16.mxu1 %v3188_v28  ;;  %v1377_v28 = vunpack.c.l.bf16 %v2909_v20  ;;  %v3989_v20 = vld [vmem:[#allocation13_spill] sm:$0xff] }
  0xa3   :  { %2185 = vmatpush1.bf16.msra.mxu1 %v3194_v35  ;;  %v1388_v35 = vcombine.low %v1383_v10, %v1387_v18  ;;  %v3987_v10 = vld [vmem:[#allocation11_spill] sm:$0xff]  ;;  %v3988_v18 = vld [vmem:[#allocation12_spill] sm:$0xff] }
  0xa4   :  { %2186 = vmatprep.subr.bf16.mxu1 %v3200_v37  ;;  %v1396_v37 = vrot.slane %v1391_v26, %v3221_v50  ;;  %v3634_v50 = vld [vmem:[%s3808_s2 + $0x8] sm:$0xff] }
  0xa7   :  { %2187 = vmatpush1.bf16.msra.mxu1 %v3209_v44  ;;  %v1400_v44 = vrot.slane %v1391_v26, %v3224_v53  ;;  %v3990_v26 = vld [vmem:[#allocation15_spill] sm:$0xff] }
  0xa8   :  { %2188 = vmatprep.subr.bf16.mxu1 %v3215_v46  ;;  %v1390_v46 = vmul.f32 %v1388_v35, %v1377_v28  ;;  %v3991_v28 = vld [vmem:[#allocation16_spill] sm:$0xff]  ;;  %v3992_v35 = vld [vmem:[#allocation17_spill] sm:$0xff] }
  0xab   :  { %2189 = vmatpush1.bf16.msra.mxu1 %v3227_v54  ;;  %v1401_v54 = vcombine.low %v1396_v37, %v1400_v44  ;;  %v3993_v37 = vld [vmem:[#allocation18_spill] sm:$0xff]  ;;  %v3994_v44 = vld [vmem:[#allocation19_spill] sm:$0xff] }
  0xac   :  { %2190 = vmatprep.subr.bf16.mxu1 %v3233_v56 }
  0xad   :  { %v1403_v56 = vadd.f32 %v1401_v54, %v1390_v46  ;;  %v3995_v46 = vld [vmem:[#allocation20_spill] sm:$0xff]  ;;  %v3996_v54 = vld [vmem:[#allocation21_spill] sm:$0xff] }
  0xaf   :  { %2191 = vmatpush1.bf16.msra.mxu1 %v3252_v11  ;;  %v1404_v59 = vmax.f32 %v1403_v56, 0.0  ;;  %v3997_v56 = vld [vmem:[#allocation22_spill] sm:$0xff] }
  0xb0   :  { %2192 = vmatprep.subr.bf16.mxu1 %v3258_v13 }
  0xb1   :  { %v1406_v11 = vcombine.high %v1404_v59, %v1404_v59 }
  0xb3   :  { %2193 = vmatpush1.bf16.msra.mxu1 %v3264_v31  ;;  %v3626_v13 = vpack.c.bf16 %v1406_v11, %v1406_v11  ;;  %v3999_v11 = vld [vmem:[#allocation24_spill] sm:$0xff] }
  0xb4   :  { %2194 = vmatprep.subr.bf16.mxu1 %v3270_v34  ;;  %v3628_v34 = vpack.c.bf16 %v1404_v59, %v1404_v59  ;;  %v3998_v59 = vld [vmem:[#allocation23_spill] sm:$0xff] }
  0xb5   :  { %2210 = vmatprep.mubr.bf16.mxu1 %v3626_v13 }
  0xb7   :  { %2195 = vmatpush1.bf16.msra.mxu1 %v3278_v52 }
  0xb8   :  { %2196 = vmatprep.subr.bf16.mxu1 %v3284_v58 }
  0xbb   :  { %2197 = vmatpush1.bf16.msra.mxu1 %v3294_v4 }
  0xbc   :  { %2198 = vmatprep.subr.bf16.mxu1 %v3300_v7 }
  0xbf   :  { %2199 = vmatpush1.bf16.msra.mxu1 %v3308_v25 }
  0xc0   :  { %2200 = vmatprep.subr.bf16.mxu1 %v3314_v39 }
  0xc3   :  { %2201 = vmatpush1.bf16.msra.mxu1 %v3320_v62  ;;  %v3652_v62 = vld [vmem:[%s3808_s2] sm:$0xff] }
  0xc4   :  { %2202 = vmatprep.subr.bf16.mxu1 %v3326_v0  ;;  %v3965_v0 = vld [vmem:[#allocation47_spill] sm:$0xff] }
  0xc7   :  { %2203 = vmatpush1.bf16.msra.mxu1 %v3332_v16  ;;  %v3966_v16 = vld [vmem:[#allocation48_spill] sm:$0xff] }
  0xc8   :  { %2204 = vmatprep.subr.bf16.mxu1 %v3338_v23  ;;  %v3967_v23 = vld [vmem:[#allocation51_spill] sm:$0xff] }
  0xcb   :  { %2205 = vmatpush1.bf16.msra.mxu1 %v3344_v43  ;;  %v3968_v43 = vld [vmem:[#allocation52_spill] sm:$0xff] }
  0xcc   :  { %2206 = vmatprep.subr.bf16.mxu1 %v3350_v49  ;;  %v3969_v49 = vld [vmem:[#allocation55_spill] sm:$0xff] }
  0xcf   :  { %2207 = vmatpush1.bf16.msra.mxu1 %v3356_v32  ;;  %v3970_v32 = vld [vmem:[#allocation56_spill] sm:$0xff] }
  0xd0   :  { %2208 = vmatprep.subr.bf16.mxu1 %v3362_v6  ;;  %v3972_v6 = vld [vmem:[#allocation60_spill] sm:$0xff] }
  0xd3   :  { %2209 = vmatpush1.bf16.msra.mxu1 %v3368_v30  ;;  %v3973_v30 = vld [vmem:[#allocation63_spill] sm:$0xff] }
  0xd4   :  { %2260 = vmatprep.subr.bf16.mxu1 %v3374_v61  ;;  %v3974_v61 = vld [vmem:[#allocation64_spill] sm:$0xff] }
  0xd6   :  { %2211 = vmatmul.mubr.bf16.vlgmr.msra.gmra.mrb[8].mxu1 %v3628_v34 }
  0xd7   :  { %2261 = vmatpush1.bf16.msra.mxu1 %v3384_v41  ;;  %2292 = vmatprep.mubr.bf16.mxu1 %v3626_v13  ;;  %v3971_v41 = vld [vmem:[#allocation59_spill] sm:$0xff] }
  0xd8   :  { %2262 = vmatprep.subr.bf16.mxu1 %v3388_v33  ;;  %v3975_v33 = vld [vmem:[#allocation67_spill] sm:$0xff] }
  0xdb   :  { %2263 = vmatpush1.bf16.msra.mxu1 %v3398_v22  ;;  %v3976_v22 = vld [vmem:[#allocation68_spill] sm:$0xff] }
  0xdc   :  { %2264 = vmatprep.subr.bf16.mxu1 %v3402_v12  ;;  %v3977_v12 = vld [vmem:[#allocation71_spill] sm:$0xff] }
  0xdf   :  { %2265 = vmatpush1.bf16.msra.mxu1 %v3412_v60  ;;  %v3978_v60 = vld [vmem:[#allocation72_spill] sm:$0xff] }
  0xe0   :  { %2266 = vmatprep.subr.bf16.mxu1 %v3416_v42  ;;  %v3979_v42 = vld [vmem:[#allocation75_spill] sm:$0xff] }
  0xe3   :  { %2267 = vmatpush1.bf16.msra.mxu1 %v3424_v55  ;;  %v3980_v55 = vld [vmem:[#allocation76_spill] sm:$0xff] }
  0xe4   :  { %2268 = vmatprep.subr.bf16.mxu1 %v3428_v15 }
  0xe7   :  { %2269 = vmatpush1.bf16.msra.mxu1 %v3965_v0  ;;  %v4008_v0 = vld [vmem:[#allocation33_spill] sm:$0xff] }
  0xe8   :  { %2270 = vmatprep.subr.bf16.mxu1 %v3966_v16  ;;  %v4009_v16 = vld [vmem:[#allocation34_spill] sm:$0xff] }
  0xeb   :  { %2271 = vmatpush1.bf16.msra.mxu1 %v3967_v23  ;;  %v4010_v23 = vld [vmem:[#allocation35_spill] sm:$0xff] }
  0xec   :  { %2272 = vmatprep.subr.bf16.mxu1 %v3968_v43  ;;  %v4011_v43 = vld [vmem:[#allocation36_spill] sm:$0xff] }
  0xef   :  { %2273 = vmatpush1.bf16.msra.mxu1 %v3969_v49  ;;  %v4012_v49 = vld [vmem:[#allocation37_spill] sm:$0xff] }
  0xf0   :  { %2274 = vmatprep.subr.bf16.mxu1 %v3970_v32  ;;  %v4013_v32 = vld [vmem:[#allocation38_spill] sm:$0xff] }
  0xf3   :  { %2275 = vmatpush1.bf16.msra.mxu1 %v3971_v41  ;;  %v4014_v41 = vld [vmem:[#allocation39_spill] sm:$0xff] }
  0xf4   :  { %2276 = vmatprep.subr.bf16.mxu1 %v3972_v6  ;;  %v4015_v6 = vld [vmem:[#allocation40_spill] sm:$0xff] }
  0xf7   :  { %2277 = vmatpush1.bf16.msra.mxu1 %v3973_v30  ;;  %v4016_v30 = vld [vmem:[#allocation41_spill] sm:$0xff] }
  0xf8   :  { %2278 = vmatprep.subr.bf16.mxu1 %v3974_v61  ;;  %v4017_v61 = vld [vmem:[#allocation42_spill] sm:$0xff] }
  0xfb   :  { %2279 = vmatpush1.bf16.msra.mxu1 %v3975_v33  ;;  %v4018_v33 = vld [vmem:[#allocation43_spill] sm:$0xff] }
  0xfc   :  { %2280 = vmatprep.subr.bf16.mxu1 %v3976_v22  ;;  %v4019_v22 = vld [vmem:[#allocation44_spill] sm:$0xff] }
  0xff   :  { %2281 = vmatpush1.bf16.msra.mxu1 %v3977_v12  ;;  %v4020_v12 = vld [vmem:[#allocation45_spill] sm:$0xff] }
 0x100   :  { %2282 = vmatprep.subr.bf16.mxu1 %v3978_v60  ;;  %v4021_v60 = vld [vmem:[#allocation46_spill] sm:$0xff] }
 0x103   :  { %2283 = vmatpush1.bf16.msra.mxu1 %v3979_v42  ;;  %v4022_v42 = vld [vmem:[#allocation49_spill] sm:$0xff] }
 0x104   :  { %2284 = vmatprep.subr.bf16.mxu1 %v3980_v55  ;;  %v4023_v55 = vld [vmem:[#allocation50_spill] sm:$0xff] }
 0x107   :  { %2285 = vmatpush1.bf16.msra.mxu1 %v3532_v29 }
 0x108   :  { %2286 = vmatprep.subr.bf16.mxu1 %v3536_v24 }
 0x10b   :  { %2287 = vmatpush1.bf16.msra.mxu1 %v3544_v21  ;;  %v3702_v21 = vld [vmem:[%s3808_s2 + $0x18] sm:$0xff] }
 0x10c   :  { %2288 = vmatprep.subr.bf16.mxu1 %v3548_v1  ;;  %v3982_v1 = vld [vmem:[#allocation6_spill] sm:$0xff] }
 0x10f   :  { %2289 = vmatpush1.bf16.msra.mxu1 %v3556_v14  ;;  %v3984_v14 = vld [vmem:[#allocation8_spill] sm:$0xff] }
 0x110   :  { %2290 = vmatprep.subr.bf16.mxu1 %v3560_v47  ;;  %v3985_v47 = vld [vmem:[#allocation9_spill] sm:$0xff] }
 0x113   :  { %2291 = vmatpush1.bf16.msra.mxu1 %v3568_v51 }
 0x116   :  { %2293 = vmatmul.mubr.bf16.vlgmr.msra.gmra.mrb[12].mxu1 %v3628_v34 }
 0x117   :  { %2417 = vmatprep.mubr.f32.mxu1 %v3101_v3 }
 0x129   :  { %v873_v31 = vpop.f32.mrb[0].mxu0  ;;  %v914_v52 = vpop.f32.mrb[0].mxu1 }
 0x12a   :  { %v875_v58 = vpop.f32.mrb[1].mxu0  ;;  %v916_v4 = vpop.f32.mrb[1].mxu1 }
 0x12b   :  { %v877_v7 = vpop.f32.mrb[2].mxu0  ;;  %2894 = vmatprep.subr.msk.mxu0 %vm1010_vm0, %v916_v4  ;;  %v918_v25 = vpop.f32.mrb[2].mxu1  ;;  %v4003_v4 = vld [vmem:[#allocation28_spill] sm:$0xff] }
 0x12c   :  { %v878_v53 = vpop.f32.mrb[3].mxu0  ;;  %2895 = vmatpush1.msk.msra.mxu0 %vm1010_vm0, %v914_v52  ;;  %v919_v39 = vpop.f32.mrb[3].mxu1  ;;  %v4001_v52 = vld [vmem:[#allocation26_spill] sm:$0xff]  ;;  %v4004_v7 = vld [vmem:[#allocation29_spill] sm:$0xff]  ;;  %v4006_v25 = vld [vmem:[#allocation31_spill] sm:$0xff] }
 0x12d   :  { %2897 = vmatprep.subr.msk.mxu0 %vm1010_vm0, %v875_v58  ;;  %2896 = vmatmul.mubr.msk.f32.vlgmr.msra.gmra.mrb[8].mxu0 %vm1006_vm1, %v3634_v50  ;;  %v4002_v58 = vld [vmem:[#allocation27_spill] sm:$0xff]  ;;  %v4005_v53 = vld [vmem:[#allocation30_spill] sm:$0xff]  ;;  %v4007_v39 = vld [vmem:[#allocation32_spill] sm:$0xff] }
 0x12e   :  { %2898 = vmatpush1.msk.msra.mxu0 %vm1010_vm0, %v873_v31  ;;  %1161 = vmatprep.mubr.f32.mxu0 %v3101_v3  ;;  %v4000_v31 = vld [vmem:[#allocation25_spill] sm:$0xff] }
 0x135   :  { %2899 = vmatmul.mubr.msk.f32.vlgmr.msra.gmra.mrb[8].mxu0 %vm1006_vm1, %v3652_v62 }
 0x136   :  { %1243 = vmatprep.mubr.f32.mxu0 %v3101_v3 }
 0x169   :  { %v955_v15 = vpop.f32.mrb[4].mxu0  ;;  %v996_v45 = vpop.f32.mrb[4].mxu1 }
 0x16a   :  { %v957_v48 = vpop.f32.mrb[5].mxu0  ;;  %v998_v9 = vpop.f32.mrb[5].mxu1 }
 0x16b   :  { %v959_v36 = vpop.f32.mrb[6].mxu0  ;;  %2901 = vmatprep.subr.msk.mxu0 %vm1010_vm0, %v957_v48  ;;  %v1000_v24 = vpop.f32.mrb[6].mxu1  ;;  %v4026_v48 = vld [vmem:[#allocation57_spill] sm:$0xff] }
 0x16c   :  { %v960_v29 = vpop.f32.mrb[7].mxu0  ;;  %2902 = vmatpush1.msk.msra.mxu0 %vm1010_vm0, %v955_v15  ;;  %v1001_v51 = vpop.f32.mrb[7].mxu1  ;;  %v4024_v15 = vld [vmem:[#allocation53_spill] sm:$0xff]  ;;  %v4031_v24 = vld [vmem:[#allocation66_spill] sm:$0xff] }
 0x16d   :  { %2903 = vmatmul.mubr.msk.f32.vlgmr.msra.gmra.mrb[8].mxu0 %vm1006_vm1, %v3687_v19  ;;  %2905 = vmatprep.subr.msk.mxu0 %vm1010_vm0, %v998_v9  ;;  %v4028_v36 = vld [vmem:[#allocation61_spill] sm:$0xff]  ;;  %v4029_v9 = vld [vmem:[#allocation62_spill] sm:$0xff] }
 0x16e   :  { %2906 = vmatpush1.msk.msra.mxu0 %vm1010_vm0, %v996_v45  ;;  %1327 = vmatprep.mubr.f32.mxu0 %v3101_v3  ;;  %v4027_v45 = vld [vmem:[#allocation58_spill] sm:$0xff]  ;;  %v4030_v29 = vld [vmem:[#allocation65_spill] sm:$0xff] }
 0x16f   :  { %2219 = vmatprep.subr.bf16.mxu0 %v3981_v38  ;;  %v4032_v51 = vld [vmem:[#allocation69_spill] sm:$0xff]  ;;  %v4033_v38 = vld [vmem:[#allocation70_spill] sm:$0xff] }
 0x175   :  { %2907 = vmatmul.mubr.msk.f32.vlgmr.msra.gmra.mrb[8].mxu0 %vm1006_vm1, %v3702_v21 }
 0x176   :  { %2220 = vmatpush1.bf16.msra.mxu0 %v3982_v1  ;;  %2251 = vmatprep.mubr.bf16.mxu0 %v3626_v13  ;;  %v4034_v1 = vld [vmem:[#allocation73_spill] sm:$0xff] }
 0x177   :  { %2221 = vmatprep.subr.bf16.mxu0 %v3983_v2  ;;  %v4035_v2 = vld [vmem:[#allocation74_spill] sm:$0xff] }
 0x17a   :  { %2222 = vmatpush1.bf16.msra.mxu0 %v3984_v14  ;;  %v4036_v14 = vld [vmem:[#allocation77_spill] sm:$0xff] }
 0x17b   :  { %2223 = vmatprep.subr.bf16.mxu0 %v3985_v47  ;;  %v4037_v47 = vld [vmem:[#allocation78_spill] sm:$0xff] }
 0x17e   :  { %2224 = vmatpush1.bf16.msra.mxu0 %v3986_v5  ;;  %v4038_v5 = vld [vmem:[#allocation79_spill] sm:$0xff] }
 0x17f   :  { %2225 = vmatprep.subr.bf16.mxu0 %v3987_v10 }
 0x182   :  { %2226 = vmatpush1.bf16.msra.mxu0 %v3988_v18 }
 0x183   :  { %2227 = vmatprep.subr.bf16.mxu0 %v3989_v20 }
 0x186   :  { %2228 = vmatpush1.bf16.msra.mxu0 %v3990_v26 }
 0x187   :  { %2229 = vmatprep.subr.bf16.mxu0 %v3991_v28 }
 0x18a   :  { %2230 = vmatpush1.bf16.msra.mxu0 %v3992_v35 }
 0x18b   :  { %2231 = vmatprep.subr.bf16.mxu0 %v3993_v37 }
 0x18e   :  { %2232 = vmatpush1.bf16.msra.mxu0 %v3994_v44 }
 0x18f   :  { %2233 = vmatprep.subr.bf16.mxu0 %v3995_v46 }
 0x192   :  { %2234 = vmatpush1.bf16.msra.mxu0 %v3996_v54 }
 0x193   :  { %2235 = vmatprep.subr.bf16.mxu0 %v3997_v56 }
 0x196   :  { %2236 = vmatpush1.bf16.msra.mxu0 %v3998_v59 }
 0x197   :  { %2237 = vmatprep.subr.bf16.mxu0 %v3999_v11 }
 0x19a   :  { %2238 = vmatpush1.bf16.msra.mxu0 %v4000_v31 }
 0x19b   :  { %2239 = vmatprep.subr.bf16.mxu0 %v4001_v52 }
 0x19e   :  { %2240 = vmatpush1.bf16.msra.mxu0 %v4002_v58 }
 0x19f   :  { %2241 = vmatprep.subr.bf16.mxu0 %v4003_v4 }
 0x1a2   :  { %2242 = vmatpush1.bf16.msra.mxu0 %v4004_v7 }
 0x1a3   :  { %2243 = vmatprep.subr.bf16.mxu0 %v4005_v53 }
 0x1a6   :  { %2244 = vmatpush1.bf16.msra.mxu0 %v4006_v25 }
 0x1a7   :  { %2245 = vmatprep.subr.bf16.mxu0 %v4007_v39 }
 0x1a9   :  { %v2212_v10 = vpop.f32.mrb[8].mxu1 }
 0x1aa   :  { %2246 = vmatpush1.bf16.msra.mxu0 %v4008_v0  ;;  %v2214_v18 = vpop.f32.mrb[9].mxu1 }
 0x1ab   :  { %2247 = vmatprep.subr.bf16.mxu0 %v4009_v16  ;;  %v2216_v20 = vpop.f32.mrb[10].mxu1 }
 0x1ac   :  { %v2217_v26 = vpop.f32.mrb[11].mxu1 }
 0x1ae   :  { %2248 = vmatpush1.bf16.msra.mxu0 %v4010_v23 }
 0x1af   :  { %2249 = vmatprep.subr.bf16.mxu0 %v4011_v43 }
 0x1b2   :  { %2250 = vmatpush1.bf16.msra.mxu0 %v4012_v49 }
 0x1b3   :  { %2301 = vmatprep.subr.bf16.mxu0 %v4013_v32 }
 0x1b5   :  { %2252 = vmatmul.mubr.bf16.vlgmr.msra.gmra.mrb[12].mxu0 %v3628_v34 }
 0x1b6   :  { %2302 = vmatpush1.bf16.msra.mxu0 %v4014_v41  ;;  %2333 = vmatprep.mubr.bf16.mxu0 %v3626_v13  ;;  %v4025_v13 = vld [vmem:[#allocation54_spill] sm:$0xff] }
 0x1b7   :  { %2303 = vmatprep.subr.bf16.mxu0 %v4015_v6 }
 0x1ba   :  { %2304 = vmatpush1.bf16.msra.mxu0 %v4016_v30 }
 0x1bb   :  { %2305 = vmatprep.subr.bf16.mxu0 %v4017_v61 }
 0x1be   :  { %2306 = vmatpush1.bf16.msra.mxu0 %v4018_v33 }
 0x1bf   :  { %2307 = vmatprep.subr.bf16.mxu0 %v4019_v22 }
 0x1c2   :  { %2308 = vmatpush1.bf16.msra.mxu0 %v4020_v12 }
 0x1c3   :  { %2309 = vmatprep.subr.bf16.mxu0 %v4021_v60 }
 0x1c6   :  { %2310 = vmatpush1.bf16.msra.mxu0 %v4022_v42 }
 0x1c7   :  { %2311 = vmatprep.subr.bf16.mxu0 %v4023_v55 }
 0x1ca   :  { %2312 = vmatpush1.bf16.msra.mxu0 %v4024_v15 }
 0x1cb   :  { %2313 = vmatprep.subr.bf16.mxu0 %v4025_v13 }
 0x1ce   :  { %2314 = vmatpush1.bf16.msra.mxu0 %v4026_v48 }
 0x1cf   :  { %2315 = vmatprep.subr.bf16.mxu0 %v4027_v45  ;;  %v3102_v45 = vmov 1966171168  }
 0x1d2   :  { %2316 = vmatpush1.bf16.msra.mxu0 %v4028_v36  ;;  %v2714_v36 = vunpack.c.l.s4 %v3102_v45 }
 0x1d3   :  { %2317 = vmatprep.subr.bf16.mxu0 %v4029_v9 }
 0x1d4   :  { %v2715_v20 = vunpack.c.0.s8 %v2714_v36 }
 0x1d6   :  { %2318 = vmatpush1.bf16.msra.mxu0 %v4030_v29 }
 0x1d7   :  { %2319 = vmatprep.subr.bf16.mxu0 %v4031_v24 }
 0x1da   :  { %2320 = vmatpush1.bf16.msra.mxu0 %v4032_v51 }
 0x1db   :  { %2321 = vmatprep.subr.bf16.mxu0 %v4033_v38 }
 0x1de   :  { %2322 = vmatpush1.bf16.msra.mxu0 %v4034_v1 }
 0x1df   :  { %2323 = vmatprep.subr.bf16.mxu0 %v4035_v2 }
 0x1e2   :  { %2324 = vmatpush1.bf16.msra.mxu0 %v4036_v14 }
 0x1e3   :  { %2325 = vmatprep.subr.bf16.mxu0 %v4037_v47 }
 0x1e6   :  { %2326 = vmatpush1.bf16.msra.mxu0 %v3538_v40 }
 0x1e7   :  { %2327 = vmatprep.subr.bf16.mxu0 %v4038_v5 }
 0x1e9   :  { %v2294_v28 = vpop.f32.mrb[12].mxu1 }
 0x1ea   :  { %2328 = vmatpush1.bf16.msra.mxu0 %v3550_v17  ;;  %v2296_v40 = vpop.f32.mrb[13].mxu1 }
 0x1eb   :  { %2329 = vmatprep.subr.bf16.mxu0 %v3553_v57  ;;  %v2298_v35 = vpop.f32.mrb[14].mxu1 }
 0x1ec   :  { %v2299_v37 = vpop.f32.mrb[15].mxu1 }
 0x1ee   :  { %2330 = vmatpush1.bf16.msra.mxu0 %v3562_v63 }
 0x1ef   :  { %2331 = vmatprep.subr.bf16.mxu0 %v3565_v27 }
 0x1f2   :  { %2332 = vmatpush1.bf16.msra.mxu0 %v3572_v8 }
 0x1f5   :  { %2334 = vmatmul.mubr.bf16.vlgmr.msra.gmra.mrb[16].mxu0 %v3628_v34 }
 0x248   :  { %v1329_v44 = vpop.f32.mrb[8].mxu0 }
 0x249   :  { %v1331_v17 = vpop.f32.mrb[9].mxu0  ;;  %v1336_v11 = vrot.slane %v1329_v44, 4 }
 0x24a   :  { %v3055_v46 = vpack.c.bf16 %v1331_v17, %v1329_v44  ;;  %v1351_v59 = vmul.f32 %v1331_v17, %v1331_v17  ;;  %v1342_v31 = vrot.slane %v1331_v17, 4 }
 0x24c   :  { %1374 = vst [vmem:[%s3811_s5] sm:$0xff] %v3055_v46  ;;  %v1358_v58 = vrot.slane %v1351_v59, 4  ;;  %v1343_v4 = vadd.f32 %v1342_v31, %v1331_v17  ;;  %v4040_v31 = vlaneseq }
 0x24e   :  { %v1359_v7 = vadd.f32 %v1358_v58, %v1351_v59  ;;  %v1344_v25 = vrot.slane %v1343_v4, 2  ;;  %vm2730_vm2 = vcmp.lt.s32.totalorder %v4040_v31, 256 }
 0x250   :  { %v1360_v49 = vrot.slane %v1359_v7, 2  ;;  %v1345_v33 = vadd.f32 %v1344_v25, %v1343_v4 }
 0x252   :  { %v1361_v15 = vadd.f32 %v1360_v49, %v1359_v7  ;;  %v1346_v51 = vrot.slane %v1345_v33, 1 }
 0x254   :  { %v1362_v5 = vrot.slane %v1361_v15, 1  ;;  %v1347_v35 = vadd.f32 %v1346_v51, %v1345_v33 }
 0x288   :  { %v2253_v57 = vpop.f32.mrb[12].mxu0 }
 0x289   :  { %v2255_v63 = vpop.f32.mrb[13].mxu0 }
 0x28a   :  { %v2257_v27 = vpop.f32.mrb[14].mxu0  ;;  %3039 = vmatprep.subr.msk.mxu1 %vm1010_vm0, %v2255_v63  ;;  %v1363_v63 = vadd.f32 %v1362_v5, %v1361_v15 }
 0x28b   :  { %v2258_v8 = vpop.f32.mrb[15].mxu0  ;;  %3040 = vmatpush1.msk.msra.mxu1 %vm1010_vm0, %v2253_v57 }
 0x28c   :  { %3042 = vmatprep.subr.msk.mxu1 %vm1010_vm0, %v2214_v18  ;;  %3041 = vmatmul.mubr.msk.f32.vlgmr.msra.gmra.mrb[16].mxu1 %vm1006_vm1, %v3634_v50 }
 0x28d   :  { %3043 = vmatpush1.msk.msra.mxu1 %vm1010_vm0, %v2212_v10  ;;  %2497 = vmatprep.mubr.f32.mxu1 %v3101_v3 }
 0x28e   :  { %3046 = vmatprep.subr.msk.mxu1 %vm1010_vm0, %v2296_v40 }
 0x294   :  { %3044 = vmatmul.mubr.msk.f32.vlgmr.msra.gmra.mrb[16].mxu1 %vm1006_vm1, %v3652_v62  ;;  %v1350_v62 = vmul.f32 %v1329_v44, %v1329_v44 }
 0x295   :  { %3047 = vmatpush1.msk.msra.mxu1 %vm1010_vm0, %v2294_v28  ;;  %2578 = vmatprep.mubr.f32.mxu1 %v3101_v3 }
 0x296   :  { %v1352_v52 = vrot.slane %v1350_v62, 4 }
 0x29c   :  { %3048 = vmatmul.mubr.msk.f32.vlgmr.msra.gmra.mrb[16].mxu1 %vm1006_vm1, %v3687_v19  ;;  %v1337_v19 = vadd.f32 %v1336_v11, %v1329_v44 }
 0x29d   :  { %2661 = vmatprep.mubr.f32.mxu1 %v3101_v3  ;;  %v1353_v3 = vadd.f32 %v1352_v52, %v1350_v62 }
 0x29e   :  { %v1338_v53 = vrot.slane %v1337_v19, 2 }
 0x29f   :  { %v1354_v0 = vrot.slane %v1353_v3, 2 }
 0x2a0   :  { %v1339_v6 = vadd.f32 %v1338_v53, %v1337_v19 }
 0x2a1   :  { %v1355_v60 = vadd.f32 %v1354_v0, %v1353_v3 }
 0x2a2   :  { %v1340_v9 = vrot.slane %v1339_v6, 1 }
 0x2a3   :  { %v1356_v2 = vrot.slane %v1355_v60, 1 }
 0x2a4   :  { %v1341_v26 = vadd.f32 %v1340_v9, %v1339_v6 }
 0x2a5   :  { %v1357_v17 = vadd.f32 %v1356_v2, %v1355_v60 }
 0x2c8   :  { %v2335_v34 = vpop.f32.mrb[16].mxu0 }
 0x2c9   :  { %v2337_v50 = vpop.f32.mrb[17].mxu0 }
 0x2ca   :  { %v2339_v54 = vpop.f32.mrb[18].mxu0  ;;  %3050 = vmatprep.subr.msk.mxu1 %vm1010_vm0, %v2337_v50 }
 0x2cb   :  { %v2340_v56 = vpop.f32.mrb[19].mxu0  ;;  %3051 = vmatpush1.msk.msra.mxu1 %vm1010_vm0, %v2335_v34  ;;  %v4039_v34 = vld [vmem:[#allocation14_spill] sm:$0xff] }
 0x2cc   :  { %3052 = vmatmul.mubr.msk.f32.vlgmr.msra.gmra.mrb[16].mxu1 %vm1006_vm1, %v3702_v21  ;;  %v2718_v50 = vsub.s32 %v2715_v20, %v4039_v34 }
 0x39f   :  { %v2663_v39 = vpop.f32.mrb[16].mxu1 }
 0x3a0   :  { %v2670_v16 = vrot.slane %v2663_v39, 4  ;;  %v2684_v23 = vmul.f32 %v2663_v39, %v2663_v39  ;;  %v2665_v43 = vpop.f32.mrb[17].mxu1 }
 0x3a1   :  { %v2676_v32 = vrot.slane %v2665_v43, 4  ;;  %v2685_v21 = vmul.f32 %v2665_v43, %v2665_v43  ;;  %v3056_v41 = vpack.c.bf16 %v2665_v43, %v2663_v39 }
 0x3a2   :  { %v2671_v30 = vadd.f32 %v2670_v16, %v2663_v39  ;;  %v2686_v61 = vrot.slane %v2684_v23, 4 }
 0x3a3   :  { %v2677_v22 = vadd.f32 %v2676_v32, %v2665_v43  ;;  %v2692_v12 = vrot.slane %v2685_v21, 4  ;;  %3054 = vst [vmem:[%s3811_s5 + $0x8] sm:$0xff] %v3056_v41 }
 0x3a4   :  { %v2672_v42 = vrot.slane %v2671_v30, 2  ;;  %v2687_v55 = vadd.f32 %v2686_v61, %v2684_v23 }
 0x3a5   :  { %v2678_v13 = vrot.slane %v2677_v22, 2  ;;  %v2693_v48 = vadd.f32 %v2692_v12, %v2685_v21 }
 0x3a6   :  { %v2673_v29 = vadd.f32 %v2672_v42, %v2671_v30  ;;  %v2688_v24 = vrot.slane %v2687_v55, 2 }
 0x3a7   :  { %v2679_v38 = vadd.f32 %v2678_v13, %v2677_v22  ;;  %v2694_v1 = vrot.slane %v2693_v48, 2 }
 0x3a8   :  { %v2674_v14 = vrot.slane %v2673_v29, 1  ;;  %v2689_v47 = vadd.f32 %v2688_v24, %v2687_v55 }
 0x3a9   :  { %v2680_v10 = vrot.slane %v2679_v38, 1  ;;  %v2695_v18 = vadd.f32 %v2694_v1, %v2693_v48 }
 0x3aa   :  { %v2675_v28 = vadd.f32 %v2674_v14, %v2673_v29  ;;  %v2690_v40 = vrot.slane %v2689_v47, 1 }
 0x3ab   :  { %v2681_v37 = vadd.f32 %v2680_v10, %v2679_v38  ;;  %v2696_v44 = vrot.slane %v2695_v18, 1 }
 0x3ac   :  { %v2682_v46 = vadd.f32 %v2675_v28, %v1341_v26  ;;  %v2691_v57 = vadd.f32 %v2690_v40, %v2689_v47 }
 0x3ad   :  { %v2683_v27 = vadd.f32 %v2681_v37, %v1347_v35  ;;  %v2697_v8 = vadd.f32 %v2696_v44, %v2695_v18 }
 0x3ae   :  { %v2698_v54 = vadd.f32 %v2691_v57, %v1357_v17 }
 0x3af   :  { %v2699_v56 = vadd.f32 %v2697_v8, %v1363_v63  ;;  %v2712_v62 = vcombine.low %v2682_v46, %v2683_v27 }
 0x3b1   :  { %v2719_v59 = vrot.slane %v2712_v62, %v2718_v50  ;;  %v2735_v11 = vcombine.low %v2698_v54, %v2699_v56 }
 0x3b3   :  { %v2726_v52 = vrot.slane %v2719_v59, %v2718_v50  ;;  %v2742_v58 = vrot.slane %v2735_v11, %v2718_v50 }
 0x3b5   :  { %2732 = vst.msk [vmem:[%s3812_s6] sm:$0x3] %vm2730_vm2, %v2726_v52  ;;  %v2749_v19 = vrot.slane %v2742_v58, %v2718_v50 }
 0x3b7   :  { %2751 = vst.msk [vmem:[%s3813_s7] sm:$0x3] %vm2730_vm2, %v2749_v19 }
 0x3b8   :  { %2764 = vsyncpa [#allocation3], 1 }

// kernel: generator_forward.6
= control target key start
LH: loop header
LB: loop body
LE: loop exit
PB: predicated region body
PF: predicated region fallthrough
CT: control target
= control target key end

     0   :  { %v4259_v32 = vlaneseq  ;;  %vm995_vm0 = vcmask 64512   ;;  %s4251_s1 = inlined_call_operand.vmem [shape: bf16[256,1024], index: 1, kind: input, shape index: {}]   ;;  %s4252_s0 = inlined_call_operand.vmem [shape: bf16[2,8,256], index: 0, kind: input, shape index: {}]   ;;  %s4253_s3 = inlined_call_operand.vmem [shape: f32[1,256], index: 3, kind: input, shape index: {}]   ;;  %s4254_s4 = inlined_call_operand.vmem [shape: f32[1,256], index: 4, kind: input, shape index: {}]   ;;  %s4255_s2 = inlined_call_operand.vmem [shape: f32[4,16,8], index: 2, kind: input, shape index: {}]   ;;  %s4256_s5 = inlined_call_operand.vmem [shape: bf16[2,16,256], index: 5, kind: output, shape index: {0}]   ;;  %s4257_s6 = inlined_call_operand.vmem [shape: f32[1,1,256], index: 6, kind: output, shape index: {1}]   ;;  %s4258_s7 = inlined_call_operand.vmem [shape: f32[1,1,256], index: 7, kind: output, shape index: {2}]  }
   0x1   :  { %v58_v0 = vld [vmem:[%s4251_s1] sm:$0xff]  ;;  %v59_v2 = vld [vmem:[%s4251_s1 + $0x8] sm:$0xff] }
   0x2   :  { %v62_v1 = vld [vmem:[%s4251_s1 + $0x20] sm:$0xff]  ;;  %v63_v4 = vld [vmem:[%s4251_s1 + $0x28] sm:$0xff]  ;;  %v3293_v41 = vshrl.u32 %v4259_v32, 7 }
   0x3   :  { %v3185_v3 = vcombine.high %v58_v0, %v62_v1  ;;  %v3190_v5 = vcombine.low %v58_v0, %v62_v1  ;;  %v66_v6 = vld [vmem:[%s4251_s1 + $0x40] sm:$0xff]  ;;  %v3198_v8 = vcombine.high %v59_v2, %v63_v4  ;;  %v3200_v9 = vcombine.low %v59_v2, %v63_v4  ;;  %v67_v11 = vld [vmem:[%s4251_s1 + $0x48] sm:$0xff] }
   0x4   :  { %v70_v7 = vld [vmem:[%s4251_s1 + $0x60] sm:$0xff]  ;;  %v71_v12 = vld [vmem:[%s4251_s1 + $0x68] sm:$0xff]  ;;  %4344 = vst [vmem:[#allocation11_spill] sm:$0xff] %v3293_v41  ;;  %v3320_v50 = vsub.s32 1, %v3293_v41 }
   0x5   :  { %4335 = vst [vmem:[#allocation2_spill] sm:$0xff] %v3198_v8  ;;  %4336 = vst [vmem:[#allocation3_spill] sm:$0xff] %v3200_v9  ;;  %v3202_v10 = vcombine.high %v66_v6, %v70_v7  ;;  %v74_v13 = vld [vmem:[%s4251_s1 + $0x80] sm:$0xff]  ;;  %826 = vmatprep.subr.bf16.mxu0 %v3185_v3  ;;  %v3214_v14 = vcombine.high %v67_v11, %v71_v12  ;;  %v75_v16 = vld [vmem:[%s4251_s1 + $0x88] sm:$0xff]  ;;  %867 = vmatprep.subr.bf16.mxu1 %v3198_v8 }
   0x6   :  { %v78_v15 = vld [vmem:[%s4251_s1 + $0xa0] sm:$0xff]  ;;  %v79_v17 = vld [vmem:[%s4251_s1 + $0xa8] sm:$0xff]  ;;  %827 = vmatpush1.bf16.msra.mxu0 %v3190_v5  ;;  %v3227_v18 = vcombine.low %v66_v6, %v70_v7  ;;  %868 = vmatpush1.bf16.msra.mxu1 %v3200_v9  ;;  %v3231_v19 = vcombine.low %v67_v11, %v71_v12  ;;  %v128_v9 = vld [vmem:[%s4251_s1 + $0x230] sm:$0xff] }
   0x7   :  { %4337 = vst [vmem:[#allocation4_spill] sm:$0xff] %v3214_v14  ;;  %828 = vmatprep.subr.bf16.mxu0 %v3202_v10  ;;  %v3233_v20 = vcombine.high %v74_v13, %v78_v15  ;;  %869 = vmatprep.subr.bf16.mxu1 %v3214_v14  ;;  %v3236_v21 = vcombine.high %v75_v16, %v79_v17  ;;  %v82_v22 = vld [vmem:[%s4251_s1 + $0xc0] sm:$0xff]  ;;  %v83_v24 = vld [vmem:[%s4251_s1 + $0xc8] sm:$0xff]  ;;  %v124_v14 = vld [vmem:[%s4251_s1 + $0x210] sm:$0xff] }
   0x8   :  { %4338 = vst [vmem:[#allocation5_spill] sm:$0xff] %v3231_v19  ;;  %v86_v23 = vld [vmem:[%s4251_s1 + $0xe0] sm:$0xff]  ;;  %v87_v25 = vld [vmem:[%s4251_s1 + $0xe8] sm:$0xff]  ;;  %v3251_v26 = vcombine.low %v74_v13, %v78_v15  ;;  %v3255_v27 = vcombine.low %v75_v16, %v79_v17  ;;  %v132_v8 = vld [vmem:[%s4251_s1 + $0x250] sm:$0xff] }
   0x9   :  { %4339 = vst [vmem:[#allocation6_spill] sm:$0xff] %v3236_v21  ;;  %v3257_v28 = vcombine.high %v82_v22, %v86_v23  ;;  %v3260_v29 = vcombine.high %v83_v24, %v87_v25  ;;  %v90_v30 = vld [vmem:[%s4251_s1 + $0x100] sm:$0xff]  ;;  %v91_v33 = vld [vmem:[%s4251_s1 + $0x108] sm:$0xff]  ;;  %v3275_v35 = vcombine.low %v82_v22, %v86_v23  ;;  %v3279_v36 = vcombine.low %v83_v24, %v87_v25 }
   0xa   :  { %829 = vmatpush1.bf16.msra.mxu0 %v3227_v18  ;;  %870 = vmatpush1.bf16.msra.mxu1 %v3231_v19  ;;  %4340 = vst [vmem:[#allocation7_spill] sm:$0xff] %v3255_v27  ;;  %v94_v31 = vld [vmem:[%s4251_s1 + $0x120] sm:$0xff]  ;;  %v95_v34 = vld [vmem:[%s4251_s1 + $0x128] sm:$0xff]  ;;  %v120_v19 = vld [vmem:[%s4251_s1 + $0x1f0] sm:$0xff] }
   0xb   :  { %830 = vmatprep.subr.bf16.mxu0 %v3233_v20  ;;  %871 = vmatprep.subr.bf16.mxu1 %v3236_v21  ;;  %4341 = vst [vmem:[#allocation8_spill] sm:$0xff] %v3260_v29  ;;  %4342 = vst [vmem:[#allocation9_spill] sm:$0xff] %v3279_v36  ;;  %v3281_v37 = vcombine.high %v90_v30, %v94_v31  ;;  %v3284_v38 = vcombine.high %v91_v33, %v95_v34  ;;  %v98_v39 = vld [vmem:[%s4251_s1 + $0x140] sm:$0xff]  ;;  %v99_v42 = vld [vmem:[%s4251_s1 + $0x148] sm:$0xff] }
   0xc   :  { %v102_v40 = vld [vmem:[%s4251_s1 + $0x160] sm:$0xff]  ;;  %v103_v43 = vld [vmem:[%s4251_s1 + $0x168] sm:$0xff]  ;;  %v3302_v44 = vcombine.low %v90_v30, %v94_v31  ;;  %v3306_v45 = vcombine.low %v91_v33, %v95_v34  ;;  %v116_v21 = vld [vmem:[%s4251_s1 + $0x1d0] sm:$0xff] }
   0xd   :  { %4343 = vst [vmem:[#allocation10_spill] sm:$0xff] %v3284_v38  ;;  %v3308_v46 = vcombine.high %v98_v39, %v102_v40  ;;  %v3311_v47 = vcombine.high %v99_v42, %v103_v43  ;;  %v106_v48 = vld [vmem:[%s4251_s1 + $0x180] sm:$0xff]  ;;  %v107_v51 = vld [vmem:[%s4251_s1 + $0x188] sm:$0xff]  ;;  %v3329_v53 = vcombine.low %v98_v39, %v102_v40  ;;  %v3333_v54 = vcombine.low %v99_v42, %v103_v43 }
   0xe   :  { %831 = vmatpush1.bf16.msra.mxu0 %v3251_v26  ;;  %872 = vmatpush1.bf16.msra.mxu1 %v3255_v27  ;;  %4345 = vst [vmem:[#allocation12_spill] sm:$0xff] %v3306_v45  ;;  %v110_v49 = vld [vmem:[%s4251_s1 + $0x1a0] sm:$0xff]  ;;  %v111_v52 = vld [vmem:[%s4251_s1 + $0x1a8] sm:$0xff]  ;;  %v112_v27 = vld [vmem:[%s4251_s1 + $0x1b0] sm:$0xff] }
   0xf   :  { %832 = vmatprep.subr.bf16.mxu0 %v3257_v28  ;;  %873 = vmatprep.subr.bf16.mxu1 %v3260_v29  ;;  %4346 = vst [vmem:[#allocation13_spill] sm:$0xff] %v3311_v47  ;;  %4347 = vst [vmem:[#allocation14_spill] sm:$0xff] %v3333_v54  ;;  %v3335_v55 = vcombine.high %v106_v48, %v110_v49  ;;  %v3340_v56 = vld [vmem:[%s4252_s0] sm:$0xff]  ;;  %v3348_v58 = vcombine.high %v107_v51, %v111_v52  ;;  %v115_v0 = vld [vmem:[%s4251_s1 + $0x1c8] sm:$0xff] }
  0x10   :  { %v3345_v57 = vld [vmem:[%s4253_s3] sm:$0x3]  ;;  %v25_v61 = vunpack.c.h.bf16 %v3340_v56  ;;  %v119_v1 = vld [vmem:[%s4251_s1 + $0x1e8] sm:$0xff]  ;;  %v3373_v4 = vcombine.low %v106_v48, %v110_v49  ;;  %v3377_v7 = vcombine.low %v107_v51, %v111_v52  ;;  %v108_v29 = vld [vmem:[%s4251_s1 + $0x190] sm:$0xff] }
  0x11   :  { %4348 = vst [vmem:[#allocation15_spill] sm:$0xff] %v3348_v58  ;;  %v114_v59 = vld [vmem:[%s4251_s1 + $0x1c0] sm:$0xff]  ;;  %v35_v62 = vrot.slane %v3345_v57, %v3320_v50  ;;  %v3382_v12 = vcombine.high %v115_v0, %v119_v1  ;;  %v123_v17 = vld [vmem:[%s4251_s1 + $0x208] sm:$0xff]  ;;  %v3401_v25 = vcombine.low %v115_v0, %v119_v1 }
  0x12   :  { %833 = vmatpush1.bf16.msra.mxu0 %v3275_v35  ;;  %874 = vmatpush1.bf16.msra.mxu1 %v3279_v36  ;;  %v118_v60 = vld [vmem:[%s4251_s1 + $0x1e0] sm:$0xff]  ;;  %4349 = vst [vmem:[#allocation16_spill] sm:$0xff] %v3377_v7  ;;  %v127_v22 = vld [vmem:[%s4251_s1 + $0x228] sm:$0xff]  ;;  %v104_v36 = vld [vmem:[%s4251_s1 + $0x170] sm:$0xff] }
  0x13   :  { %834 = vmatprep.subr.bf16.mxu0 %v3281_v37  ;;  %875 = vmatprep.subr.bf16.mxu1 %v3284_v38  ;;  %v3362_v63 = vld [vmem:[%s4254_s4] sm:$0x3]  ;;  %v39_v6 = vmul.f32 %v35_v62, %v25_v61  ;;  %v3379_v11 = vcombine.high %v114_v59, %v118_v60  ;;  %4350 = vst [vmem:[#allocation17_spill] sm:$0xff] %v3382_v12  ;;  %4351 = vst [vmem:[#allocation18_spill] sm:$0xff] %v3401_v25  ;;  %v131_v40 = vld [vmem:[%s4251_s1 + $0x248] sm:$0xff] }
  0x14   :  { %v49_v2 = vrot.slane %v3362_v63, %v3320_v50  ;;  %v122_v13 = vld [vmem:[%s4251_s1 + $0x200] sm:$0xff]  ;;  %v3397_v23 = vcombine.low %v114_v59, %v118_v60  ;;  %v3406_v31 = vcombine.high %v123_v17, %v127_v22  ;;  %v135_v42 = vld [vmem:[%s4251_s1 + $0x268] sm:$0xff]  ;;  %v3428_v48 = vcombine.low %v123_v17, %v127_v22  ;;  %v100_v38 = vld [vmem:[%s4251_s1 + $0x150] sm:$0xff] }
  0x15   :  { %v126_v15 = vld [vmem:[%s4251_s1 + $0x220] sm:$0xff]  ;;  %v3433_v51 = vcombine.high %v131_v40, %v135_v42  ;;  %v139_v60 = vld [vmem:[%s4251_s1 + $0x288] sm:$0xff]  ;;  %v3453_v0 = vcombine.low %v131_v40, %v135_v42 }
  0x16   :  { %835 = vmatpush1.bf16.msra.mxu0 %v3302_v44  ;;  %876 = vmatpush1.bf16.msra.mxu1 %v3306_v45  ;;  %v53_v16 = vadd.f32 %v49_v2, %v39_v6  ;;  %v3403_v30 = vcombine.high %v122_v13, %v126_v15  ;;  %4352 = vst [vmem:[#allocation19_spill] sm:$0xff] %v3406_v31  ;;  %v130_v33 = vld [vmem:[%s4251_s1 + $0x240] sm:$0xff]  ;;  %4353 = vst [vmem:[#allocation20_spill] sm:$0xff] %v3428_v48  ;;  %v143_v61 = vld [vmem:[%s4251_s1 + $0x2a8] sm:$0xff] }
  0x17   :  { %836 = vmatprep.subr.bf16.mxu0 %v3308_v46  ;;  %877 = vmatprep.subr.bf16.mxu1 %v3311_v47  ;;  %v134_v34 = vld [vmem:[%s4251_s1 + $0x260] sm:$0xff]  ;;  %v3423_v43 = vcombine.low %v122_v13, %v126_v15  ;;  %4354 = vst [vmem:[#allocation21_spill] sm:$0xff] %v3433_v51  ;;  %4355 = vst [vmem:[#allocation22_spill] sm:$0xff] %v3453_v0  ;;  %v3458_v2 = vcombine.high %v139_v60, %v143_v61  ;;  %v147_v15 = vld [vmem:[%s4251_s1 + $0x2c8] sm:$0xff] }
  0x18   :  { %v55_v24 = vmax.f32 %v53_v16, 0.0  ;;  %v3430_v49 = vcombine.high %v130_v33, %v134_v34  ;;  %v138_v52 = vld [vmem:[%s4251_s1 + $0x280] sm:$0xff]  ;;  %v3449_v62 = vcombine.low %v130_v33, %v134_v34  ;;  %v151_v16 = vld [vmem:[%s4251_s1 + $0x2e8] sm:$0xff]  ;;  %v3477_v22 = vcombine.low %v139_v60, %v143_v61  ;;  %v88_v47 = vld [vmem:[%s4251_s1 + $0xf0] sm:$0xff] }
  0x19   :  { %v142_v59 = vld [vmem:[%s4251_s1 + $0x2a0] sm:$0xff]  ;;  %4356 = vst [vmem:[#allocation23_spill] sm:$0xff] %v3458_v2  ;;  %v3482_v33 = vcombine.high %v147_v15, %v151_v16  ;;  %v155_v42 = vld [vmem:[%s4251_s1 + $0x308] sm:$0xff]  ;;  %v3504_v61 = vcombine.low %v147_v15, %v151_v16  ;;  %v24_v16 = vunpack.c.l.bf16 %v3340_v56  ;;  %v92_v45 = vld [vmem:[%s4251_s1 + $0x110] sm:$0xff] }
  0x1a   :  { %837 = vmatpush1.bf16.msra.mxu0 %v3329_v53  ;;  %878 = vmatpush1.bf16.msra.mxu1 %v3333_v54  ;;  %v3414_v39 = vpack.c.bf16 %v55_v24, %v55_v24  ;;  %v3455_v1 = vcombine.high %v138_v52, %v142_v59  ;;  %v146_v6 = vld [vmem:[%s4251_s1 + $0x2c0] sm:$0xff]  ;;  %v3473_v17 = vcombine.low %v138_v52, %v142_v59  ;;  %v159_v52 = vld [vmem:[%s4251_s1 + $0x328] sm:$0xff]  ;;  %v3497_v59 = vsub.s32 0, %v3293_v41  ;;  %v84_v54 = vld [vmem:[%s4251_s1 + $0xd0] sm:$0xff] }
  0x1b   :  { %838 = vmatprep.subr.bf16.mxu0 %v3335_v55  ;;  %879 = vmatprep.subr.bf16.mxu1 %v3348_v58  ;;  %v150_v13 = vld [vmem:[%s4251_s1 + $0x2e0] sm:$0xff]  ;;  %4357 = vst [vmem:[#allocation24_spill] sm:$0xff] %v3477_v22  ;;  %4358 = vst [vmem:[#allocation25_spill] sm:$0xff] %v3482_v33  ;;  %v167_v15 = vld [vmem:[%s4251_s1 + $0x368] sm:$0xff] }
  0x1c   :  { %858 = vmatprep.mubr.bf16.mxu0 %v3414_v39  ;;  %899 = vmatprep.mubr.bf16.mxu1 %v3414_v39  ;;  %v3479_v24 = vcombine.high %v146_v6, %v150_v13  ;;  %v154_v34 = vld [vmem:[%s4251_s1 + $0x300] sm:$0xff]  ;;  %v3500_v60 = vcombine.low %v146_v6, %v150_v13  ;;  %4359 = vst [vmem:[#allocation26_spill] sm:$0xff] %v3504_v61  ;;  %v163_v13 = vld [vmem:[%s4251_s1 + $0x348] sm:$0xff]  ;;  %v80_v58 = vld [vmem:[%s4251_s1 + $0xb0] sm:$0xff] }
  0x1d   :  { %v158_v40 = vld [vmem:[%s4251_s1 + $0x320] sm:$0xff] }
  0x1e   :  { %839 = vmatpush1.bf16.msra.mxu0 %v3373_v4  ;;  %880 = vmatpush1.bf16.msra.mxu1 %v3377_v7  ;;  %v3506_v32 = vcombine.high %v154_v34, %v158_v40  ;;  %v162_v41 = vld [vmem:[%s4251_s1 + $0x340] sm:$0xff]  ;;  %v76_v7 = vld [vmem:[%s4251_s1 + $0x90] sm:$0xff] }
  0x1f   :  { %840 = vmatprep.subr.bf16.mxu0 %v3379_v11  ;;  %881 = vmatprep.subr.bf16.mxu1 %v3382_v12  ;;  %v166_v6 = vld [vmem:[%s4251_s1 + $0x360] sm:$0xff]  ;;  %v72_v12 = vld [vmem:[%s4251_s1 + $0x70] sm:$0xff] }
  0x20   :  { %v170_v56 = vld [vmem:[%s4251_s1 + $0x380] sm:$0xff] }
  0x22   :  { %841 = vmatpush1.bf16.msra.mxu0 %v3397_v23  ;;  %882 = vmatpush1.bf16.msra.mxu1 %v3401_v25 }
  0x23   :  { %842 = vmatprep.subr.bf16.mxu0 %v3403_v30  ;;  %883 = vmatprep.subr.bf16.mxu1 %v3406_v31 }
  0x26   :  { %843 = vmatpush1.bf16.msra.mxu0 %v3423_v43  ;;  %884 = vmatpush1.bf16.msra.mxu1 %v3428_v48  ;;  %v3536_v48 = vcombine.high %v163_v13, %v167_v15 }
  0x27   :  { %844 = vmatprep.subr.bf16.mxu0 %v3430_v49  ;;  %885 = vmatprep.subr.bf16.mxu1 %v3433_v51  ;;  %v3533_v51 = vcombine.high %v162_v41, %v166_v6 }
  0x28   :  { %4362 = vst [vmem:[#allocation29_spill] sm:$0xff] %v3536_v48 }
  0x2a   :  { %845 = vmatpush1.bf16.msra.mxu0 %v3449_v62  ;;  %886 = vmatpush1.bf16.msra.mxu1 %v3453_v0  ;;  %v3531_v0 = vcombine.low %v155_v42, %v159_v52 }
  0x2b   :  { %846 = vmatprep.subr.bf16.mxu0 %v3455_v1  ;;  %887 = vmatprep.subr.bf16.mxu1 %v3458_v2  ;;  %v3509_v2 = vcombine.high %v155_v42, %v159_v52  ;;  %v45_v52 = vrot.slane %v3362_v63, %v3497_v59  ;;  %v178_v63 = vld [vmem:[%s4251_s1 + $0x3c0] sm:$0xff] }
  0x2c   :  { %4361 = vst [vmem:[#allocation28_spill] sm:$0xff] %v3531_v0 }
  0x2d   :  { %4360 = vst [vmem:[#allocation27_spill] sm:$0xff] %v3509_v2 }
  0x2e   :  { %847 = vmatpush1.bf16.msra.mxu0 %v3473_v17  ;;  %888 = vmatpush1.bf16.msra.mxu1 %v3477_v22  ;;  %v3527_v22 = vcombine.low %v154_v34, %v158_v40  ;;  %v171_v34 = vld [vmem:[%s4251_s1 + $0x388] sm:$0xff] }
  0x2f   :  { %848 = vmatprep.subr.bf16.mxu0 %v3479_v24  ;;  %889 = vmatprep.subr.bf16.mxu1 %v3482_v33  ;;  %v31_v33 = vrot.slane %v3345_v57, %v3497_v59  ;;  %v174_v57 = vld [vmem:[%s4251_s1 + $0x3a0] sm:$0xff]  ;;  %v175_v40 = vld [vmem:[%s4251_s1 + $0x3a8] sm:$0xff] }
  0x30   :  { %v3559_v31 = vcombine.high %v170_v56, %v174_v57  ;;  %v3562_v25 = vcombine.high %v171_v34, %v175_v40 }
  0x31   :  { %v38_v42 = vmul.f32 %v31_v33, %v24_v16  ;;  %v179_v33 = vld [vmem:[%s4251_s1 + $0x3c8] sm:$0xff]  ;;  %v3581_v16 = vcombine.low %v171_v34, %v175_v40  ;;  %v61_v34 = vld [vmem:[%s4251_s1 + $0x18] sm:$0xff] }
  0x32   :  { %849 = vmatpush1.bf16.msra.mxu0 %v3500_v60  ;;  %890 = vmatpush1.bf16.msra.mxu1 %v3504_v61  ;;  %v3557_v61 = vcombine.low %v163_v13, %v167_v15  ;;  %4364 = vst [vmem:[#allocation31_spill] sm:$0xff] %v3562_v25  ;;  %v3577_v15 = vcombine.low %v170_v56, %v174_v57  ;;  %v64_v56 = vld [vmem:[%s4251_s1 + $0x30] sm:$0xff]  ;;  %v65_v40 = vld [vmem:[%s4251_s1 + $0x38] sm:$0xff] }
  0x33   :  { %850 = vmatprep.subr.bf16.mxu0 %v3506_v32  ;;  %891 = vmatprep.subr.bf16.mxu1 %v3509_v2  ;;  %v3553_v2 = vcombine.low %v162_v41, %v166_v6  ;;  %v182_v41 = vld [vmem:[%s4251_s1 + $0x3e0] sm:$0xff]  ;;  %v183_v6 = vld [vmem:[%s4251_s1 + $0x3e8] sm:$0xff]  ;;  %v52_v13 = vadd.f32 %v45_v52, %v38_v42  ;;  %4365 = vst [vmem:[#allocation32_spill] sm:$0xff] %v3581_v16  ;;  %v60_v42 = vld [vmem:[%s4251_s1 + $0x10] sm:$0xff] }
  0x34   :  { %4363 = vst [vmem:[#allocation30_spill] sm:$0xff] %v3557_v61  ;;  %v3601_v52 = vcombine.low %v178_v63, %v182_v41 }
  0x35   :  { %v54_v57 = vmax.f32 %v52_v13, 0.0  ;;  %v68_v13 = vld [vmem:[%s4251_s1 + $0x50] sm:$0xff] }
  0x36   :  { %851 = vmatpush1.bf16.msra.mxu0 %v3527_v22  ;;  %892 = vmatpush1.bf16.msra.mxu1 %v3531_v0  ;;  %v3586_v0 = vcombine.high %v179_v33, %v183_v6 }
  0x37   :  { %852 = vmatprep.subr.bf16.mxu0 %v3533_v51  ;;  %893 = vmatprep.subr.bf16.mxu1 %v3536_v48  ;;  %v3583_v48 = vcombine.high %v178_v63, %v182_v41  ;;  %v3616_v63 = vcombine.high %v61_v34, %v65_v40  ;;  %v3618_v41 = vpack.c.bf16 %v54_v57, %v54_v57 }
  0x38   :  { %4366 = vst [vmem:[#allocation33_spill] sm:$0xff] %v3586_v0  ;;  %v3633_v57 = vcombine.low %v61_v34, %v65_v40  ;;  %v81_v34 = vld [vmem:[%s4251_s1 + $0xb8] sm:$0xff]  ;;  %v3653_v40 = vcombine.low %v68_v13, %v72_v12 }
  0x39   :  { %4368 = vst [vmem:[#allocation35_spill] sm:$0xff] %v3616_v63 }
  0x3a   :  { %853 = vmatpush1.bf16.msra.mxu0 %v3553_v2  ;;  %894 = vmatpush1.bf16.msra.mxu1 %v3557_v61  ;;  %v3607_v61 = vcombine.high %v60_v42, %v64_v56  ;;  %4369 = vst [vmem:[#allocation36_spill] sm:$0xff] %v3633_v57 }
  0x3b   :  { %854 = vmatprep.subr.bf16.mxu0 %v3559_v31  ;;  %895 = vmatprep.subr.bf16.mxu1 %v3562_v25  ;;  %v3605_v25 = vcombine.low %v179_v33, %v183_v6  ;;  %v69_v33 = vld [vmem:[%s4251_s1 + $0x58] sm:$0xff] }
  0x3c   :  { %v73_v6 = vld [vmem:[%s4251_s1 + $0x78] sm:$0xff] }
  0x3d   :  { %4367 = vst [vmem:[#allocation34_spill] sm:$0xff] %v3605_v25 }
  0x3e   :  { %855 = vmatpush1.bf16.msra.mxu0 %v3577_v15  ;;  %896 = vmatpush1.bf16.msra.mxu1 %v3581_v16  ;;  %v3631_v16 = vcombine.high %v68_v13, %v72_v12  ;;  %v85_v13 = vld [vmem:[%s4251_s1 + $0xd8] sm:$0xff] }
  0x3f   :  { %856 = vmatprep.subr.bf16.mxu0 %v3583_v48  ;;  %897 = vmatprep.subr.bf16.mxu1 %v3586_v0  ;;  %v3627_v0 = vcombine.low %v60_v42, %v64_v56  ;;  %v3642_v42 = vcombine.high %v69_v33, %v73_v6  ;;  %v77_v56 = vld [vmem:[%s4251_s1 + $0x98] sm:$0xff] }
  0x40   :  { %v3668_v12 = vcombine.high %v77_v56, %v81_v34 }
  0x41   :  { %4370 = vst [vmem:[#allocation37_spill] sm:$0xff] %v3642_v42 }
  0x42   :  { %857 = vmatpush1.bf16.msra.mxu0 %v3601_v52  ;;  %898 = vmatpush1.bf16.msra.mxu1 %v3605_v25  ;;  %v3659_v25 = vcombine.low %v69_v33, %v73_v6  ;;  %4372 = vst [vmem:[#allocation39_spill] sm:$0xff] %v3668_v12  ;;  %v89_v33 = vld [vmem:[%s4251_s1 + $0xf8] sm:$0xff]  ;;  %v3679_v6 = vcombine.low %v76_v7, %v80_v58 }
  0x43   :  { %908 = vmatprep.subr.bf16.mxu0 %v3607_v61  ;;  %949 = vmatprep.subr.bf16.mxu1 %v3616_v63  ;;  %v3657_v63 = vcombine.high %v76_v7, %v80_v58  ;;  %v3694_v58 = vcombine.high %v85_v13, %v89_v33  ;;  %v93_v7 = vld [vmem:[%s4251_s1 + $0x118] sm:$0xff] }
  0x44   :  { %4371 = vst [vmem:[#allocation38_spill] sm:$0xff] %v3659_v25 }
  0x45   :  { %859 = vmatmul.mubr.bf16.vlgmr.msra.gmra.mrb[0].mxu0 %v3618_v41  ;;  %900 = vmatmul.mubr.bf16.vlgmr.msra.gmra.mrb[0].mxu1 %v3618_v41  ;;  %4374 = vst [vmem:[#allocation41_spill] sm:$0xff] %v3694_v58 }
  0x46   :  { %909 = vmatpush1.bf16.msra.mxu0 %v3627_v0  ;;  %950 = vmatpush1.bf16.msra.mxu1 %v3633_v57  ;;  %v3685_v57 = vcombine.low %v77_v56, %v81_v34  ;;  %v97_v56 = vld [vmem:[%s4251_s1 + $0x138] sm:$0xff]  ;;  %v3703_v34 = vcombine.low %v84_v54, %v88_v47 }
  0x47   :  { %910 = vmatprep.subr.bf16.mxu0 %v3631_v16  ;;  %951 = vmatprep.subr.bf16.mxu1 %v3642_v42  ;;  %v3683_v42 = vcombine.high %v84_v54, %v88_v47  ;;  %v3718_v47 = vcombine.high %v93_v7, %v97_v56  ;;  %v101_v54 = vld [vmem:[%s4251_s1 + $0x158] sm:$0xff] }
  0x48   :  { %940 = vmatprep.mubr.bf16.mxu0 %v3414_v39  ;;  %981 = vmatprep.mubr.bf16.mxu1 %v3414_v39  ;;  %4373 = vst [vmem:[#allocation40_spill] sm:$0xff] %v3685_v57  ;;  %v96_v39 = vld [vmem:[%s4251_s1 + $0x130] sm:$0xff] }
  0x49   :  { %4376 = vst [vmem:[#allocation43_spill] sm:$0xff] %v3718_v47 }
  0x4a   :  { %911 = vmatpush1.bf16.msra.mxu0 %v3653_v40  ;;  %952 = vmatpush1.bf16.msra.mxu1 %v3659_v25  ;;  %v3709_v25 = vcombine.low %v85_v13, %v89_v33  ;;  %v105_v13 = vld [vmem:[%s4251_s1 + $0x178] sm:$0xff]  ;;  %v3727_v33 = vcombine.low %v92_v45, %v96_v39 }
  0x4b   :  { %912 = vmatprep.subr.bf16.mxu0 %v3657_v63  ;;  %953 = vmatprep.subr.bf16.mxu1 %v3668_v12  ;;  %v3707_v12 = vcombine.high %v92_v45, %v96_v39  ;;  %v3742_v45 = vcombine.high %v101_v54, %v105_v13  ;;  %v109_v39 = vld [vmem:[%s4251_s1 + $0x198] sm:$0xff] }
  0x4c   :  { %4375 = vst [vmem:[#allocation42_spill] sm:$0xff] %v3709_v25 }
  0x4d   :  { %4378 = vst [vmem:[#allocation45_spill] sm:$0xff] %v3742_v45 }
  0x4e   :  { %913 = vmatpush1.bf16.msra.mxu0 %v3679_v6  ;;  %954 = vmatpush1.bf16.msra.mxu1 %v3685_v57  ;;  %v3733_v57 = vcombine.low %v93_v7, %v97_v56  ;;  %v113_v7 = vld [vmem:[%s4251_s1 + $0x1b8] sm:$0xff]  ;;  %v3751_v56 = vcombine.low %v100_v38, %v104_v36 }
  0x4f   :  { %914 = vmatprep.subr.bf16.mxu0 %v3683_v42  ;;  %955 = vmatprep.subr.bf16.mxu1 %v3694_v58  ;;  %v3731_v58 = vcombine.high %v100_v38, %v104_v36  ;;  %v3766_v36 = vcombine.high %v109_v39, %v113_v7  ;;  %v117_v38 = vld [vmem:[%s4251_s1 + $0x1d8] sm:$0xff] }
  0x50   :  { %4377 = vst [vmem:[#allocation44_spill] sm:$0xff] %v3733_v57 }
  0x51   :  { %4381 = vst [vmem:[#allocation48_spill] sm:$0xff] %v3766_v36 }
  0x52   :  { %915 = vmatpush1.bf16.msra.mxu0 %v3703_v34  ;;  %956 = vmatpush1.bf16.msra.mxu1 %v3709_v25  ;;  %v3757_v25 = vcombine.low %v101_v54, %v105_v13  ;;  %v121_v54 = vld [vmem:[%s4251_s1 + $0x1f8] sm:$0xff]  ;;  %v3775_v13 = vcombine.low %v108_v29, %v112_v27 }
  0x53   :  { %916 = vmatprep.subr.bf16.mxu0 %v3707_v12  ;;  %957 = vmatprep.subr.bf16.mxu1 %v3718_v47  ;;  %v3755_v47 = vcombine.high %v108_v29, %v112_v27  ;;  %v3790_v27 = vcombine.high %v117_v38, %v121_v54  ;;  %v125_v29 = vld [vmem:[%s4251_s1 + $0x218] sm:$0xff] }
  0x54   :  { %4380 = vst [vmem:[#allocation47_spill] sm:$0xff] %v3757_v25  ;;  %4382 = vst [vmem:[#allocation49_spill] sm:$0xff] %v3775_v13 }
  0x55   :  { %4379 = vst [vmem:[#allocation46_spill] sm:$0xff] %v3755_v47  ;;  %4385 = vst [vmem:[#allocation52_spill] sm:$0xff] %v3790_v27 }
  0x56   :  { %917 = vmatpush1.bf16.msra.mxu0 %v3727_v33  ;;  %958 = vmatpush1.bf16.msra.mxu1 %v3733_v57  ;;  %v3781_v57 = vcombine.low %v109_v39, %v113_v7  ;;  %v129_v39 = vld [vmem:[%s4251_s1 + $0x238] sm:$0xff]  ;;  %v3799_v7 = vcombine.low %v116_v21, %v120_v19 }
  0x57   :  { %918 = vmatprep.subr.bf16.mxu0 %v3731_v58  ;;  %959 = vmatprep.subr.bf16.mxu1 %v3742_v45  ;;  %v3779_v45 = vcombine.high %v116_v21, %v120_v19  ;;  %v3814_v19 = vcombine.high %v125_v29, %v129_v39  ;;  %v133_v21 = vld [vmem:[%s4251_s1 + $0x258] sm:$0xff] }
  0x58   :  { %4384 = vst [vmem:[#allocation51_spill] sm:$0xff] %v3781_v57  ;;  %4386 = vst [vmem:[#allocation53_spill] sm:$0xff] %v3799_v7 }
  0x59   :  { %4383 = vst [vmem:[#allocation50_spill] sm:$0xff] %v3779_v45  ;;  %4389 = vst [vmem:[#allocation56_spill] sm:$0xff] %v3814_v19 }
  0x5a   :  { %919 = vmatpush1.bf16.msra.mxu0 %v3751_v56  ;;  %960 = vmatpush1.bf16.msra.mxu1 %v3757_v25  ;;  %v3805_v25 = vcombine.low %v117_v38, %v121_v54  ;;  %v137_v38 = vld [vmem:[%s4251_s1 + $0x278] sm:$0xff]  ;;  %v3823_v54 = vcombine.low %v124_v14, %v128_v9 }
  0x5b   :  { %920 = vmatprep.subr.bf16.mxu0 %v3755_v47  ;;  %961 = vmatprep.subr.bf16.mxu1 %v3766_v36  ;;  %v3803_v36 = vcombine.high %v124_v14, %v128_v9  ;;  %v3838_v9 = vcombine.high %v133_v21, %v137_v38  ;;  %v141_v14 = vld [vmem:[%s4251_s1 + $0x298] sm:$0xff] }
  0x5c   :  { %4388 = vst [vmem:[#allocation55_spill] sm:$0xff] %v3805_v25  ;;  %4390 = vst [vmem:[#allocation57_spill] sm:$0xff] %v3823_v54 }
  0x5d   :  { %4387 = vst [vmem:[#allocation54_spill] sm:$0xff] %v3803_v36  ;;  %4393 = vst [vmem:[#allocation60_spill] sm:$0xff] %v3838_v9 }
  0x5e   :  { %921 = vmatpush1.bf16.msra.mxu0 %v3775_v13  ;;  %962 = vmatpush1.bf16.msra.mxu1 %v3781_v57  ;;  %v136_v13 = vld [vmem:[%s4251_s1 + $0x270] sm:$0xff]  ;;  %v3829_v57 = vcombine.low %v125_v29, %v129_v39  ;;  %v145_v29 = vld [vmem:[%s4251_s1 + $0x2b8] sm:$0xff] }
  0x5f   :  { %922 = vmatprep.subr.bf16.mxu0 %v3779_v45  ;;  %963 = vmatprep.subr.bf16.mxu1 %v3790_v27  ;;  %v3827_v27 = vcombine.high %v132_v8, %v136_v13  ;;  %v140_v45 = vld [vmem:[%s4251_s1 + $0x290] sm:$0xff]  ;;  %v3847_v39 = vcombine.low %v132_v8, %v136_v13  ;;  %v3862_v8 = vcombine.high %v141_v14, %v145_v29  ;;  %v149_v13 = vld [vmem:[%s4251_s1 + $0x2d8] sm:$0xff] }
  0x60   :  { %4392 = vst [vmem:[#allocation59_spill] sm:$0xff] %v3829_v57 }
  0x61   :  { %4391 = vst [vmem:[#allocation58_spill] sm:$0xff] %v3827_v27  ;;  %4394 = vst [vmem:[#allocation61_spill] sm:$0xff] %v3847_v39 }
  0x62   :  { %923 = vmatpush1.bf16.msra.mxu0 %v3799_v7  ;;  %964 = vmatpush1.bf16.msra.mxu1 %v3805_v25  ;;  %v144_v7 = vld [vmem:[%s4251_s1 + $0x2b0] sm:$0xff]  ;;  %v3853_v25 = vcombine.low %v133_v21, %v137_v38  ;;  %4397 = vst [vmem:[#allocation64_spill] sm:$0xff] %v3862_v8  ;;  %v153_v21 = vld [vmem:[%s4251_s1 + $0x2f8] sm:$0xff] }
  0x63   :  { %924 = vmatprep.subr.bf16.mxu0 %v3803_v36  ;;  %965 = vmatprep.subr.bf16.mxu1 %v3814_v19  ;;  %v3851_v19 = vcombine.high %v140_v45, %v144_v7  ;;  %v148_v36 = vld [vmem:[%s4251_s1 + $0x2d0] sm:$0xff]  ;;  %v3871_v38 = vcombine.low %v140_v45, %v144_v7  ;;  %v3886_v45 = vcombine.high %v149_v13, %v153_v21  ;;  %v157_v7 = vld [vmem:[%s4251_s1 + $0x318] sm:$0xff] }
  0x64   :  { %4396 = vst [vmem:[#allocation63_spill] sm:$0xff] %v3853_v25 }
  0x65   :  { %4395 = vst [vmem:[#allocation62_spill] sm:$0xff] %v3851_v19  ;;  %4398 = vst [vmem:[#allocation65_spill] sm:$0xff] %v3871_v38 }
  0x66   :  { %925 = vmatpush1.bf16.msra.mxu0 %v3823_v54  ;;  %966 = vmatpush1.bf16.msra.mxu1 %v3829_v57  ;;  %v152_v54 = vld [vmem:[%s4251_s1 + $0x2f0] sm:$0xff]  ;;  %v3877_v57 = vcombine.low %v141_v14, %v145_v29  ;;  %4401 = vst [vmem:[#allocation68_spill] sm:$0xff] %v3886_v45  ;;  %v161_v14 = vld [vmem:[%s4251_s1 + $0x338] sm:$0xff] }
  0x67   :  { %926 = vmatprep.subr.bf16.mxu0 %v3827_v27  ;;  %967 = vmatprep.subr.bf16.mxu1 %v3838_v9  ;;  %v3875_v9 = vcombine.high %v148_v36, %v152_v54  ;;  %v156_v27 = vld [vmem:[%s4251_s1 + $0x310] sm:$0xff]  ;;  %v3895_v29 = vcombine.low %v148_v36, %v152_v54  ;;  %v3910_v36 = vcombine.high %v157_v7, %v161_v14  ;;  %v165_v54 = vld [vmem:[%s4251_s1 + $0x358] sm:$0xff] }
  0x68   :  { %4400 = vst [vmem:[#allocation67_spill] sm:$0xff] %v3877_v57 }
  0x69   :  { %4399 = vst [vmem:[#allocation66_spill] sm:$0xff] %v3875_v9  ;;  %4402 = vst [vmem:[#allocation69_spill] sm:$0xff] %v3895_v29 }
  0x6a   :  { %927 = vmatpush1.bf16.msra.mxu0 %v3847_v39  ;;  %968 = vmatpush1.bf16.msra.mxu1 %v3853_v25  ;;  %v160_v39 = vld [vmem:[%s4251_s1 + $0x330] sm:$0xff]  ;;  %v3901_v25 = vcombine.low %v149_v13, %v153_v21  ;;  %4405 = vst [vmem:[#allocation72_spill] sm:$0xff] %v3910_v36  ;;  %v169_v13 = vld [vmem:[%s4251_s1 + $0x378] sm:$0xff] }
  0x6b   :  { %928 = vmatprep.subr.bf16.mxu0 %v3851_v19  ;;  %969 = vmatprep.subr.bf16.mxu1 %v3862_v8  ;;  %v3899_v8 = vcombine.high %v156_v27, %v160_v39  ;;  %v164_v19 = vld [vmem:[%s4251_s1 + $0x350] sm:$0xff]  ;;  %v3919_v21 = vcombine.low %v156_v27, %v160_v39  ;;  %v3934_v27 = vcombine.high %v165_v54, %v169_v13  ;;  %v173_v39 = vld [vmem:[%s4251_s1 + $0x398] sm:$0xff] }
  0x6c   :  { %4404 = vst [vmem:[#allocation71_spill] sm:$0xff] %v3901_v25 }
  0x6d   :  { %4403 = vst [vmem:[#allocation70_spill] sm:$0xff] %v3899_v8  ;;  %4406 = vst [vmem:[#allocation73_spill] sm:$0xff] %v3919_v21 }
  0x6e   :  { %929 = vmatpush1.bf16.msra.mxu0 %v3871_v38  ;;  %970 = vmatpush1.bf16.msra.mxu1 %v3877_v57  ;;  %v168_v38 = vld [vmem:[%s4251_s1 + $0x370] sm:$0xff]  ;;  %v3925_v57 = vcombine.low %v157_v7, %v161_v14  ;;  %4409 = vst [vmem:[#allocation76_spill] sm:$0xff] %v3934_v27  ;;  %v177_v7 = vld [vmem:[%s4251_s1 + $0x3b8] sm:$0xff] }
  0x6f   :  { %930 = vmatprep.subr.bf16.mxu0 %v3875_v9  ;;  %971 = vmatprep.subr.bf16.mxu1 %v3886_v45  ;;  %v3923_v45 = vcombine.high %v164_v19, %v168_v38  ;;  %v172_v9 = vld [vmem:[%s4251_s1 + $0x390] sm:$0xff]  ;;  %v3943_v14 = vcombine.low %v164_v19, %v168_v38  ;;  %v3958_v19 = vcombine.high %v173_v39, %v177_v7  ;;  %v181_v38 = vld [vmem:[%s4251_s1 + $0x3d8] sm:$0xff] }
  0x70   :  { %4408 = vst [vmem:[#allocation75_spill] sm:$0xff] %v3925_v57 }
  0x71   :  { %4407 = vst [vmem:[#allocation74_spill] sm:$0xff] %v3923_v45 }
  0x72   :  { %931 = vmatpush1.bf16.msra.mxu0 %v3895_v29  ;;  %972 = vmatpush1.bf16.msra.mxu1 %v3901_v25  ;;  %v176_v29 = vld [vmem:[%s4251_s1 + $0x3b0] sm:$0xff]  ;;  %v3949_v25 = vcombine.low %v165_v54, %v169_v13  ;;  %v185_v54 = vld [vmem:[%s4251_s1 + $0x3f8] sm:$0xff] }
  0x73   :  { %932 = vmatprep.subr.bf16.mxu0 %v3899_v8  ;;  %973 = vmatprep.subr.bf16.mxu1 %v3910_v36  ;;  %v3947_v36 = vcombine.high %v172_v9, %v176_v29  ;;  %v180_v8 = vld [vmem:[%s4251_s1 + $0x3d0] sm:$0xff]  ;;  %v3967_v13 = vcombine.low %v172_v9, %v176_v29  ;;  %v3983_v9 = vcombine.low %v181_v38, %v185_v54  ;;  %v4110_v29 = vld [vmem:[%s4255_s2 + $0x20] sm:$0xff] }
  0x76   :  { %933 = vmatpush1.bf16.msra.mxu0 %v3919_v21  ;;  %974 = vmatpush1.bf16.msra.mxu1 %v3925_v57  ;;  %v184_v21 = vld [vmem:[%s4251_s1 + $0x3f0] sm:$0xff]  ;;  %v3973_v57 = vcombine.low %v173_v39, %v177_v7 }
  0x77   :  { %934 = vmatprep.subr.bf16.mxu0 %v3923_v45  ;;  %975 = vmatprep.subr.bf16.mxu1 %v3934_v27  ;;  %v3971_v27 = vcombine.high %v180_v8, %v184_v21  ;;  %v3976_v45 = vcombine.high %v181_v38, %v185_v54  ;;  %v3979_v47 = vcombine.low %v180_v8, %v184_v21  ;;  %v4129_v38 = vld [vmem:[%s4255_s2 + $0x30] sm:$0xff]  ;;  %v4426_v54 = vld [vmem:[#allocation3_spill] sm:$0xff] }
  0x7a   :  { %935 = vmatpush1.bf16.msra.mxu0 %v3943_v14  ;;  %976 = vmatpush1.bf16.msra.mxu1 %v3949_v25 }
  0x7b   :  { %936 = vmatprep.subr.bf16.mxu0 %v3947_v36  ;;  %977 = vmatprep.subr.bf16.mxu1 %v3958_v19 }
  0x7e   :  { %937 = vmatpush1.bf16.msra.mxu0 %v3967_v13  ;;  %978 = vmatpush1.bf16.msra.mxu1 %v3973_v57 }
  0x7f   :  { %938 = vmatprep.subr.bf16.mxu0 %v3971_v27  ;;  %979 = vmatprep.subr.bf16.mxu1 %v3976_v45 }
  0x82   :  { %939 = vmatpush1.bf16.msra.mxu0 %v3979_v47  ;;  %980 = vmatpush1.bf16.msra.mxu1 %v3983_v9 }
  0x83   :  { %2196 = vmatprep.subr.bf16.mxu1 %v3185_v3  ;;  %v3134_v3 = vmov 0.0  }
  0x85   :  { %941 = vmatmul.mubr.bf16.vlgmr.msra.gmra.mrb[4].mxu0 %v3618_v41  ;;  %982 = vmatmul.mubr.bf16.vlgmr.msra.gmra.mrb[4].mxu1 %v3618_v41  ;;  %v4418_v41 = vld [vmem:[#allocation62_spill] sm:$0xff] }
  0x86   :  { %2197 = vmatpush1.bf16.msra.mxu1 %v3190_v5  ;;  %1066 = vmatprep.mubr.f32.mxu0 %v3134_v3  ;;  %v2957_v5 = vld [vmem:[%s4252_s0 + $0x8] sm:$0xff] }
  0x87   :  { %2198 = vmatprep.subr.bf16.mxu1 %v3202_v10  ;;  %v1396_v10 = vld [vmem:[%s4253_s3] sm:$0x3] }
  0x8a   :  { %2199 = vmatpush1.bf16.msra.mxu1 %v3227_v18  ;;  %v1395_v18 = vunpack.c.h.bf16 %v2957_v5 }
  0x8b   :  { %2200 = vmatprep.subr.bf16.mxu1 %v3233_v20  ;;  %v1405_v20 = vrot.slane %v1396_v10, %v3320_v50 }
  0x8e   :  { %2201 = vmatpush1.bf16.msra.mxu1 %v3251_v26  ;;  %v1410_v26 = vld [vmem:[%s4254_s4] sm:$0x3] }
  0x8f   :  { %2202 = vmatprep.subr.bf16.mxu1 %v3257_v28  ;;  %v1394_v28 = vunpack.c.l.bf16 %v2957_v5  ;;  %v4427_v5 = vld [vmem:[#allocation4_spill] sm:$0xff] }
  0x92   :  { %2203 = vmatpush1.bf16.msra.mxu1 %v3275_v35  ;;  %v1409_v35 = vmul.f32 %v1405_v20, %v1395_v18  ;;  %v4429_v18 = vld [vmem:[#allocation6_spill] sm:$0xff]  ;;  %v4430_v20 = vld [vmem:[#allocation7_spill] sm:$0xff] }
  0x93   :  { %2204 = vmatprep.subr.bf16.mxu1 %v3281_v37  ;;  %v1419_v37 = vrot.slane %v1410_v26, %v3320_v50  ;;  %v4045_v50 = vld [vmem:[%s4255_s2 + $0x10] sm:$0xff] }
  0x96   :  { %2205 = vmatpush1.bf16.msra.mxu1 %v3302_v44 }
  0x97   :  { %2206 = vmatprep.subr.bf16.mxu1 %v3308_v46  ;;  %v1415_v46 = vrot.slane %v1410_v26, %v3497_v59  ;;  %v4431_v26 = vld [vmem:[#allocation8_spill] sm:$0xff] }
  0x9a   :  { %2207 = vmatpush1.bf16.msra.mxu1 %v3329_v53  ;;  %v1423_v53 = vadd.f32 %v1419_v37, %v1409_v35  ;;  %v4434_v35 = vld [vmem:[#allocation12_spill] sm:$0xff]  ;;  %v4435_v37 = vld [vmem:[#allocation13_spill] sm:$0xff] }
  0x9b   :  { %2208 = vmatprep.subr.bf16.mxu1 %v3335_v55 }
  0x9e   :  { %2209 = vmatpush1.bf16.msra.mxu1 %v3373_v4  ;;  %v1425_v4 = vmax.f32 %v1423_v53, 0.0  ;;  %v4438_v53 = vld [vmem:[#allocation16_spill] sm:$0xff] }
  0x9f   :  { %2210 = vmatprep.subr.bf16.mxu1 %v3379_v11 }
  0xa2   :  { %2211 = vmatpush1.bf16.msra.mxu1 %v3397_v23  ;;  %v4037_v23 = vpack.c.bf16 %v1425_v4, %v1425_v4  ;;  %v4440_v4 = vld [vmem:[#allocation18_spill] sm:$0xff] }
  0xa3   :  { %2212 = vmatprep.subr.bf16.mxu1 %v3403_v30 }
  0xa4   :  { %2228 = vmatprep.mubr.bf16.mxu1 %v4037_v23 }
  0xa6   :  { %2213 = vmatpush1.bf16.msra.mxu1 %v3423_v43 }
  0xa7   :  { %2214 = vmatprep.subr.bf16.mxu1 %v3430_v49 }
  0xaa   :  { %2215 = vmatpush1.bf16.msra.mxu1 %v3449_v62 }
  0xab   :  { %2216 = vmatprep.subr.bf16.mxu1 %v3455_v1 }
  0xae   :  { %2217 = vmatpush1.bf16.msra.mxu1 %v3473_v17  ;;  %v4056_v17 = vld [vmem:[%s4255_s2 + $0x18] sm:$0xff] }
  0xaf   :  { %2218 = vmatprep.subr.bf16.mxu1 %v3479_v24  ;;  %v4410_v24 = vld [vmem:[#allocation46_spill] sm:$0xff] }
  0xb2   :  { %2219 = vmatpush1.bf16.msra.mxu1 %v3500_v60  ;;  %v4412_v60 = vld [vmem:[#allocation50_spill] sm:$0xff] }
  0xb3   :  { %2220 = vmatprep.subr.bf16.mxu1 %v3506_v32  ;;  %v1401_v32 = vrot.slane %v1396_v10, %v3497_v59  ;;  %v4411_v59 = vld [vmem:[#allocation49_spill] sm:$0xff] }
  0xb4   :  { %v4428_v10 = vld [vmem:[#allocation5_spill] sm:$0xff] }
  0xb5   :  { %v1408_v44 = vmul.f32 %v1401_v32, %v1394_v28  ;;  %v4432_v28 = vld [vmem:[#allocation9_spill] sm:$0xff]  ;;  %v4433_v32 = vld [vmem:[#allocation10_spill] sm:$0xff] }
  0xb6   :  { %2221 = vmatpush1.bf16.msra.mxu1 %v3527_v22  ;;  %v4077_v22 = vld [vmem:[%s4255_s2 + $0x8] sm:$0xff] }
  0xb7   :  { %2222 = vmatprep.subr.bf16.mxu1 %v3533_v51  ;;  %v1422_v55 = vadd.f32 %v1415_v46, %v1408_v44  ;;  %v4436_v44 = vld [vmem:[#allocation14_spill] sm:$0xff]  ;;  %v4437_v46 = vld [vmem:[#allocation15_spill] sm:$0xff] }
  0xb9   :  { %v1424_v11 = vmax.f32 %v1422_v55, 0.0  ;;  %v4439_v55 = vld [vmem:[#allocation17_spill] sm:$0xff] }
  0xba   :  { %2223 = vmatpush1.bf16.msra.mxu1 %v3553_v2 }
  0xbb   :  { %2224 = vmatprep.subr.bf16.mxu1 %v3559_v31  ;;  %v4039_v31 = vpack.c.bf16 %v1424_v11, %v1424_v11  ;;  %v4441_v11 = vld [vmem:[#allocation19_spill] sm:$0xff] }
  0xbe   :  { %2225 = vmatpush1.bf16.msra.mxu1 %v3577_v15  ;;  %v4414_v15 = vld [vmem:[#allocation54_spill] sm:$0xff] }
  0xbf   :  { %2226 = vmatprep.subr.bf16.mxu1 %v3583_v48 }
  0xc2   :  { %2227 = vmatpush1.bf16.msra.mxu1 %v3601_v52  ;;  %v4416_v52 = vld [vmem:[#allocation58_spill] sm:$0xff] }
  0xc3   :  { %2278 = vmatprep.subr.bf16.mxu1 %v3607_v61  ;;  %v4413_v61 = vld [vmem:[#allocation53_spill] sm:$0xff] }
  0xc5   :  { %2229 = vmatmul.mubr.bf16.vlgmr.msra.gmra.mrb[8].mxu1 %v4039_v31 }
  0xc6   :  { %2279 = vmatpush1.bf16.msra.mxu1 %v3627_v0  ;;  %2310 = vmatprep.mubr.bf16.mxu1 %v4037_v23  ;;  %v4067_v0 = vld [vmem:[%s4255_s2] sm:$0xff] }
  0xc7   :  { %2280 = vmatprep.subr.bf16.mxu1 %v3631_v16  ;;  %v4415_v16 = vld [vmem:[#allocation57_spill] sm:$0xff] }
  0xca   :  { %2281 = vmatpush1.bf16.msra.mxu1 %v3653_v40  ;;  %v4420_v40 = vld [vmem:[#allocation66_spill] sm:$0xff] }
  0xcb   :  { %2282 = vmatprep.subr.bf16.mxu1 %v3657_v63  ;;  %v4417_v63 = vld [vmem:[#allocation61_spill] sm:$0xff] }
  0xce   :  { %2283 = vmatpush1.bf16.msra.mxu1 %v3679_v6  ;;  %v4422_v6 = vld [vmem:[#allocation70_spill] sm:$0xff] }
  0xcf   :  { %2284 = vmatprep.subr.bf16.mxu1 %v3683_v42  ;;  %v4419_v42 = vld [vmem:[#allocation65_spill] sm:$0xff] }
  0xd2   :  { %2285 = vmatpush1.bf16.msra.mxu1 %v3703_v34  ;;  %v4424_v34 = vld [vmem:[#allocation74_spill] sm:$0xff] }
  0xd3   :  { %2286 = vmatprep.subr.bf16.mxu1 %v3707_v12  ;;  %v4421_v12 = vld [vmem:[#allocation69_spill] sm:$0xff] }
  0xd6   :  { %2287 = vmatpush1.bf16.msra.mxu1 %v3727_v33 }
  0xd7   :  { %2288 = vmatprep.subr.bf16.mxu1 %v3731_v58  ;;  %v4423_v58 = vld [vmem:[#allocation73_spill] sm:$0xff] }
  0xda   :  { %2289 = vmatpush1.bf16.msra.mxu1 %v3751_v56 }
  0xdb   :  { %2290 = vmatprep.subr.bf16.mxu1 %v4410_v24  ;;  %v4450_v24 = vld [vmem:[#allocation28_spill] sm:$0xff] }
  0xde   :  { %2291 = vmatpush1.bf16.msra.mxu1 %v4411_v59  ;;  %v4451_v59 = vld [vmem:[#allocation29_spill] sm:$0xff] }
  0xdf   :  { %2292 = vmatprep.subr.bf16.mxu1 %v4412_v60  ;;  %v4452_v60 = vld [vmem:[#allocation30_spill] sm:$0xff] }
  0xe2   :  { %2293 = vmatpush1.bf16.msra.mxu1 %v4413_v61  ;;  %v4453_v61 = vld [vmem:[#allocation31_spill] sm:$0xff] }
  0xe3   :  { %2294 = vmatprep.subr.bf16.mxu1 %v4414_v15  ;;  %v4454_v15 = vld [vmem:[#allocation32_spill] sm:$0xff] }
  0xe6   :  { %2295 = vmatpush1.bf16.msra.mxu1 %v4415_v16  ;;  %v4455_v16 = vld [vmem:[#allocation33_spill] sm:$0xff] }
  0xe7   :  { %2296 = vmatprep.subr.bf16.mxu1 %v4416_v52  ;;  %v4456_v52 = vld [vmem:[#allocation34_spill] sm:$0xff] }
  0xea   :  { %2297 = vmatpush1.bf16.msra.mxu1 %v4417_v63  ;;  %v4457_v63 = vld [vmem:[#allocation35_spill] sm:$0xff] }
  0xeb   :  { %2298 = vmatprep.subr.bf16.mxu1 %v4418_v41  ;;  %v4458_v41 = vld [vmem:[#allocation36_spill] sm:$0xff] }
  0xee   :  { %2299 = vmatpush1.bf16.msra.mxu1 %v4419_v42  ;;  %v4459_v42 = vld [vmem:[#allocation37_spill] sm:$0xff] }
  0xef   :  { %2300 = vmatprep.subr.bf16.mxu1 %v4420_v40  ;;  %v4460_v40 = vld [vmem:[#allocation38_spill] sm:$0xff] }
  0xf2   :  { %2301 = vmatpush1.bf16.msra.mxu1 %v4421_v12  ;;  %v4461_v12 = vld [vmem:[#allocation39_spill] sm:$0xff] }
  0xf3   :  { %2302 = vmatprep.subr.bf16.mxu1 %v4422_v6  ;;  %v4462_v6 = vld [vmem:[#allocation40_spill] sm:$0xff] }
  0xf6   :  { %2303 = vmatpush1.bf16.msra.mxu1 %v4423_v58  ;;  %v4463_v58 = vld [vmem:[#allocation41_spill] sm:$0xff] }
  0xf7   :  { %2304 = vmatprep.subr.bf16.mxu1 %v4424_v34  ;;  %v4464_v34 = vld [vmem:[#allocation42_spill] sm:$0xff] }
  0xfa   :  { %2305 = vmatpush1.bf16.msra.mxu1 %v3943_v14  ;;  %v4425_v14 = vld [vmem:[#allocation2_spill] sm:$0xff] }
  0xfb   :  { %2306 = vmatprep.subr.bf16.mxu1 %v3947_v36 }
  0xfe   :  { %2307 = vmatpush1.bf16.msra.mxu1 %v3967_v13  ;;  %v4138_v13 = vld [vmem:[%s4255_s2 + $0x38] sm:$0xff] }
  0xff   :  { %2308 = vmatprep.subr.bf16.mxu1 %v3971_v27  ;;  %v4120_v27 = vld [vmem:[%s4255_s2 + $0x28] sm:$0xff] }
 0x102   :  { %2309 = vmatpush1.bf16.msra.mxu1 %v3979_v47 }
 0x105   :  { %2311 = vmatmul.mubr.bf16.vlgmr.msra.gmra.mrb[12].mxu1 %v4039_v31 }
 0x106   :  { %2434 = vmatprep.mubr.f32.mxu1 %v3134_v3 }
 0x118   :  { %v860_v30 = vpop.f32.mrb[0].mxu0  ;;  %v901_v43 = vpop.f32.mrb[0].mxu1 }
 0x119   :  { %v862_v48 = vpop.f32.mrb[1].mxu0  ;;  %v903_v49 = vpop.f32.mrb[1].mxu1 }
 0x11a   :  { %v864_v51 = vpop.f32.mrb[2].mxu0  ;;  %1002 = vmatprep.subr.mxu0 %v903_v49  ;;  %v905_v1 = vpop.f32.mrb[2].mxu1  ;;  %v4445_v49 = vld [vmem:[#allocation23_spill] sm:$0xff] }
 0x11b   :  { %v865_v62 = vpop.f32.mrb[3].mxu0  ;;  %1003 = vmatpush1.msra.mxu0 %v901_v43  ;;  %v906_v2 = vpop.f32.mrb[3].mxu1  ;;  %v4443_v43 = vld [vmem:[#allocation21_spill] sm:$0xff]  ;;  %v4446_v51 = vld [vmem:[#allocation24_spill] sm:$0xff]  ;;  %v4448_v1 = vld [vmem:[#allocation26_spill] sm:$0xff] }
 0x11c   :  { %1085 = vmatprep.subr.mxu0 %v862_v48  ;;  %2943 = vmatmul.mubr.msk.f32.vlgmr.msra.gmra.mrb[8].mxu0 %vm995_vm0, %v4045_v50  ;;  %v4444_v48 = vld [vmem:[#allocation22_spill] sm:$0xff]  ;;  %v4447_v62 = vld [vmem:[#allocation25_spill] sm:$0xff]  ;;  %v4449_v2 = vld [vmem:[#allocation27_spill] sm:$0xff] }
 0x11d   :  { %1086 = vmatpush1.msra.mxu0 %v860_v30  ;;  %1072 = vmatprep.mubr.f32.mxu0 %v3134_v3  ;;  %v4442_v30 = vld [vmem:[#allocation20_spill] sm:$0xff] }
 0x120   :  { %2944 = vmatmul.mubr.msk.f32.gmra.mrb[10].mxu0 %vm995_vm0, %v4056_v17 }
 0x121   :  { %1149 = vmatprep.mubr.f32.mxu0 %v3134_v3 }
 0x124   :  { %2945 = vmatmul.mubr.msk.f32.vlgmr.msra.gmra.mrb[8].mxu0 %vm995_vm0, %v4067_v0 }
 0x125   :  { %1155 = vmatprep.mubr.f32.mxu0 %v3134_v3 }
 0x128   :  { %2946 = vmatmul.mubr.msk.f32.gmra.mrb[10].mxu0 %vm995_vm0, %v4077_v22 }
 0x129   :  { %1235 = vmatprep.mubr.f32.mxu0 %v3134_v3 }
 0x158   :  { %v942_v33 = vpop.f32.mrb[4].mxu0  ;;  %v983_v8 = vpop.f32.mrb[4].mxu1 }
 0x159   :  { %v944_v56 = vpop.f32.mrb[5].mxu0  ;;  %v985_v39 = vpop.f32.mrb[5].mxu1 }
 0x15a   :  { %v946_v21 = vpop.f32.mrb[6].mxu0  ;;  %1171 = vmatprep.subr.mxu0 %v944_v56  ;;  %v987_v7 = vpop.f32.mrb[6].mxu1  ;;  %v4466_v56 = vld [vmem:[#allocation44_spill] sm:$0xff] }
 0x15b   :  { %v947_v36 = vpop.f32.mrb[7].mxu0  ;;  %1172 = vmatpush1.msra.mxu0 %v942_v33  ;;  %v988_v47 = vpop.f32.mrb[7].mxu1  ;;  %v4465_v33 = vld [vmem:[#allocation43_spill] sm:$0xff] }
 0x15c   :  { %2949 = vmatmul.mubr.msk.f32.vlgmr.msra.gmra.mrb[8].mxu0 %vm995_vm0, %v4110_v29  ;;  %1261 = vmatprep.subr.mxu0 %v985_v39  ;;  %v4468_v21 = vld [vmem:[#allocation47_spill] sm:$0xff]  ;;  %v4471_v36 = vld [vmem:[#allocation52_spill] sm:$0xff] }
 0x15d   :  { %1241 = vmatprep.mubr.f32.mxu0 %v3134_v3  ;;  %1262 = vmatpush1.msra.mxu0 %v983_v8  ;;  %v4467_v8 = vld [vmem:[#allocation45_spill] sm:$0xff]  ;;  %v4470_v39 = vld [vmem:[#allocation51_spill] sm:$0xff]  ;;  %v4473_v47 = vld [vmem:[#allocation56_spill] sm:$0xff] }
 0x15e   :  { %2237 = vmatprep.subr.bf16.mxu0 %v4425_v14  ;;  %v4472_v7 = vld [vmem:[#allocation55_spill] sm:$0xff] }
 0x15f   :  { %v4474_v14 = vld [vmem:[#allocation59_spill] sm:$0xff] }
 0x160   :  { %2950 = vmatmul.mubr.msk.f32.gmra.mrb[10].mxu0 %vm995_vm0, %v4120_v27 }
 0x161   :  { %1325 = vmatprep.mubr.f32.mxu0 %v3134_v3 }
 0x164   :  { %2953 = vmatmul.mubr.msk.f32.vlgmr.msra.gmra.mrb[8].mxu0 %vm995_vm0, %v4129_v38 }
 0x165   :  { %2238 = vmatpush1.bf16.msra.mxu0 %v4426_v54  ;;  %1331 = vmatprep.mubr.f32.mxu0 %v3134_v3  ;;  %v4475_v54 = vld [vmem:[#allocation60_spill] sm:$0xff] }
 0x166   :  { %2239 = vmatprep.subr.bf16.mxu0 %v4427_v5  ;;  %v4476_v5 = vld [vmem:[#allocation63_spill] sm:$0xff] }
 0x168   :  { %2954 = vmatmul.mubr.msk.f32.gmra.mrb[10].mxu0 %vm995_vm0, %v4138_v13 }
 0x169   :  { %2240 = vmatpush1.bf16.msra.mxu0 %v4428_v10  ;;  %2269 = vmatprep.mubr.bf16.mxu0 %v4037_v23  ;;  %v4477_v10 = vld [vmem:[#allocation64_spill] sm:$0xff] }
 0x16a   :  { %2241 = vmatprep.subr.bf16.mxu0 %v4429_v18  ;;  %v4478_v18 = vld [vmem:[#allocation67_spill] sm:$0xff] }
 0x16d   :  { %2242 = vmatpush1.bf16.msra.mxu0 %v4430_v20  ;;  %v4479_v20 = vld [vmem:[#allocation68_spill] sm:$0xff] }
 0x16e   :  { %2243 = vmatprep.subr.bf16.mxu0 %v4431_v26  ;;  %v4480_v26 = vld [vmem:[#allocation71_spill] sm:$0xff] }
 0x171   :  { %2244 = vmatpush1.bf16.msra.mxu0 %v4432_v28  ;;  %v4481_v28 = vld [vmem:[#allocation72_spill] sm:$0xff] }
 0x172   :  { %2245 = vmatprep.subr.bf16.mxu0 %v4433_v32  ;;  %v4482_v32 = vld [vmem:[#allocation75_spill] sm:$0xff] }
 0x175   :  { %2246 = vmatpush1.bf16.msra.mxu0 %v4434_v35  ;;  %v4483_v35 = vld [vmem:[#allocation76_spill] sm:$0xff] }
 0x176   :  { %2247 = vmatprep.subr.bf16.mxu0 %v4435_v37 }
 0x179   :  { %2248 = vmatpush1.bf16.msra.mxu0 %v4436_v44 }
 0x17a   :  { %2249 = vmatprep.subr.bf16.mxu0 %v4437_v46 }
 0x17d   :  { %2250 = vmatpush1.bf16.msra.mxu0 %v4438_v53 }
 0x17e   :  { %2251 = vmatprep.subr.bf16.mxu0 %v4439_v55 }
 0x181   :  { %2252 = vmatpush1.bf16.msra.mxu0 %v4440_v4 }
 0x182   :  { %2253 = vmatprep.subr.bf16.mxu0 %v4441_v11 }
 0x185   :  { %2254 = vmatpush1.bf16.msra.mxu0 %v4442_v30 }
 0x186   :  { %2255 = vmatprep.subr.bf16.mxu0 %v4443_v43 }
 0x189   :  { %2256 = vmatpush1.bf16.msra.mxu0 %v4444_v48 }
 0x18a   :  { %2257 = vmatprep.subr.bf16.mxu0 %v4445_v49 }
 0x18d   :  { %2258 = vmatpush1.bf16.msra.mxu0 %v4446_v51 }
 0x18e   :  { %2259 = vmatprep.subr.bf16.mxu0 %v4447_v62 }
 0x191   :  { %2260 = vmatpush1.bf16.msra.mxu0 %v4448_v1 }
 0x192   :  { %2261 = vmatprep.subr.bf16.mxu0 %v4449_v2 }
 0x195   :  { %2262 = vmatpush1.bf16.msra.mxu0 %v4450_v24 }
 0x196   :  { %2263 = vmatprep.subr.bf16.mxu0 %v4451_v59 }
 0x198   :  { %v2230_v37 = vpop.f32.mrb[8].mxu1 }
 0x199   :  { %2264 = vmatpush1.bf16.msra.mxu0 %v4452_v60  ;;  %v2232_v44 = vpop.f32.mrb[9].mxu1 }
 0x19a   :  { %2265 = vmatprep.subr.bf16.mxu0 %v4453_v61  ;;  %v2234_v46 = vpop.f32.mrb[10].mxu1 }
 0x19b   :  { %v2235_v53 = vpop.f32.mrb[11].mxu1 }
 0x19d   :  { %2266 = vmatpush1.bf16.msra.mxu0 %v4454_v15 }
 0x19e   :  { %2267 = vmatprep.subr.bf16.mxu0 %v4455_v16 }
 0x1a1   :  { %2268 = vmatpush1.bf16.msra.mxu0 %v4456_v52 }
 0x1a2   :  { %2319 = vmatprep.subr.bf16.mxu0 %v4457_v63 }
 0x1a4   :  { %2270 = vmatmul.mubr.bf16.vlgmr.msra.gmra.mrb[12].mxu0 %v4039_v31 }
 0x1a5   :  { %2320 = vmatpush1.bf16.msra.mxu0 %v4458_v41  ;;  %2351 = vmatprep.mubr.bf16.mxu0 %v4037_v23  ;;  %v4469_v23 = vld [vmem:[#allocation48_spill] sm:$0xff] }
 0x1a6   :  { %2321 = vmatprep.subr.bf16.mxu0 %v4459_v42 }
 0x1a9   :  { %2322 = vmatpush1.bf16.msra.mxu0 %v4460_v40 }
 0x1aa   :  { %2323 = vmatprep.subr.bf16.mxu0 %v4461_v12 }
 0x1ad   :  { %2324 = vmatpush1.bf16.msra.mxu0 %v4462_v6 }
 0x1ae   :  { %2325 = vmatprep.subr.bf16.mxu0 %v4463_v58 }
 0x1b1   :  { %2326 = vmatpush1.bf16.msra.mxu0 %v4464_v34 }
 0x1b2   :  { %2327 = vmatprep.subr.bf16.mxu0 %v4465_v33 }
 0x1b5   :  { %2328 = vmatpush1.bf16.msra.mxu0 %v4466_v56 }
 0x1b6   :  { %2329 = vmatprep.subr.bf16.mxu0 %v4467_v8 }
 0x1b9   :  { %2330 = vmatpush1.bf16.msra.mxu0 %v4468_v21 }
 0x1ba   :  { %2331 = vmatprep.subr.bf16.mxu0 %v4469_v23 }
 0x1bd   :  { %2332 = vmatpush1.bf16.msra.mxu0 %v4470_v39 }
 0x1be   :  { %2333 = vmatprep.subr.bf16.mxu0 %v4471_v36 }
 0x1c1   :  { %2334 = vmatpush1.bf16.msra.mxu0 %v4472_v7 }
 0x1c2   :  { %2335 = vmatprep.subr.bf16.mxu0 %v4473_v47 }
 0x1c5   :  { %2336 = vmatpush1.bf16.msra.mxu0 %v4474_v14 }
 0x1c6   :  { %2337 = vmatprep.subr.bf16.mxu0 %v4475_v54 }
 0x1c9   :  { %2338 = vmatpush1.bf16.msra.mxu0 %v4476_v5 }
 0x1ca   :  { %2339 = vmatprep.subr.bf16.mxu0 %v4477_v10 }
 0x1cd   :  { %2340 = vmatpush1.bf16.msra.mxu0 %v4478_v18 }
 0x1ce   :  { %2341 = vmatprep.subr.bf16.mxu0 %v4479_v20 }
 0x1d1   :  { %2342 = vmatpush1.bf16.msra.mxu0 %v4480_v26 }
 0x1d2   :  { %2343 = vmatprep.subr.bf16.mxu0 %v4481_v28 }
 0x1d5   :  { %2344 = vmatpush1.bf16.msra.mxu0 %v4482_v32 }
 0x1d6   :  { %2345 = vmatprep.subr.bf16.mxu0 %v4483_v35 }
 0x1d8   :  { %v2312_v55 = vpop.f32.mrb[12].mxu1 }
 0x1d9   :  { %2346 = vmatpush1.bf16.msra.mxu0 %v3949_v25  ;;  %v2314_v4 = vpop.f32.mrb[13].mxu1 }
 0x1da   :  { %2347 = vmatprep.subr.bf16.mxu0 %v3958_v19  ;;  %v2316_v11 = vpop.f32.mrb[14].mxu1 }
 0x1db   :  { %v2317_v30 = vpop.f32.mrb[15].mxu1  ;;  %v3135_v11 = vmov 1966171168  }
 0x1dc   :  { %v2763_v30 = vunpack.c.l.s4 %v3135_v11 }
 0x1dd   :  { %2348 = vmatpush1.bf16.msra.mxu0 %v3973_v57 }
 0x1de   :  { %2349 = vmatprep.subr.bf16.mxu0 %v3976_v45 }
 0x1e1   :  { %2350 = vmatpush1.bf16.msra.mxu0 %v3983_v9 }
 0x1e4   :  { %2352 = vmatmul.mubr.bf16.vlgmr.msra.gmra.mrb[16].mxu0 %v4039_v31 }
 0x237   :  { %v1327_v43 = vpop.f32.mrb[8].mxu0 }
 0x238   :  { %v1329_v25 = vpop.f32.mrb[9].mxu0  ;;  %v1358_v45 = vmul.f32 %v1327_v43, %v1327_v43 }
 0x239   :  { %v3104_v48 = vpack.c.bf16 %v1329_v25, %v1327_v43  ;;  %v1359_v49 = vmul.f32 %v1329_v25, %v1329_v25 }
 0x23b   :  { %1390 = vst [vmem:[%s4256_s5] sm:$0xff] %v3104_v48  ;;  %v1333_v57 = vpop.f32.mrb[10].mxu0 }
 0x23c   :  { %v1342_v19 = vadd.f32 %v1333_v57, %v1327_v43  ;;  %v1360_v9 = vmul.f32 %v1333_v57, %v1333_v57  ;;  %v1335_v31 = vpop.f32.mrb[11].mxu0 }
 0x23d   :  { %v1349_v51 = vadd.f32 %v1335_v31, %v1329_v25  ;;  %v1361_v62 = vmul.f32 %v1335_v31, %v1335_v31  ;;  %v3105_v1 = vpack.c.bf16 %v1335_v31, %v1333_v57 }
 0x23e   :  { %v1362_v2 = vadd.f32 %v1360_v9, %v1358_v45 }
 0x23f   :  { %v1369_v24 = vadd.f32 %v1361_v62, %v1359_v49  ;;  %1391 = vst [vmem:[%s4256_s5 + $0x8] sm:$0xff] %v3105_v1 }
 0x240   :  { %v1363_v52 = vrot.slane %v1362_v2, 4 }
 0x241   :  { %v1370_v63 = vrot.slane %v1369_v24, 4 }
 0x242   :  { %v1364_v6 = vadd.f32 %v1363_v52, %v1362_v2  ;;  %v2764_v2 = vunpack.c.0.s8 %v2763_v30 }
 0x243   :  { %v1371_v34 = vadd.f32 %v1370_v63, %v1369_v24 }
 0x244   :  { %v1365_v7 = vrot.slane %v1364_v6, 2 }
 0x245   :  { %v1372_v54 = vrot.slane %v1371_v34, 2 }
 0x247   :  { %v1373_v53 = vadd.f32 %v1372_v54, %v1371_v34 }
 0x277   :  { %v2271_v59 = vpop.f32.mrb[12].mxu0 }
 0x278   :  { %v2273_v60 = vpop.f32.mrb[13].mxu0 }
 0x279   :  { %v2275_v61 = vpop.f32.mrb[14].mxu0  ;;  %2370 = vmatprep.subr.mxu1 %v2273_v60 }
 0x27a   :  { %v2276_v15 = vpop.f32.mrb[15].mxu0  ;;  %2371 = vmatpush1.msra.mxu1 %v2271_v59 }
 0x27b   :  { %2453 = vmatprep.subr.mxu1 %v2232_v44  ;;  %3088 = vmatmul.mubr.msk.f32.vlgmr.msra.gmra.mrb[16].mxu1 %vm995_vm0, %v4045_v50 }
 0x27c   :  { %2454 = vmatpush1.msra.mxu1 %v2230_v37  ;;  %2440 = vmatprep.mubr.f32.mxu1 %v3134_v3  ;;  %v1366_v37 = vadd.f32 %v1365_v7, %v1364_v6 }
 0x27d   :  { %2538 = vmatprep.subr.mxu1 %v2314_v4 }
 0x27e   :  { %v1367_v9 = vrot.slane %v1366_v37, 1 }
 0x27f   :  { %3089 = vmatmul.mubr.msk.f32.gmra.mrb[18].mxu1 %vm995_vm0, %v4056_v17 }
 0x280   :  { %2517 = vmatprep.mubr.f32.mxu1 %v3134_v3 }
 0x283   :  { %3090 = vmatmul.mubr.msk.f32.vlgmr.msra.gmra.mrb[16].mxu1 %vm995_vm0, %v4067_v0 }
 0x284   :  { %2523 = vmatprep.mubr.f32.mxu1 %v3134_v3  ;;  %2539 = vmatpush1.msra.mxu1 %v2312_v55 }
 0x287   :  { %3091 = vmatmul.mubr.msk.f32.gmra.mrb[18].mxu1 %vm995_vm0, %v4077_v22  ;;  %v1343_v22 = vrot.slane %v1342_v19, 4 }
 0x288   :  { %2602 = vmatprep.mubr.f32.mxu1 %v3134_v3 }
 0x28b   :  { %3094 = vmatmul.mubr.msk.f32.vlgmr.msra.gmra.mrb[16].mxu1 %vm995_vm0, %v4110_v29  ;;  %v1350_v29 = vrot.slane %v1349_v51, 4 }
 0x28c   :  { %2608 = vmatprep.mubr.f32.mxu1 %v3134_v3 }
 0x28d   :  { %v1351_v42 = vadd.f32 %v1350_v29, %v1349_v51  ;;  %v1374_v51 = vrot.slane %v1373_v53, 1 }
 0x28f   :  { %3095 = vmatmul.mubr.msk.f32.gmra.mrb[18].mxu1 %vm995_vm0, %v4120_v27  ;;  %v1344_v27 = vadd.f32 %v1343_v22, %v1342_v19  ;;  %v1375_v22 = vadd.f32 %v1374_v51, %v1373_v53 }
 0x290   :  { %2691 = vmatprep.mubr.f32.mxu1 %v3134_v3 }
 0x291   :  { %v1345_v58 = vrot.slane %v1344_v27, 2 }
 0x293   :  { %v1346_v18 = vadd.f32 %v1345_v58, %v1344_v27  ;;  %v4484_v27 = vld [vmem:[#allocation11_spill] sm:$0xff]  ;;  %v4485_v58 = vlaneseq }
 0x294   :  { %v2767_v63 = vsub.s32 %v2764_v2, %v4484_v27 }
 0x295   :  { %v1347_v43 = vrot.slane %v1346_v18, 1  ;;  %vm2779_vm1 = vcmp.lt.s32.totalorder %v4485_v58, 256 }
 0x297   :  { %v1348_v24 = vadd.f32 %v1347_v43, %v1346_v18 }
 0x2b7   :  { %v2353_v50 = vpop.f32.mrb[16].mxu0 }
 0x2b8   :  { %v2355_v17 = vpop.f32.mrb[17].mxu0 }
 0x2b9   :  { %v2357_v0 = vpop.f32.mrb[18].mxu0  ;;  %2627 = vmatprep.subr.mxu1 %v2355_v17  ;;  %v1368_v17 = vadd.f32 %v1367_v9, %v1366_v37 }
 0x2ba   :  { %v2358_v16 = vpop.f32.mrb[19].mxu0  ;;  %2628 = vmatpush1.msra.mxu1 %v2353_v50 }
 0x2bb   :  { %3098 = vmatmul.mubr.msk.f32.vlgmr.msra.gmra.mrb[16].mxu1 %vm995_vm0, %v4129_v38  ;;  %v1352_v38 = vrot.slane %v1351_v42, 2 }
 0x2bc   :  { %2697 = vmatprep.mubr.f32.mxu1 %v3134_v3 }
 0x2bd   :  { %v1353_v28 = vadd.f32 %v1352_v38, %v1351_v42 }
 0x2bf   :  { %3099 = vmatmul.mubr.msk.f32.gmra.mrb[18].mxu1 %vm995_vm0, %v4138_v13  ;;  %v1354_v57 = vrot.slane %v1353_v28, 1 }
 0x2c1   :  { %v1355_v61 = vadd.f32 %v1354_v57, %v1353_v28 }
 0x38e   :  { %v2693_v41 = vpop.f32.mrb[16].mxu1 }
 0x38f   :  { %v2695_v40 = vpop.f32.mrb[17].mxu1  ;;  %v2724_v33 = vmul.f32 %v2693_v41, %v2693_v41 }
 0x390   :  { %v3106_v12 = vpack.c.bf16 %v2695_v40, %v2693_v41  ;;  %v2725_v21 = vmul.f32 %v2695_v40, %v2695_v40 }
 0x392   :  { %3102 = vst [vmem:[%s4256_s5 + $0x10] sm:$0xff] %v3106_v12  ;;  %v2699_v3 = vpop.f32.mrb[18].mxu1 }
 0x393   :  { %v2708_v13 = vadd.f32 %v2699_v3, %v2693_v41  ;;  %v2726_v56 = vmul.f32 %v2699_v3, %v2699_v3  ;;  %v2701_v8 = vpop.f32.mrb[19].mxu1 }
 0x394   :  { %v2715_v23 = vadd.f32 %v2701_v8, %v2695_v40  ;;  %v2727_v39 = vmul.f32 %v2701_v8, %v2701_v8  ;;  %v3107_v36 = vpack.c.bf16 %v2701_v8, %v2699_v3 }
 0x395   :  { %v2709_v47 = vrot.slane %v2708_v13, 4  ;;  %v2728_v14 = vadd.f32 %v2726_v56, %v2724_v33 }
 0x396   :  { %v2716_v5 = vrot.slane %v2715_v23, 4  ;;  %v2735_v10 = vadd.f32 %v2727_v39, %v2725_v21  ;;  %3103 = vst [vmem:[%s4256_s5 + $0x18] sm:$0xff] %v3107_v36 }
 0x397   :  { %v2710_v20 = vadd.f32 %v2709_v47, %v2708_v13  ;;  %v2729_v26 = vrot.slane %v2728_v14, 4 }
 0x398   :  { %v2717_v32 = vadd.f32 %v2716_v5, %v2715_v23  ;;  %v2736_v35 = vrot.slane %v2735_v10, 4 }
 0x399   :  { %v2711_v44 = vrot.slane %v2710_v20, 2  ;;  %v2730_v46 = vadd.f32 %v2729_v26, %v2728_v14 }
 0x39a   :  { %v2718_v55 = vrot.slane %v2717_v32, 2  ;;  %v2737_v4 = vadd.f32 %v2736_v35, %v2735_v10 }
 0x39b   :  { %v2712_v25 = vadd.f32 %v2711_v44, %v2710_v20  ;;  %v2731_v48 = vrot.slane %v2730_v46, 2 }
 0x39c   :  { %v2719_v45 = vadd.f32 %v2718_v55, %v2717_v32  ;;  %v2738_v19 = vrot.slane %v2737_v4, 2 }
 0x39d   :  { %v2713_v31 = vrot.slane %v2712_v25, 1  ;;  %v2732_v49 = vadd.f32 %v2731_v48, %v2730_v46 }
 0x39e   :  { %v2720_v62 = vrot.slane %v2719_v45, 1  ;;  %v2739_v1 = vadd.f32 %v2738_v19, %v2737_v4 }
 0x39f   :  { %v2714_v59 = vadd.f32 %v2713_v31, %v2712_v25  ;;  %v2733_v60 = vrot.slane %v2732_v49, 1 }
 0x3a0   :  { %v2721_v15 = vadd.f32 %v2720_v62, %v2719_v45  ;;  %v2740_v50 = vrot.slane %v2739_v1, 1 }
 0x3a1   :  { %v2722_v0 = vadd.f32 %v2714_v59, %v1348_v24  ;;  %v2734_v16 = vadd.f32 %v2733_v60, %v2732_v49 }
 0x3a2   :  { %v2723_v29 = vadd.f32 %v2721_v15, %v1355_v61  ;;  %v2741_v52 = vadd.f32 %v2740_v50, %v2739_v1 }
 0x3a3   :  { %v2742_v41 = vadd.f32 %v2734_v16, %v1368_v17 }
 0x3a4   :  { %v2743_v42 = vadd.f32 %v2741_v52, %v1375_v22  ;;  %v2761_v40 = vcombine.low %v2722_v0, %v2723_v29 }
 0x3a6   :  { %v2768_v12 = vrot.slane %v2761_v40, %v2767_v63  ;;  %v2784_v6 = vcombine.low %v2742_v41, %v2743_v42 }
 0x3a8   :  { %v2775_v34 = vrot.slane %v2768_v12, %v2767_v63  ;;  %v2791_v3 = vrot.slane %v2784_v6, %v2767_v63 }
 0x3aa   :  { %2781 = vst.msk [vmem:[%s4257_s6] sm:$0x3] %vm2779_vm1, %v2775_v34  ;;  %v2798_v38 = vrot.slane %v2791_v3, %v2767_v63 }
 0x3ac   :  { %2800 = vst.msk [vmem:[%s4258_s7] sm:$0x3] %vm2779_vm1, %v2798_v38 }

</bundles_post_ra>
